<compile_context>
chip_gen: v7x
topology: tpu7x:2x2x1
jax: 0.10.0
libtpu: 0.0.40
codegen_flags: <defaults>
</compile_context>

<pallas_src>
import functools

import jax
import jax.numpy as jnp
from jax.experimental import pallas as pl
from jax.experimental.pallas import tpu as pltpu


# -----------------------------------------------------------------------------
# Pallas kernel: one (batch, row-tile) step
# -----------------------------------------------------------------------------
def _smenc_kernel(corr_ref, f_i2c_ref,
                  wc1_ref, bc1_ref, wf1_ref, bf1_ref,
                  wf2_ref, bf2_ref, wcv_ref, bcv_ref,
                  out_ref, pad_f_ref, pad_c_ref,
                  *, img_h, row_tile):
    _, _, R2, W, Cc = corr_ref.shape            # R2 = row_tile + 2 (halo +-1)
    R4 = f_i2c_ref.shape[2]                     # row_tile + 4 (halo +-2)
    Kf = f_i2c_ref.shape[-1]                    # 7*7*2 = 98
    TH = row_tile
    row0 = pl.program_id(1) * TH                # first output row of this tile

    def zero_outside_image(x_3d, first_abs_row):
        # The untiled convs zero-pad their *intermediates*; the zero-filled raw
        # halo gives relu(bias) != 0 there, so mask those rows back to zero.
        rows = x_3d.shape[0]
        r = jax.lax.broadcasted_iota(jnp.int32, (rows, 1, 1), 0) + first_abs_row
        return jnp.where((r >= 0) & (r < img_h), x_3d, 0.0)

    def conv3x3_relu(pad_ref, x_bf16, rows_out, w_ref, b_ref):
        # x_bf16: (rows_out + 2, W, cin); H padding comes from the halo rows,
        # W padding from a persistent pre-zeroed VMEM scratch (no concat-of-
        # zeros copies).  3 W-taps folded into K, 3 H-taps unrolled.
        rows_in, _, cin = pad_ref.shape
        zcol = jnp.zeros((rows_in, 1, cin), jnp.bfloat16)
        pad_ref[:, 0:1, :] = zcol                        # re-zero borders (cheap,
        pad_ref[:, W + 1:W + 2, :] = zcol                # megacore-safe)
        pad_ref[:, 1:W + 1, :] = x_bf16
        slab = jnp.concatenate(
            [pad_ref[:, 0:W, :], pad_ref[:, 1:W + 1, :], pad_ref[:, 2:W + 2, :]],
            axis=-1)                                     # (rows_in, W, 3*cin)
        acc = jnp.dot(slab[0:rows_out].reshape(rows_out * W, 3 * cin),
                      w_ref[0], preferred_element_type=jnp.float32)
        for dy in (1, 2):                                # acc seeded with dy=0
            acc = acc + jnp.dot(
                slab[dy:dy + rows_out].reshape(rows_out * W, 3 * cin),
                w_ref[dy], preferred_element_type=jnp.float32)
        return jnp.maximum(acc + b_ref[...], 0.0)        # f32 (rows_out*W, 128)

    # --- convc1: 1x1 conv == one MXU matmul; cols 0:96 real, 96:128 zero ------
    corr = corr_ref[...].reshape(R2 * W, Cc)
    cor = jnp.dot(corr, wc1_ref[...], preferred_element_type=jnp.float32)
    cor = jnp.maximum(cor + bc1_ref[...], 0.0)           # (R2*W, 128)

    # --- convf1: 7x7 conv, taps pre-folded into K by the wrapper im2col -------
    f_i2c = f_i2c_ref[...].reshape(R4 * W, Kf)
    flo = jnp.dot(f_i2c, wf1_ref[...], preferred_element_type=jnp.float32)
    flo = jnp.maximum(flo + bf1_ref[...], 0.0)           # (R4*W, 64)
    flo = zero_outside_image(flo.reshape(R4, W, 64), row0 - 2)

    # --- convf2: 3x3, real output channels in cols 96:128 ---------------------
    flo2 = conv3x3_relu(pad_f_ref, flo.astype(jnp.bfloat16), R2,
                        wf2_ref, bf2_ref)                # (R2*W, 128)

    # --- concat([cor, flo], ch) -> complementary zero-padded add --------------
    cor_flo = zero_outside_image((cor + flo2).reshape(R2, W, 128), row0 - 1)

    # --- final conv: 3x3, real output channels in cols 0:80; lane-dense store -
    out = conv3x3_relu(pad_c_ref, cor_flo.astype(jnp.bfloat16), TH,
                       wcv_ref, bcv_ref)                 # (TH*W, 128)
    out_ref[...] = out.reshape(1, TH, W, 128).astype(out_ref.dtype)


# -----------------------------------------------------------------------------
# Wrapper: NCHW in / NCHW out
# -----------------------------------------------------------------------------
def _pick_row_tile(H, W):
    # ~4K output px/tile keeps the per-step working set (double-buffered corr /
    # f_i2c / out streams + f32 intermediates, ~5-6 KB/px) comfortably inside
    # v7x's 32 MiB default scoped / 64 MiB physical VMEM.
    return max(1, min(H, 4096 // max(W, 1)))


def small_motion_encoder_pallas(flow_nchw, corr_nchw, packed, row_tile=None):
    (wc1, bc1, wf1, bf1, wf2, bf2, wcv, bcv) = packed
    N, _, H, W = flow_nchw.shape
    Cc = corr_nchw.shape[1]
    Kf = wf1.shape[0]                                    # 98

    TH = int(row_tile) if row_tile is not None else _pick_row_tile(H, W)
    nT = (H + TH - 1) // TH
    Hp = nT * TH
    R2, R4 = TH + 2, TH + 4

    corr = jnp.transpose(corr_nchw, (0, 2, 3, 1)).astype(jnp.bfloat16)
    flow = jnp.transpose(flow_nchw, (0, 2, 3, 1))        # f32 (N,H,W,2)

    # 7x7 im2col on the 2-channel flow (K = 98) so convf1 is a single matmul.
    fp = jnp.pad(flow, ((0, 0), (3, 3), (3, 3), (0, 0)))
    cols = [fp[:, dy:dy + H, dx:dx + W, :] for dy in range(7) for dx in range(7)]
    f_i2c = jnp.concatenate(cols, axis=-1).astype(jnp.bfloat16)   # (N,H,W,98)

    # Halo'd row tiles: corr needs +-1 rows, f_i2c +-2 rows (3x3 -> 3x3 chain).
    corr_p = jnp.pad(corr, ((0, 0), (1, 1 + Hp - H), (0, 0), (0, 0)))
    corr_t = jnp.stack([corr_p[:, t * TH:t * TH + R2] for t in range(nT)], axis=1)
    f_p = jnp.pad(f_i2c, ((0, 0), (2, 2 + Hp - H), (0, 0), (0, 0)))
    f_t = jnp.stack([f_p[:, t * TH:t * TH + R4] for t in range(nT)], axis=1)

    def wspec(shape):   # weights: constant index_map -> stay resident in VMEM
        return pl.BlockSpec(shape, lambda n, t, _r=len(shape): (0,) * _r)

    kernel = functools.partial(_smenc_kernel, img_h=H, row_tile=TH)

    out_pad = pl.pallas_call(
        kernel,
        out_shape=jax.ShapeDtypeStruct((N, Hp, W, 128), flow_nchw.dtype),
        grid=(N, nT),
        in_specs=[
            # TODO(synk): pipeline_mode=pl.Buffered(3) on corr if xprof shows
            #             exposed DMA once small row tiles shrink per-step work.
            pl.BlockSpec((1, 1, R2, W, Cc), lambda n, t: (n, t, 0, 0, 0)),
            pl.BlockSpec((1, 1, R4, W, Kf), lambda n, t: (n, t, 0, 0, 0)),
            wspec(wc1.shape), wspec(bc1.shape),
            wspec(wf1.shape), wspec(bf1.shape),
            wspec(wf2.shape), wspec(bf2.shape),
            wspec(wcv.shape), wspec(bcv.shape),
        ],
        out_specs=pl.BlockSpec((1, TH, W, 128), lambda n, t: (n, t, 0, 0)),
        scratch_shapes=[
            pltpu.VMEM((R4, W + 2, 64), jnp.bfloat16),    # W-padded flo
            pltpu.VMEM((R2, W + 2, 128), jnp.bfloat16),   # W-padded cor_flo
        ],
        compiler_params=pltpu.CompilerParams(
            dimension_semantics=("parallel", "parallel"),
            vmem_limit_bytes=48 * 1024 * 1024),
    )(corr_t, f_t, wc1, bc1, wf1, bf1, wf2, bf2, wcv, bcv)

    # Slice the 80 real channels (before any transpose, so padded lanes never
    # escape) and do the exact-f32 flow passthrough concat in the wrapper.
    out_nhwc = jnp.concatenate([out_pad[:, :H, :, :80], flow], axis=-1)
    return jnp.transpose(out_nhwc, (0, 3, 1, 2))          # NCHW (N, 82, H, W)


# -----------------------------------------------------------------------------
# Parameters: raw PyTorch-style (OIHW, f32) + packed/padded matmul weights
# -----------------------------------------------------------------------------
def make_params(key, cor_planes, matmul_dtype=jnp.bfloat16):
    ks = jax.random.split(key, 8)
    raw = {
        "wc1": 0.05 * jax.random.normal(ks[0], (96, cor_planes, 1, 1), jnp.float32),
        "bc1": 0.05 * jax.random.normal(ks[1], (96,), jnp.float32),
        "wf1": 0.05 * jax.random.normal(ks[2], (64, 2, 7, 7), jnp.float32),
        "bf1": 0.05 * jax.random.normal(ks[3], (64,), jnp.float32),
        "wf2": 0.05 * jax.random.normal(ks[4], (32, 64, 3, 3), jnp.float32),
        "bf2": 0.05 * jax.random.normal(ks[5], (32,), jnp.float32),
        "wcv": 0.05 * jax.random.normal(ks[6], (80, 128, 3, 3), jnp.float32),
        "bcv": 0.05 * jax.random.normal(ks[7], (80,), jnp.float32),
    }

    def pack_1x1(w, n_pad, col0):                 # (O,I,1,1) -> (I, n_pad)
        o, i = w.shape[0], w.shape[1]
        m = jnp.zeros((i, n_pad), jnp.float32)
        m = m.at[:, col0:col0 + o].set(jnp.transpose(w[:, :, 0, 0], (1, 0)))
        return m.astype(matmul_dtype)

    def pack_3x3(w, n_pad, col0):                 # (O,I,3,3) -> (3, 3*I, n_pad)
        o, i, kh, kw = w.shape
        wt = jnp.transpose(w, (2, 3, 1, 0)).reshape(kh, kw * i, o)
        m = jnp.zeros((kh, kw * i, n_pad), jnp.float32)
        m = m.at[:, :, col0:col0 + o].set(wt)
        return m.astype(matmul_dtype)

    def pack_bias(b, n_pad, col0):
        v = jnp.zeros((1, n_pad), jnp.float32)
        return v.at[0, col0:col0 + b.shape[0]].set(b)

    wf1 = (jnp.transpose(raw["wf1"], (2, 3, 1, 0))
           .reshape(7 * 7 * 2, 64).astype(matmul_dtype))  # (ky,kx,cin)-major

    packed = (
        pack_1x1(raw["wc1"], 128, 0),  pack_bias(raw["bc1"], 128, 0),
        wf1,                           raw["bf1"].reshape(1, 64),
        pack_3x3(raw["wf2"], 128, 96), pack_bias(raw["bf2"], 128, 96),
        pack_3x3(raw["wcv"], 128, 0),  pack_bias(raw["bcv"], 128, 0),
    )
    return raw, packed


# -----------------------------------------------------------------------------
# Pure-JAX reference (mirrors the PyTorch forward exactly)
# -----------------------------------------------------------------------------
def _conv2d_ref(x, w, b, pad):
    out = jax.lax.conv_general_dilated(
        x, w, window_strides=(1, 1),
        padding=((pad, pad), (pad, pad)),
        dimension_numbers=("NCHW", "OIHW", "NCHW"))
    return out + b[None, :, None, None]


def small_motion_encoder_reference(flow, corr, raw):
    cor = jax.nn.relu(_conv2d_ref(corr, raw["wc1"], raw["bc1"], 0))
    flo = jax.nn.relu(_conv2d_ref(flow, raw["wf1"], raw["bf1"], 3))
    flo = jax.nn.relu(_conv2d_ref(flo, raw["wf2"], raw["bf2"], 1))
    cor_flo = jnp.concatenate([cor, flo], axis=1)
    out = jax.nn.relu(_conv2d_ref(cor_flo, raw["wcv"], raw["bcv"], 1))
    return jnp.concatenate([out, flow], axis=1)


# -----------------------------------------------------------------------------
if __name__ == "__main__":
    N, H, W = 2, 16, 16
    corr_levels, corr_radius = 4, 3
    cor_planes = corr_levels * (2 * corr_radius + 1) ** 2      # 196

    key = jax.random.PRNGKey(0)
    kp, kf, kc = jax.random.split(key, 3)
    raw, packed = make_params(kp, cor_planes)

    flow = 0.5 * jax.random.normal(kf, (N, 2, H, W), jnp.float32)
    corr = 0.5 * jax.random.normal(kc, (N, cor_planes, H, W), jnp.float32)

    # row_tile=8 -> grid (2, 2): exercises row tiling + halo even at 16x16.
    fwd = jax.jit(functools.partial(small_motion_encoder_pallas, row_tile=8))
    out = jax.block_until_ready(fwd(flow, corr, packed))
    ref = jax.block_until_ready(small_motion_encoder_reference(flow, corr, raw))

    assert out.shape == ref.shape == (N, 82, H, W), (out.shape, ref.shape)
    max_err = jnp.max(jnp.abs(out - ref))
    assert jnp.allclose(out, ref, rtol=2e-2, atol=2e-2), (
        f"max abs diff {max_err}")

    print("KERNEL_OK")
</pallas_src>

<mosaic_0001>
module attributes {stable_mosaic.version = 11 : i64} {
  func.func @_smenc_kernel(%arg0: i32, %arg1: i32, %arg2: memref<1x1x10x16x196xbf16, #tpu.memory_space<vmem>>, %arg3: memref<1x1x12x16x98xbf16, #tpu.memory_space<vmem>>, %arg4: memref<196x128xbf16, #tpu.memory_space<vmem>>, %arg5: memref<1x128xf32, #tpu.memory_space<vmem>>, %arg6: memref<98x64xbf16, #tpu.memory_space<vmem>>, %arg7: memref<1x64xf32, #tpu.memory_space<vmem>>, %arg8: memref<3x192x128xbf16, #tpu.memory_space<vmem>>, %arg9: memref<1x128xf32, #tpu.memory_space<vmem>>, %arg10: memref<3x384x128xbf16, #tpu.memory_space<vmem>>, %arg11: memref<1x128xf32, #tpu.memory_space<vmem>>, %arg12: memref<1x8x16x128xf32, #tpu.memory_space<vmem>>, %arg13: memref<12x18x64xbf16, #tpu.memory_space<vmem>>, %arg14: memref<10x18x128xbf16, #tpu.memory_space<vmem>>) attributes {dimension_semantics = [#tpu.dimension_semantics<parallel>, #tpu.dimension_semantics<parallel>], iteration_bounds = array<i64: 2, 2>, scalar_prefetch = 0 : i64, scratch_operands = 2 : i64, tpu.core_type = #tpu.core_type<tc>, window_params = [{transform_indices = @transform_0, window_bounds = array<i64: 1, 1, 10, 16, 196>}, {transform_indices = @transform_1, window_bounds = array<i64: 1, 1, 12, 16, 98>}, {pipeline_mode = #tpu.pipeline_mode<synchronous>, transform_indices = @transform_2, window_bounds = array<i64: 196, 128>}, {pipeline_mode = #tpu.pipeline_mode<synchronous>, transform_indices = @transform_3, window_bounds = array<i64: 1, 128>}, {pipeline_mode = #tpu.pipeline_mode<synchronous>, transform_indices = @transform_4, window_bounds = array<i64: 98, 64>}, {pipeline_mode = #tpu.pipeline_mode<synchronous>, transform_indices = @transform_5, window_bounds = array<i64: 1, 64>}, {pipeline_mode = #tpu.pipeline_mode<synchronous>, transform_indices = @transform_6, window_bounds = array<i64: 3, 192, 128>}, {pipeline_mode = #tpu.pipeline_mode<synchronous>, transform_indices = @transform_7, window_bounds = array<i64: 1, 128>}, {pipeline_mode = #tpu.pipeline_mode<synchronous>, transform_indices = @transform_8, window_bounds = array<i64: 3, 384, 128>}, {pipeline_mode = #tpu.pipeline_mode<synchronous>, transform_indices = @transform_9, window_bounds = array<i64: 1, 128>}, {transform_indices = @transform_10, window_bounds = array<i64: 1, 8, 16, 128>}]} {
    %c8_i32 = arith.constant 8 : i32
    %0 = arith.muli %arg1, %c8_i32 : i32
    %c0 = arith.constant 0 : index
    %c0_0 = arith.constant 0 : index
    %c0_1 = arith.constant 0 : index
    %c0_2 = arith.constant 0 : index
    %c0_3 = arith.constant 0 : index
    %1 = vector.load %arg2[%c0, %c0_0, %c0_1, %c0_2, %c0_3] : memref<1x1x10x16x196xbf16, #tpu.memory_space<vmem>>, vector<1x1x10x16x196xbf16>
    %2 = vector.shape_cast %1 : vector<1x1x10x16x196xbf16> to vector<160x196xbf16>
    %c0_4 = arith.constant 0 : index
    %c0_5 = arith.constant 0 : index
    %3 = vector.load %arg4[%c0_4, %c0_5] : memref<196x128xbf16, #tpu.memory_space<vmem>>, vector<196x128xbf16>
    %cst = arith.constant dense<0.000000e+00> : vector<160x128xf32>
    %4 = tpu.matmul %2, %3, %cst {dimension_numbers = #tpu.dot_dimension_numbers<[1], [0], [0], [1], [0, 0, 1, 1], [], []>} : vector<160x196xbf16>, vector<196x128xbf16>, vector<160x128xf32> -> vector<160x128xf32>
    %c0_6 = arith.constant 0 : index
    %c0_7 = arith.constant 0 : index
    %5 = vector.load %arg5[%c0_6, %c0_7] : memref<1x128xf32, #tpu.memory_space<vmem>>, vector<1x128xf32>
    %6 = vector.broadcast %5 : vector<1x128xf32> to vector<160x128xf32>
    %7 = arith.addf %4, %6 : vector<160x128xf32>
    %cst_8 = arith.constant 0.000000e+00 : f32
    %8 = vector.broadcast %cst_8 : f32 to vector<160x128xf32>
    %9 = arith.maximumf %7, %8 : vector<160x128xf32>
    %c0_9 = arith.constant 0 : index
    %c0_10 = arith.constant 0 : index
    %c0_11 = arith.constant 0 : index
    %c0_12 = arith.constant 0 : index
    %c0_13 = arith.constant 0 : index
    %10 = vector.load %arg3[%c0_9, %c0_10, %c0_11, %c0_12, %c0_13] : memref<1x1x12x16x98xbf16, #tpu.memory_space<vmem>>, vector<1x1x12x16x98xbf16>
    %11 = vector.shape_cast %10 : vector<1x1x12x16x98xbf16> to vector<192x98xbf16>
    %c0_14 = arith.constant 0 : index
    %c0_15 = arith.constant 0 : index
    %12 = vector.load %arg6[%c0_14, %c0_15] : memref<98x64xbf16, #tpu.memory_space<vmem>>, vector<98x64xbf16>
    %cst_16 = arith.constant dense<0.000000e+00> : vector<192x64xf32>
    %13 = tpu.matmul %11, %12, %cst_16 {dimension_numbers = #tpu.dot_dimension_numbers<[1], [0], [0], [1], [0, 0, 1, 1], [], []>} : vector<192x98xbf16>, vector<98x64xbf16>, vector<192x64xf32> -> vector<192x64xf32>
    %c0_17 = arith.constant 0 : index
    %c0_18 = arith.constant 0 : index
    %14 = vector.load %arg7[%c0_17, %c0_18] : memref<1x64xf32, #tpu.memory_space<vmem>>, vector<1x64xf32>
    %15 = vector.broadcast %14 : vector<1x64xf32> to vector<192x64xf32>
    %16 = arith.addf %13, %15 : vector<192x64xf32>
    %cst_19 = arith.constant 0.000000e+00 : f32
    %17 = vector.broadcast %cst_19 : f32 to vector<192x64xf32>
    %18 = arith.maximumf %16, %17 : vector<192x64xf32>
    %19 = vector.shape_cast %18 : vector<192x64xf32> to vector<12x16x64xf32>
    %c2_i32 = arith.constant 2 : i32
    %20 = arith.subi %0, %c2_i32 : i32
    %21 = tpu.iota {dimensions = array<i32: 0>} : vector<12x1x1xi32>
    %22 = vector.broadcast %20 : i32 to vector<12x1x1xi32>
    %23 = arith.addi %21, %22 : vector<12x1x1xi32>
    %c0_i32 = arith.constant 0 : i32
    %24 = vector.broadcast %c0_i32 : i32 to vector<12x1x1xi32>
    %25 = arith.cmpi sge, %23, %24 : vector<12x1x1xi32>
    %c16_i32 = arith.constant 16 : i32
    %26 = vector.broadcast %c16_i32 : i32 to vector<12x1x1xi32>
    %27 = arith.cmpi slt, %23, %26 : vector<12x1x1xi32>
    %28 = arith.andi %25, %27 : vector<12x1x1xi1>
    %cst_20 = arith.constant 0.000000e+00 : f32
    %29 = vector.shape_cast %28 : vector<12x1x1xi1> to vector<12x1x1xi1>
    %30 = vector.broadcast %29 : vector<12x1x1xi1> to vector<12x16x64xi1>
    %31 = vector.broadcast %cst_20 : f32 to vector<12x16x64xf32>
    %32 = arith.select %30, %19, %31 : vector<12x16x64xi1>, vector<12x16x64xf32>
    %33 = arith.truncf %32 : vector<12x16x64xf32> to vector<12x16x64xbf16>
    %cst_21 = arith.constant 0.000000e+00 : bf16
    %34 = vector.broadcast %cst_21 : bf16 to vector<12x1x64xbf16>
    %c0_22 = arith.constant 0 : index
    %c0_23 = arith.constant 0 : index
    %c0_24 = arith.constant 0 : index
    %35 = vector.load %arg13[%c0_22, %c0_23, %c0_24] : memref<12x18x64xbf16, #tpu.memory_space<vmem>>, vector<12x1x64xbf16>
    tpu.vector_store %arg13[%c0_22, %c0_23, %c0_24], %34 {strides = array<i32>} : memref<12x18x64xbf16, #tpu.memory_space<vmem>>, vector<12x1x64xbf16>,
    %c0_25 = arith.constant 0 : index
    %c17 = arith.constant 17 : index
    %c0_26 = arith.constant 0 : index
    %36 = vector.load %arg13[%c0_25, %c17, %c0_26] : memref<12x18x64xbf16, #tpu.memory_space<vmem>>, vector<12x1x64xbf16>
    tpu.vector_store %arg13[%c0_25, %c17, %c0_26], %34 {strides = array<i32>} : memref<12x18x64xbf16, #tpu.memory_space<vmem>>, vector<12x1x64xbf16>,
    %c0_27 = arith.constant 0 : index
    %c1 = arith.constant 1 : index
    %c0_28 = arith.constant 0 : index
    %37 = vector.load %arg13[%c0_27, %c1, %c0_28] : memref<12x18x64xbf16, #tpu.memory_space<vmem>>, vector<12x16x64xbf16>
    tpu.vector_store %arg13[%c0_27, %c1, %c0_28], %33 {strides = array<i32>} : memref<12x18x64xbf16, #tpu.memory_space<vmem>>, vector<12x16x64xbf16>,
    %c0_29 = arith.constant 0 : index
    %c0_30 = arith.constant 0 : index
    %c0_31 = arith.constant 0 : index
    %38 = vector.load %arg13[%c0_29, %c0_30, %c0_31] : memref<12x18x64xbf16, #tpu.memory_space<vmem>>, vector<12x16x64xbf16>
    %c0_32 = arith.constant 0 : index
    %c1_33 = arith.constant 1 : index
    %c0_34 = arith.constant 0 : index
    %39 = vector.load %arg13[%c0_32, %c1_33, %c0_34] : memref<12x18x64xbf16, #tpu.memory_space<vmem>>, vector<12x16x64xbf16>
    %c0_35 = arith.constant 0 : index
    %c2 = arith.constant 2 : index
    %c0_36 = arith.constant 0 : index
    %40 = vector.load %arg13[%c0_35, %c2, %c0_36] : memref<12x18x64xbf16, #tpu.memory_space<vmem>>, vector<12x16x64xbf16>
    %41 = tpu.concatenate %38, %39, %40 in 2 : vector<12x16x64xbf16>, vector<12x16x64xbf16>, vector<12x16x64xbf16> -> vector<12x16x192xbf16>
    %42 = vector.extract_strided_slice %41 {offsets = [0, 0, 0], sizes = [10, 16, 192], strides = [1, 1, 1]} : vector<12x16x192xbf16> to vector<10x16x192xbf16>
    %43 = vector.shape_cast %42 : vector<10x16x192xbf16> to vector<160x192xbf16>
    %c0_37 = arith.constant 0 : index
    %c0_38 = arith.constant 0 : index
    %c0_39 = arith.constant 0 : index
    %44 = vector.load %arg8[%c0_37, %c0_38, %c0_39] : memref<3x192x128xbf16, #tpu.memory_space<vmem>>, vector<1x192x128xbf16>
    %45 = vector.shape_cast %44 : vector<1x192x128xbf16> to vector<192x128xbf16>
    %cst_40 = arith.constant dense<0.000000e+00> : vector<160x128xf32>
    %46 = tpu.matmul %43, %45, %cst_40 {dimension_numbers = #tpu.dot_dimension_numbers<[1], [0], [0], [1], [0, 0, 1, 1], [], []>} : vector<160x192xbf16>, vector<192x128xbf16>, vector<160x128xf32> -> vector<160x128xf32>
    %47 = vector.extract_strided_slice %41 {offsets = [1, 0, 0], sizes = [10, 16, 192], strides = [1, 1, 1]} : vector<12x16x192xbf16> to vector<10x16x192xbf16>
    %48 = vector.shape_cast %47 : vector<10x16x192xbf16> to vector<160x192xbf16>
    %c1_41 = arith.constant 1 : index
    %c0_42 = arith.constant 0 : index
    %c0_43 = arith.constant 0 : index
    %49 = vector.load %arg8[%c1_41, %c0_42, %c0_43] : memref<3x192x128xbf16, #tpu.memory_space<vmem>>, vector<1x192x128xbf16>
    %50 = vector.shape_cast %49 : vector<1x192x128xbf16> to vector<192x128xbf16>
    %cst_44 = arith.constant dense<0.000000e+00> : vector<160x128xf32>
    %51 = tpu.matmul %48, %50, %cst_44 {dimension_numbers = #tpu.dot_dimension_numbers<[1], [0], [0], [1], [0, 0, 1, 1], [], []>} : vector<160x192xbf16>, vector<192x128xbf16>, vector<160x128xf32> -> vector<160x128xf32>
    %52 = arith.addf %46, %51 : vector<160x128xf32>
    %53 = vector.extract_strided_slice %41 {offsets = [2, 0, 0], sizes = [10, 16, 192], strides = [1, 1, 1]} : vector<12x16x192xbf16> to vector<10x16x192xbf16>
    %54 = vector.shape_cast %53 : vector<10x16x192xbf16> to vector<160x192xbf16>
    %c2_45 = arith.constant 2 : index
    %c0_46 = arith.constant 0 : index
    %c0_47 = arith.constant 0 : index
    %55 = vector.load %arg8[%c2_45, %c0_46, %c0_47] : memref<3x192x128xbf16, #tpu.memory_space<vmem>>, vector<1x192x128xbf16>
    %56 = vector.shape_cast %55 : vector<1x192x128xbf16> to vector<192x128xbf16>
    %cst_48 = arith.constant dense<0.000000e+00> : vector<160x128xf32>
    %57 = tpu.matmul %54, %56, %cst_48 {dimension_numbers = #tpu.dot_dimension_numbers<[1], [0], [0], [1], [0, 0, 1, 1], [], []>} : vector<160x192xbf16>, vector<192x128xbf16>, vector<160x128xf32> -> vector<160x128xf32>
    %58 = arith.addf %52, %57 : vector<160x128xf32>
    %c0_49 = arith.constant 0 : index
    %c0_50 = arith.constant 0 : index
    %59 = vector.load %arg9[%c0_49, %c0_50] : memref<1x128xf32, #tpu.memory_space<vmem>>, vector<1x128xf32>
    %60 = vector.broadcast %59 : vector<1x128xf32> to vector<160x128xf32>
    %61 = arith.addf %58, %60 : vector<160x128xf32>
    %cst_51 = arith.constant 0.000000e+00 : f32
    %62 = vector.broadcast %cst_51 : f32 to vector<160x128xf32>
    %63 = arith.maximumf %61, %62 : vector<160x128xf32>
    %64 = arith.addf %9, %63 : vector<160x128xf32>
    %65 = vector.shape_cast %64 : vector<160x128xf32> to vector<10x16x128xf32>
    %c1_i32 = arith.constant 1 : i32
    %66 = arith.subi %0, %c1_i32 : i32
    %67 = tpu.iota {dimensions = array<i32: 0>} : vector<10x1x1xi32>
    %68 = vector.broadcast %66 : i32 to vector<10x1x1xi32>
    %69 = arith.addi %67, %68 : vector<10x1x1xi32>
    %c0_i32_52 = arith.constant 0 : i32
    %70 = vector.broadcast %c0_i32_52 : i32 to vector<10x1x1xi32>
    %71 = arith.cmpi sge, %69, %70 : vector<10x1x1xi32>
    %c16_i32_53 = arith.constant 16 : i32
    %72 = vector.broadcast %c16_i32_53 : i32 to vector<10x1x1xi32>
    %73 = arith.cmpi slt, %69, %72 : vector<10x1x1xi32>
    %74 = arith.andi %71, %73 : vector<10x1x1xi1>
    %cst_54 = arith.constant 0.000000e+00 : f32
    %75 = vector.shape_cast %74 : vector<10x1x1xi1> to vector<10x1x1xi1>
    %76 = vector.broadcast %75 : vector<10x1x1xi1> to vector<10x16x128xi1>
    %77 = vector.broadcast %cst_54 : f32 to vector<10x16x128xf32>
    %78 = arith.select %76, %65, %77 : vector<10x16x128xi1>, vector<10x16x128xf32>
    %79 = arith.truncf %78 : vector<10x16x128xf32> to vector<10x16x128xbf16>
    %cst_55 = arith.constant 0.000000e+00 : bf16
    %80 = vector.broadcast %cst_55 : bf16 to vector<10x1x128xbf16>
    %c0_56 = arith.constant 0 : index
    %c0_57 = arith.constant 0 : index
    %c0_58 = arith.constant 0 : index
    %81 = vector.load %arg14[%c0_56, %c0_57, %c0_58] : memref<10x18x128xbf16, #tpu.memory_space<vmem>>, vector<10x1x128xbf16>
    tpu.vector_store %arg14[%c0_56, %c0_57, %c0_58], %80 {strides = array<i32>} : memref<10x18x128xbf16, #tpu.memory_space<vmem>>, vector<10x1x128xbf16>,
    %c0_59 = arith.constant 0 : index
    %c17_60 = arith.constant 17 : index
    %c0_61 = arith.constant 0 : index
    %82 = vector.load %arg14[%c0_59, %c17_60, %c0_61] : memref<10x18x128xbf16, #tpu.memory_space<vmem>>, vector<10x1x128xbf16>
    tpu.vector_store %arg14[%c0_59, %c17_60, %c0_61], %80 {strides = array<i32>} : memref<10x18x128xbf16, #tpu.memory_space<vmem>>, vector<10x1x128xbf16>,
    %c0_62 = arith.constant 0 : index
    %c1_63 = arith.constant 1 : index
    %c0_64 = arith.constant 0 : index
    %83 = vector.load %arg14[%c0_62, %c1_63, %c0_64] : memref<10x18x128xbf16, #tpu.memory_space<vmem>>, vector<10x16x128xbf16>
    tpu.vector_store %arg14[%c0_62, %c1_63, %c0_64], %79 {strides = array<i32>} : memref<10x18x128xbf16, #tpu.memory_space<vmem>>, vector<10x16x128xbf16>,
    %c0_65 = arith.constant 0 : index
    %c0_66 = arith.constant 0 : index
    %c0_67 = arith.constant 0 : index
    %84 = vector.load %arg14[%c0_65, %c0_66, %c0_67] : memref<10x18x128xbf16, #tpu.memory_space<vmem>>, vector<10x16x128xbf16>
    %c0_68 = arith.constant 0 : index
    %c1_69 = arith.constant 1 : index
    %c0_70 = arith.constant 0 : index
    %85 = vector.load %arg14[%c0_68, %c1_69, %c0_70] : memref<10x18x128xbf16, #tpu.memory_space<vmem>>, vector<10x16x128xbf16>
    %c0_71 = arith.constant 0 : index
    %c2_72 = arith.constant 2 : index
    %c0_73 = arith.constant 0 : index
    %86 = vector.load %arg14[%c0_71, %c2_72, %c0_73] : memref<10x18x128xbf16, #tpu.memory_space<vmem>>, vector<10x16x128xbf16>
    %87 = tpu.concatenate %84, %85, %86 in 2 : vector<10x16x128xbf16>, vector<10x16x128xbf16>, vector<10x16x128xbf16> -> vector<10x16x384xbf16>
    %88 = vector.extract_strided_slice %87 {offsets = [0, 0, 0], sizes = [8, 16, 384], strides = [1, 1, 1]} : vector<10x16x384xbf16> to vector<8x16x384xbf16>
    %89 = vector.shape_cast %88 : vector<8x16x384xbf16> to vector<128x384xbf16>
    %c0_74 = arith.constant 0 : index
    %c0_75 = arith.constant 0 : index
    %c0_76 = arith.constant 0 : index
    %90 = vector.load %arg10[%c0_74, %c0_75, %c0_76] : memref<3x384x128xbf16, #tpu.memory_space<vmem>>, vector<1x384x128xbf16>
    %91 = vector.shape_cast %90 : vector<1x384x128xbf16> to vector<384x128xbf16>
    %cst_77 = arith.constant dense<0.000000e+00> : vector<128x128xf32>
    %92 = tpu.matmul %89, %91, %cst_77 {dimension_numbers = #tpu.dot_dimension_numbers<[1], [0], [0], [1], [0, 0, 1, 1], [], []>} : vector<128x384xbf16>, vector<384x128xbf16>, vector<128x128xf32> -> vector<128x128xf32>
    %93 = vector.extract_strided_slice %87 {offsets = [1, 0, 0], sizes = [8, 16, 384], strides = [1, 1, 1]} : vector<10x16x384xbf16> to vector<8x16x384xbf16>
    %94 = vector.shape_cast %93 : vector<8x16x384xbf16> to vector<128x384xbf16>
    %c1_78 = arith.constant 1 : index
    %c0_79 = arith.constant 0 : index
    %c0_80 = arith.constant 0 : index
    %95 = vector.load %arg10[%c1_78, %c0_79, %c0_80] : memref<3x384x128xbf16, #tpu.memory_space<vmem>>, vector<1x384x128xbf16>
    %96 = vector.shape_cast %95 : vector<1x384x128xbf16> to vector<384x128xbf16>
    %cst_81 = arith.constant dense<0.000000e+00> : vector<128x128xf32>
    %97 = tpu.matmul %94, %96, %cst_81 {dimension_numbers = #tpu.dot_dimension_numbers<[1], [0], [0], [1], [0, 0, 1, 1], [], []>} : vector<128x384xbf16>, vector<384x128xbf16>, vector<128x128xf32> -> vector<128x128xf32>
    %98 = arith.addf %92, %97 : vector<128x128xf32>
    %99 = vector.extract_strided_slice %87 {offsets = [2, 0, 0], sizes = [8, 16, 384], strides = [1, 1, 1]} : vector<10x16x384xbf16> to vector<8x16x384xbf16>
    %100 = vector.shape_cast %99 : vector<8x16x384xbf16> to vector<128x384xbf16>
    %c2_82 = arith.constant 2 : index
    %c0_83 = arith.constant 0 : index
    %c0_84 = arith.constant 0 : index
    %101 = vector.load %arg10[%c2_82, %c0_83, %c0_84] : memref<3x384x128xbf16, #tpu.memory_space<vmem>>, vector<1x384x128xbf16>
    %102 = vector.shape_cast %101 : vector<1x384x128xbf16> to vector<384x128xbf16>
    %cst_85 = arith.constant dense<0.000000e+00> : vector<128x128xf32>
    %103 = tpu.matmul %100, %102, %cst_85 {dimension_numbers = #tpu.dot_dimension_numbers<[1], [0], [0], [1], [0, 0, 1, 1], [], []>} : vector<128x384xbf16>, vector<384x128xbf16>, vector<128x128xf32> -> vector<128x128xf32>
    %104 = arith.addf %98, %103 : vector<128x128xf32>
    %c0_86 = arith.constant 0 : index
    %c0_87 = arith.constant 0 : index
    %105 = vector.load %arg11[%c0_86, %c0_87] : memref<1x128xf32, #tpu.memory_space<vmem>>, vector<1x128xf32>
    %106 = vector.broadcast %105 : vector<1x128xf32> to vector<128x128xf32>
    %107 = arith.addf %104, %106 : vector<128x128xf32>
    %cst_88 = arith.constant 0.000000e+00 : f32
    %108 = vector.broadcast %cst_88 : f32 to vector<128x128xf32>
    %109 = arith.maximumf %107, %108 : vector<128x128xf32>
    %110 = vector.shape_cast %109 : vector<128x128xf32> to vector<1x8x16x128xf32>
    %c0_89 = arith.constant 0 : index
    %c0_90 = arith.constant 0 : index
    %c0_91 = arith.constant 0 : index
    %c0_92 = arith.constant 0 : index
    %111 = vector.load %arg12[%c0_89, %c0_90, %c0_91, %c0_92] : memref<1x8x16x128xf32, #tpu.memory_space<vmem>>, vector<1x8x16x128xf32>
    tpu.vector_store %arg12[%c0_89, %c0_90, %c0_91, %c0_92], %110 {strides = array<i32>} : memref<1x8x16x128xf32, #tpu.memory_space<vmem>>, vector<1x8x16x128xf32>,
    return
  }
  func.func @transform_0(%arg0: i32, %arg1: i32) -> (i32, i32, i32, i32, i32) {
    %c0_i32 = arith.constant 0 : i32
    %c0_i32_0 = arith.constant 0 : i32
    %c0_i32_1 = arith.constant 0 : i32
    %c0_i32_2 = arith.constant 0 : i32
    return %arg0, %arg1, %c0_i32, %c0_i32_0, %c0_i32_1 : i32, i32, i32, i32, i32
  }
  func.func @transform_1(%arg0: i32, %arg1: i32) -> (i32, i32, i32, i32, i32) {
    %c0_i32 = arith.constant 0 : i32
    %c0_i32_0 = arith.constant 0 : i32
    %c0_i32_1 = arith.constant 0 : i32
    %c0_i32_2 = arith.constant 0 : i32
    return %arg0, %arg1, %c0_i32, %c0_i32_0, %c0_i32_1 : i32, i32, i32, i32, i32
  }
  func.func @transform_2(%arg0: i32, %arg1: i32) -> (i32, i32) {
    %c0_i32 = arith.constant 0 : i32
    %c0_i32_0 = arith.constant 0 : i32
    %c0_i32_1 = arith.constant 0 : i32
    return %c0_i32, %c0_i32_0 : i32, i32
  }
  func.func @transform_3(%arg0: i32, %arg1: i32) -> (i32, i32) {
    %c0_i32 = arith.constant 0 : i32
    %c0_i32_0 = arith.constant 0 : i32
    %c0_i32_1 = arith.constant 0 : i32
    return %c0_i32, %c0_i32_0 : i32, i32
  }
  func.func @transform_4(%arg0: i32, %arg1: i32) -> (i32, i32) {
    %c0_i32 = arith.constant 0 : i32
    %c0_i32_0 = arith.constant 0 : i32
    %c0_i32_1 = arith.constant 0 : i32
    return %c0_i32, %c0_i32_0 : i32, i32
  }
  func.func @transform_5(%arg0: i32, %arg1: i32) -> (i32, i32) {
    %c0_i32 = arith.constant 0 : i32
    %c0_i32_0 = arith.constant 0 : i32
    %c0_i32_1 = arith.constant 0 : i32
    return %c0_i32, %c0_i32_0 : i32, i32
  }
  func.func @transform_6(%arg0: i32, %arg1: i32) -> (i32, i32, i32) {
    %c0_i32 = arith.constant 0 : i32
    %c0_i32_0 = arith.constant 0 : i32
    %c0_i32_1 = arith.constant 0 : i32
    %c0_i32_2 = arith.constant 0 : i32
    return %c0_i32, %c0_i32_0, %c0_i32_1 : i32, i32, i32
  }
  func.func @transform_7(%arg0: i32, %arg1: i32) -> (i32, i32) {
    %c0_i32 = arith.constant 0 : i32
    %c0_i32_0 = arith.constant 0 : i32
    %c0_i32_1 = arith.constant 0 : i32
    return %c0_i32, %c0_i32_0 : i32, i32
  }
  func.func @transform_8(%arg0: i32, %arg1: i32) -> (i32, i32, i32) {
    %c0_i32 = arith.constant 0 : i32
    %c0_i32_0 = arith.constant 0 : i32
    %c0_i32_1 = arith.constant 0 : i32
    %c0_i32_2 = arith.constant 0 : i32
    return %c0_i32, %c0_i32_0, %c0_i32_1 : i32, i32, i32
  }
  func.func @transform_9(%arg0: i32, %arg1: i32) -> (i32, i32) {
    %c0_i32 = arith.constant 0 : i32
    %c0_i32_0 = arith.constant 0 : i32
    %c0_i32_1 = arith.constant 0 : i32
    return %c0_i32, %c0_i32_0 : i32, i32
  }
  func.func @transform_10(%arg0: i32, %arg1: i32) -> (i32, i32, i32, i32) {
    %c0_i32 = arith.constant 0 : i32
    %c0_i32_0 = arith.constant 0 : i32
    %c0_i32_1 = arith.constant 0 : i32
    return %arg0, %arg1, %c0_i32, %c0_i32_0 : i32, i32, i32, i32
  }
}

</mosaic_0001>

<bundles_post_ra>
// kernel: small_motion_encoder_pallas.1
= control target key start
LH: loop header
LB: loop body
LE: loop exit
PB: predicated region body
PF: predicated region fallthrough
CT: control target
= control target key end

     0   :  { %s6447_s13 = smov 0   ;;  %s6449_s14 = smov 0   ;;  %s8732_s0 = inlined_call_operand.vmem [shape: bf16[2,2,10,16,196], index: 0, kind: input, shape index: {}]   ;;  %s8733_s1 = inlined_call_operand.vmem [shape: bf16[2,2,12,16,98], index: 1, kind: input, shape index: {}]   ;;  %s8734_s2 = inlined_call_operand.vmem [shape: bf16[196,128], index: 2, kind: input, shape index: {}]   ;;  %s8735_s3 = inlined_call_operand.vmem [shape: f32[1,128], index: 3, kind: input, shape index: {}]   ;;  %s8736_s4 = inlined_call_operand.vmem [shape: bf16[98,64], index: 4, kind: input, shape index: {}]   ;;  %s8737_s5 = inlined_call_operand.vmem [shape: f32[1,64], index: 5, kind: input, shape index: {}]   ;;  %s8738_s6 = inlined_call_operand.vmem [shape: bf16[3,192,128], index: 6, kind: input, shape index: {}]   ;;  %s8739_s7 = inlined_call_operand.vmem [shape: f32[1,128], index: 7, kind: input, shape index: {}]   ;;  %s8740_s8 = inlined_call_operand.vmem [shape: bf16[3,384,128], index: 8, kind: input, shape index: {}]   ;;  %s8741_s9 = inlined_call_operand.vmem [shape: f32[1,128], index: 9, kind: input, shape index: {}]   ;;  %s8742_s10 = inlined_call_operand.vmem [shape: f32[2,16,16,128], index: 10, kind: output, shape index: {}]  }
   0x1   :  { %s6451_s15 = smov 0   ;;  %s6453_s16 = smov 0  }
   0x2   :  { %s6455_s17 = smov 0  }
   0x3 LB: > { %s29_s18 = sadd.s32 1, %s6380_s15  ;;  %s32_s19 = sadd.s32 1, %s6384_s16  ;;  %s6388_s17 = sphi %s6455_s17, %s20_s17   ;;  %s6384_s16 = sphi %s6453_s16, %s8854_s16   ;;  %s6380_s15 = sphi %s6451_s15, %s8853_s15   ;;  %s6376_s14 = sphi %s6449_s14, %s8852_s14   ;;  %s6372_s13 = sphi %s6447_s13, %s8851_s13  }
   0x4   : > { %p30_p0 = scmp.ge.s32.totalorder %s29_s18, 2  ;;  %p5068_p1 = scmp.ge.s32.totalorder %s6388_s17, 1 }
   0x5   : > { %p348_p2 = scmp.lt.s32.totalorder %s6388_s17, 5 }
   0x6   : > { %s8856_s18 = smov (%p30_p0, %s29_s18), 0  ;;  %s8858_s19 = smov (!%p30_p0, %s32_s19), %s6384_s16 }
   0x7   : > { %p349_p3 = pnand %p5068_p1, %p348_p2  ;;  %p34_p4 = scmp.ge.s32.totalorder %s8858_s19, 2 }
   0x9   : > { %s8860_s19 = smov (%p34_p4, %s8858_s19), 0  ;;  %352 = sbr.rel (%p349_p3) target bundleno = 1176 (0x498), region = 60 }
  0x10   : > { %v6114_v0 = vld [vmem:[%s8736_s4] sm:$0xff]   ;;  %v6115_v1 = vld [vmem:[%s8736_s4 + $0x8] sm:$0xff]   ;;  %v6116_v2 = vld [vmem:[%s8736_s4 + $0x10] sm:$0xff]   ;;  %p404_p5 = scmp.lt.s32.totalorder %s6376_s14, 1  ;;  %p406_p6 = scmp.lt.s32.totalorder %s6372_s13, 1  ;;  %v6390_v4 = vmov 0  }
  0x11   : > { %5853 = vmatprep.subr.bf16.mxu1 %v6114_v0  ;;  %v6117_v3 = vld [vmem:[%s8736_s4 + $0x18] sm:$0xff]   ;;  %687 = vmatprep.subr.bf16.mxu0 %v6390_v4  ;;  %v6133_v5 = vld [vmem:[%s8734_s2] sm:$0xff]   ;;  %vm1000_vm0 = vcmask 1040384   ;;  %vm1267_vm1 = vsmask.f32 256  ;;  %v6134_v6 = vld [vmem:[%s8734_s2 + $0x8] sm:$0xff]  }
  0x12   : > { %5854 = vmatpush3.bf16.msra.mxu1 %v6114_v0  ;;  %s8862_s14 = smov (!%p404_p5, %s6376_s14), 1  ;;  %688 = vmatpush1.bf16.msra.mxu0 %v6133_v5  ;;  %v6118_v7 = vld [vmem:[%s8736_s4 + $0x20] sm:$0xff]   ;;  %vm8743_vm2 = vsmask.f32 7938  ;;  %vm6511_vm3 = vmand %vm1000_vm0, %vm1267_vm1  ;;  %vm963_vm5 = vcmask 801792   ;;  %v6135_v10 = vld [vmem:[%s8734_s2 + $0x10] sm:$0xff]  }
  0x13   : > { %5855 = vmatprep.subr.bf16.mxu1 %v6115_v1  ;;  %s6495_s28 = scalar_select %p406_p6, %s6372_s13, 1  ;;  %689 = vmatprep.subr.bf16.mxu0 %v6390_v4  ;;  %vm6518_vm4 = vmand %vm1000_vm0, %vm8743_vm2  ;;  %v6119_v12 = vld [vmem:[%s8736_s4 + $0x28] sm:$0xff]   ;;  %v6120_v13 = vld [vmem:[%s8736_s4 + $0x30] ss:$0 sps:$4 sm:$0x11]   ;;  %vm652_vm6 = vcmask 556032  }
  0x14   : > { %s6071_s29 = smul.u32 48, %s8862_s14  ;;  %v6136_v14 = vld [vmem:[%s8734_s2 + $0x18] sm:$0xff]   ;;  %v1002_v15 = vsel %vm1000_vm0, %v6120_v13, 0  ;;  %v6137_v18 = vld [vmem:[%s8734_s2 + $0x20] sm:$0xff]   ;;  %v6138_v19 = vld [vmem:[%s8734_s2 + $0x28] sm:$0xff]   ;;  %vm683_vm7 = vcmask 1041408  }
  0x15   : > { %s6070_s12 = smul.u32 24, %s6495_s28  ;;  %v6139_v20 = vld [vmem:[%s8734_s2 + $0x30] sm:$0xff]   ;;  %v6140_v24 = vld [vmem:[%s8734_s2 + $0x38] sm:$0xff]   ;;  %v6141_v26 = vld [vmem:[%s8734_s2 + $0x40] sm:$0xff]   ;;  %vm1266_vm8 = vcmask 516096   ;;  %vm1645_vm15 = vcmask 519168  }
  0x16   : > { %5856 = vmatpush3.bf16.msra.mxu1 %v6115_v1  ;;  %690 = vmatpush1.bf16.msra.mxu0 %v6134_v6  ;;  %s6069_s26 = smul.u32 80, %s8862_s14  ;;  %v6145_v27 = vld [vmem:[%s8734_s2 + $0x60] ss:$0 sps:$4 sm:$0x33]   ;;  %v6142_v29 = vld [vmem:[%s8734_s2 + $0x48] sm:$0xff]   ;;  %v6143_v31 = vld [vmem:[%s8734_s2 + $0x50] sm:$0xff]  }
  0x17   : > { %5857 = vmatprep.subr.bf16.mxu1 %v6116_v2  ;;  %s419_s24 = sadd.s32 %s6071_s29, %s6070_s12  ;;  %691 = vmatprep.subr.bf16.mxu0 %v6390_v4  ;;  %v685_v30 = vsel %vm683_vm7, %v6145_v27, 0  ;;  %v6144_v34 = vld [vmem:[%s8734_s2 + $0x58] sm:$0xff]   ;;  %vm6631_vm9 = vmand %vm1266_vm8, %vm1267_vm1  ;;  %v1272_v52 = vld [vmem:[#allocation2 + $0xc] sm:$0x1] }
  0x18   : > { %s5070_s25 = sshll.u32 %s419_s24, 2  ;;  %vm6637_vm10 = vmand %vm1266_vm8, %vm8743_vm2  ;;  %v1273_v54 = vsel %vm6631_vm9, 0, %v1272_v52  ;;  %v1269_v55 = vld [vmem:[#allocation2] sm:$0x1]  ;;  %v1310_v57 = vld [vmem:[#allocation2 + $0x14] sm:$0x1] }
  0x19   : > { %s6525_s30 = scalar_lea.vmem %s8733_s1, %s5070_s25  ;;  %s6068_s25 = smul.u32 40, %s6495_s28  ;;  %1274 = vst [vmem:[#allocation2 + $0xc] sm:$0x1] %v1273_v54  ;;  %v1270_v56 = vsel %vm6631_vm9, 0, %v1269_v55  ;;  %v1311_v58 = vsel %vm6637_vm10, 0, %v1310_v57  ;;  %v6204_v51 = vld [vmem:[%s8738_s6 + $0x70] sm:$0xff]  }
  0x1a   : > { %5858 = vmatpush3.bf16.msra.mxu1 %v6116_v2  ;;  %v6121_v11 = vld [vmem:[%s6525_s30] sm:$0xff]   ;;  %692 = vmatpush1.bf16.msra.mxu0 %v6135_v10  ;;  %v6122_v16 = vld [vmem:[%s6525_s30 + $0x8] sm:$0xff]   ;;  %v6123_v17 = vld [vmem:[%s6525_s30 + $0x10] sm:$0xff]   ;;  %1271 = vst [vmem:[#allocation2] sm:$0x1] %v1270_v56  ;;  %s6391_s24 = smov 64  }
  0x1b   : > { %5859 = vmatprep.subr.bf16.mxu1 %v6117_v3  ;;  %5867 = vmatprep.mubr.msk.bf16.mxu1 %vm963_vm5, %v6121_v11  ;;  %s410_s20 = sadd.s32 %s6069_s26, %s6068_s25  ;;  %v6124_v21 = vld [vmem:[%s6525_s30 + $0x18] sm:$0xff]   ;;  %v6125_v22 = vld [vmem:[%s6525_s30 + $0x20] sm:$0xff]   ;;  %v6126_v25 = vld [vmem:[%s6525_s30 + $0x28] sm:$0xff]   ;;  %1312 = vst [vmem:[#allocation2 + $0x14] sm:$0x1] %v1311_v58 }
  0x1c   : > { %693 = vmatprep.subr.bf16.mxu0 %v6390_v4  ;;  %s5069_s12 = sshll.u32 %s410_s20, 2  ;;  %v6127_v28 = vld [vmem:[%s6525_s30 + $0x30] sm:$0xff]   ;;  %v6128_v32 = vld [vmem:[%s6525_s30 + $0x38] sm:$0xff]   ;;  %v6129_v33 = vld [vmem:[%s6525_s30 + $0x40] sm:$0xff]  }
  0x1d   : > { %s6566_s25 = scalar_lea.vmem %s8732_s0, %s5069_s12  ;;  %v6130_v35 = vld [vmem:[%s6525_s30 + $0x48] sm:$0xff]   ;;  %v6131_v36 = vld [vmem:[%s6525_s30 + $0x50] sm:$0xff]   ;;  %v6132_v39 = vld [vmem:[%s6525_s30 + $0x58] sm:$0xff]   ;;  %s5073_s12 = sshll.u32 %s8862_s14, 5 }
  0x1e   : > { %5860 = vmatpush3.bf16.msra.mxu1 %v6117_v3  ;;  %694 = vmatpush1.bf16.msra.mxu0 %v6136_v14  ;;  %v6148_v23 = vld [vmem:[%s6566_s25 + $0x4] ss:$8 sps:$4 sm:$0xff]   ;;  %v6146_v37 = vld [vmem:[%s6566_s25] ss:$8 sps:$4 sm:$0xff]   ;;  %v6149_v38 = vld [vmem:[%s6566_s25 + $0x14] ss:$8 sps:$4 sm:$0xff]  }
  0x1f   : > { %5861 = vmatprep.subr.bf16.mxu1 %v6118_v7  ;;  %695 = vmatprep.subr.bf16.mxu0 %v6390_v4  ;;  %v6151_v40 = vld [vmem:[%s6566_s25 + $0x10] ss:$8 sps:$4 sm:$0xff]   ;;  %v6152_v41 = vld [vmem:[%s6566_s25 + $0x24] ss:$8 sps:$4 sm:$0xff]   ;;  %v6154_v42 = vld [vmem:[%s6566_s25 + $0x20] ss:$8 sps:$4 sm:$0xff]  }
  0x20   : > { %5110 = vmatprep.mubr.msk.bf16.mxu0 %vm652_vm6, %v6148_v23  ;;  %v6155_v43 = vld [vmem:[%s6566_s25 + $0x34] ss:$8 sps:$4 sm:$0xff]   ;;  %v6157_v44 = vld [vmem:[%s6566_s25 + $0x30] ss:$8 sps:$4 sm:$0xff]   ;;  %v6158_v45 = vld [vmem:[%s6566_s25 + $0x44] ss:$8 sps:$4 sm:$0xff]  }
  0x21   : > { %v6160_v46 = vld [vmem:[%s6566_s25 + $0x40] ss:$8 sps:$4 sm:$0xff]   ;;  %v6161_v47 = vld [vmem:[%s6566_s25 + $0x54] ss:$8 sps:$4 sm:$0xff]   ;;  %v6163_v48 = vld [vmem:[%s6566_s25 + $0x50] ss:$8 sps:$4 sm:$0xff]  }
  0x22   : > { %5862 = vmatpush3.bf16.msra.mxu1 %v6118_v7  ;;  %696 = vmatpush1.bf16.msra.mxu0 %v6137_v18  ;;  %v6164_v50 = vld [vmem:[%s6566_s25 + $0x64] ss:$8 sps:$4 sm:$0xff]   ;;  %v6166_v53 = vld [vmem:[%s6566_s25 + $0x60] ss:$8 sps:$4 sm:$0xff]   ;;  %v1275_v63 = vld [vmem:[#allocation2 + $0x18] sm:$0x1] }
  0x23   : > { %5863 = vmatprep.subr.bf16.mxu1 %v6119_v12  ;;  %697 = vmatprep.subr.bf16.mxu0 %v6390_v4  ;;  %v1307_v59 = vld [vmem:[#allocation2 + $0x8] sm:$0x1]  ;;  %v1278_v61 = vld [vmem:[#allocation2 + $0x24] sm:$0x1]  ;;  %v1276_v0 = vsel %vm6631_vm9, 0, %v1275_v63  ;;  %v6216_v52 = vld [vmem:[%s8738_s6 + $0x10] sm:$0xff]  }
  0x24   : > { %v1308_v60 = vsel %vm6637_vm10, 0, %v1307_v59  ;;  %v1279_v62 = vsel %vm6631_vm9, 0, %v1278_v61  ;;  %1277 = vst [vmem:[#allocation2 + $0x18] sm:$0x1] %v1276_v0  ;;  %v6167_v1 = vld [vmem:[%s6566_s25 + $0x74] ss:$8 sps:$4 sm:$0xff]  }
  0x25   : > { %1309 = vst [vmem:[#allocation2 + $0x8] sm:$0x1] %v1308_v60  ;;  %1280 = vst [vmem:[#allocation2 + $0x24] sm:$0x1] %v1279_v62  ;;  %v6169_v2 = vld [vmem:[%s6566_s25 + $0x70] ss:$8 sps:$4 sm:$0xff]  }
  0x26   : > { %5864 = vmatpush3.bf16.msra.mxu1 %v6119_v12  ;;  %698 = vmatpush1.bf16.msra.mxu0 %v6138_v19  ;;  %v1316_v3 = vld [vmem:[#allocation2 + $0x2c] sm:$0x1]  ;;  %v1313_v6 = vld [vmem:[#allocation2 + $0x20] sm:$0x1]  ;;  %v1284_v10 = vld [vmem:[#allocation2 + $0x3c] sm:$0x1] }
  0x27   : > { %6067 = vmatprep.subr.msk.bf16.mxu1 %vm1000_vm0, %v6120_v13  ;;  %699 = vmatprep.subr.bf16.mxu0 %v6390_v4  ;;  %v1317_v5 = vsel %vm6637_vm10, 0, %v1316_v3  ;;  %v1314_v7 = vsel %vm6637_vm10, 0, %v1313_v6  ;;  %v1285_v11 = vsel %vm6631_vm9, 0, %v1284_v10  ;;  %v1281_v12 = vld [vmem:[#allocation2 + $0x30] sm:$0x1]  ;;  %v6206_v54 = vld [vmem:[%s8738_s6 + $0x80] sm:$0xff]  }
  0x28   : > { %1318 = vst [vmem:[#allocation2 + $0x2c] sm:$0x1] %v1317_v5  ;;  %1315 = vst [vmem:[#allocation2 + $0x20] sm:$0x1] %v1314_v7  ;;  %v1282_v13 = vsel %vm6631_vm9, 0, %v1281_v12  ;;  %v6207_v56 = vld [vmem:[%s8738_s6 + $0x88] sm:$0xff]  }
  0x29   : > { %1286 = vst [vmem:[#allocation2 + $0x3c] sm:$0x1] %v1285_v11  ;;  %v6170_v14 = vld [vmem:[%s6566_s25 + $0x84] ss:$8 sps:$4 sm:$0xff]   ;;  %1283 = vst [vmem:[#allocation2 + $0x30] sm:$0x1] %v1282_v13 }
  0x2a   : > { %5866 = vmatpush3.bf16.msra.mxu1 %v1002_v15  ;;  %700 = vmatpush1.bf16.msra.mxu0 %v6139_v20  ;;  %v1322_v15 = vld [vmem:[#allocation2 + $0x44] sm:$0x1]  ;;  %v1319_v18 = vld [vmem:[#allocation2 + $0x38] sm:$0x1]  ;;  %v6173_v20 = vld [vmem:[%s6566_s25 + $0x94] ss:$8 sps:$4 sm:$0xff]  }
  0x2b   : > { %2306 = vmatprep.subr.bf16.mxu1 %v6390_v4  ;;  %701 = vmatprep.subr.bf16.mxu0 %v6390_v4  ;;  %v1320_v19 = vsel %vm6637_vm10, 0, %v1319_v18  ;;  %v6208_v58 = vld [vmem:[%s8738_s6 + $0x90] sm:$0xff]   ;;  %v6746_v59 = vld [vmem:[%s8737_s5] ss:$0 sm:$0xff]  ;;  %v6209_v63 = vld [vmem:[%s8738_s6 + $0x98] sm:$0xff]  }
  0x2c   : > { %1321 = vst [vmem:[#allocation2 + $0x38] sm:$0x1] %v1320_v19  ;;  %vm1403_vm0 = vsmask.f32 4368 }
  0x2d   : > { %5868 = vmatmul.mubr.msk.bf16.vlgmr.msra.gmra.mrb[0].mxu1 %vm963_vm5, %v6122_v16  ;;  %v6172_v16 = vld [vmem:[%s6566_s25 + $0x80] ss:$8 sps:$4 sm:$0xff]  }
  0x2e   : > { %5871 = vmatprep.mubr.msk.bf16.mxu1 %vm963_vm5, %v6123_v17  ;;  %702 = vmatpush1.bf16.msra.mxu0 %v6140_v24  ;;  %v1323_v17 = vsel %vm6637_vm10, 0, %v1322_v15  ;;  %v1287_v24 = vld [vmem:[#allocation2 + $0x48] sm:$0x1] }
  0x2f   : > { %703 = vmatprep.subr.bf16.mxu0 %v6390_v4  ;;  %1324 = vst [vmem:[#allocation2 + $0x44] sm:$0x1] %v1323_v17  ;;  %v6210_v17 = vld [vmem:[%s8738_s6 + $0xa0] sm:$0xff]  }
  0x32   : > { %704 = vmatpush1.bf16.msra.mxu0 %v6141_v26  ;;  %v1328_v26 = vld [vmem:[#allocation2 + $0x5c] sm:$0x1] }
  0x33   : > { %705 = vmatprep.subr.bf16.mxu0 %v6390_v4  ;;  %v1329_v27 = vsel %vm6637_vm10, 0, %v1328_v26 }
  0x34   : > { %1330 = vst [vmem:[#allocation2 + $0x5c] sm:$0x1] %v1329_v27 }
  0x35   : > { %5872 = vmatmul.mubr.msk.bf16.gmra.mrb[4].mxu1 %vm963_vm5, %v6124_v21  ;;  %v6175_v21 = vld [vmem:[%s6566_s25 + $0x90] ss:$8 sps:$4 sm:$0xff]   ;;  %s6727_s25 = sshll.u32 %s6372_s13, 3 }
  0x36   : > { %5875 = vmatprep.mubr.msk.bf16.mxu1 %vm963_vm5, %v6125_v22  ;;  %706 = vmatpush1.bf16.msra.mxu0 %v6142_v29  ;;  %v1290_v22 = vld [vmem:[#allocation2 + $0x54] sm:$0x1]  ;;  %s5152_s20 = sadd.s32 4294967294, %s6727_s25  ;;  %p425_p7 = scmp.lt.s32.totalorder %s6727_s25, 15 }
  0x37   : > { %707 = vmatprep.subr.bf16.mxu0 %v6390_v4  ;;  %v1291_v23 = vsel %vm6631_vm9, 0, %v1290_v22  ;;  %v1158_v55 = vstv %s5152_s20  ;;  %s5328_s20 = sadd.s32 4294967295, %s6727_s25 }
  0x38   : > { %1292 = vst [vmem:[#allocation2 + $0x54] sm:$0x1] %v1291_v23  ;;  %v1159_v57 = vadd.s32 1, %v1158_v55  ;;  %v6748_v60 = vadd.s32 3, %v1158_v55  ;;  %v6750_v61 = vadd.s32 2, %v1158_v55  ;;  %vm1170_vm13 = vcmp.ge.s32.totalorder %v1158_v55, 0 }
  0x39   : > { %vm1182_vm14 = vcmp.lt.s32.totalorder %v1158_v55, 16  ;;  %v6773_v12 = vadd.s32 5, %v1158_v55  ;;  %v6776_v15 = vadd.s32 4, %v1158_v55  ;;  %s8864_s25 = smov (!%p425_p7, %s6727_s25), 15 }
  0x3a   : > { %708 = vmatpush1.bf16.msra.mxu0 %v6143_v31  ;;  %vm1171_vm11 = vcmp.ge.s32.totalorder %v1159_v57, 0  ;;  %vm1183_vm12 = vcmp.lt.s32.totalorder %v1159_v57, 16  ;;  %vm1185_vm7 = vcmp.lt.s32.totalorder %v6748_v60, 16  ;;  %vm1172_vm8 = vcmp.ge.s32.totalorder %v6750_v61, 0  ;;  %v1647_v57 = vld [vmem:[#allocation2] sm:$0xf] }
  0x3b   : > { %709 = vmatprep.subr.bf16.mxu0 %v6390_v4  ;;  %s5072_s13 = sshll.u32 %s8864_s25, 1 }
  0x3c   : > { %s429_s21 = sadd.s32 %s5073_s12, %s5072_s13 }
  0x3d   : > { %5876 = vmatmul.mubr.msk.bf16.gmra.mrb[8].mxu1 %vm963_vm5, %v6126_v25  ;;  %v1288_v25 = vsel %vm6631_vm9, 0, %v1287_v24  ;;  %s5074_s25 = sshll.u32 %s429_s21, 3 }
  0x3e   : > { %5879 = vmatprep.mubr.msk.bf16.mxu1 %vm963_vm5, %v6127_v28  ;;  %710 = vmatpush1.bf16.msra.mxu0 %v6144_v34  ;;  %1289 = vst [vmem:[#allocation2 + $0x48] sm:$0x1] %v1288_v25  ;;  %v1325_v28 = vld [vmem:[#allocation2 + $0x50] sm:$0x1]  ;;  %v1334_v34 = vld [vmem:[#allocation2 + $0x74] sm:$0x1]  ;;  %s8650_s30 = scalar_lea.vmem %s8742_s10, %s5074_s25 }
  0x3f   : > { %711 = vmatprep.subr.bf16.mxu0 %v6390_v4  ;;  %v1326_v29 = vsel %vm6637_vm10, 0, %v1325_v28  ;;  %v6792_v25 = vadd.s32 8, %v1158_v55  ;;  %v6796_v28 = vadd.s32 11, %v1158_v55 }
  0x40   : > { %1327 = vst [vmem:[#allocation2 + $0x50] sm:$0x1] %v1326_v29  ;;  %v6798_v29 = vadd.s32 10, %v1158_v55 }
  0x42   : > { %712 = vmatpush1.bf16.msra.mxu0 %v685_v30  ;;  %v1296_v30 = vld [vmem:[#allocation2 + $0x6c] sm:$0x1] }
  0x43   : > { %2494 = vmatprep.subr.bf16.mxu0 %v6390_v4  ;;  %v1297_v31 = vsel %vm6631_vm9, 0, %v1296_v30 }
  0x44   : > { %1298 = vst [vmem:[#allocation2 + $0x6c] sm:$0x1] %v1297_v31 }
  0x45   : > { %5880 = vmatmul.mubr.msk.bf16.gmra.mrb[12].mxu1 %vm963_vm5, %v6128_v32  ;;  %720 = vmatmul.mubr.bf16.vlgmr.msra.gmra.mrb[0].mxu0 %v6146_v37  ;;  %v1293_v32 = vld [vmem:[#allocation2 + $0x60] sm:$0x1] }
  0x46   : > { %5883 = vmatprep.mubr.msk.bf16.mxu1 %vm963_vm5, %v6129_v33  ;;  %5111 = vmatprep.mubr.msk.bf16.mxu0 %vm652_vm6, %v6149_v38  ;;  %v1294_v33 = vsel %vm6631_vm9, 0, %v1293_v32  ;;  %v1302_v38 = vld [vmem:[#allocation2 + $0x84] sm:$0x1] }
  0x47   : > { %1295 = vst [vmem:[#allocation2 + $0x60] sm:$0x1] %v1294_v33 }
  0x4d   : > { %5884 = vmatmul.mubr.msk.bf16.gmra.mrb[16].mxu1 %vm963_vm5, %v6130_v35  ;;  %728 = vmatmul.mubr.bf16.gmra.mrb[4].mxu0 %v6151_v40  ;;  %v1335_v35 = vsel %vm6637_vm10, 0, %v1334_v34  ;;  %v1299_v40 = vld [vmem:[#allocation2 + $0x78] sm:$0x1] }
  0x4e   : > { %5887 = vmatprep.mubr.msk.bf16.mxu1 %vm963_vm5, %v6131_v36  ;;  %5112 = vmatprep.mubr.msk.bf16.mxu0 %vm652_vm6, %v6152_v41  ;;  %1336 = vst [vmem:[#allocation2 + $0x74] sm:$0x1] %v1335_v35  ;;  %v1331_v36 = vld [vmem:[#allocation2 + $0x68] sm:$0x1]  ;;  %v1300_v41 = vsel %vm6631_vm9, 0, %v1299_v40 }
  0x4f   : > { %v1332_v37 = vsel %vm6637_vm10, 0, %v1331_v36  ;;  %1301 = vst [vmem:[#allocation2 + $0x78] sm:$0x1] %v1300_v41  ;;  %v6211_v35 = vld [vmem:[%s8738_s6 + $0xa8] sm:$0xff]  }
  0x50   : > { %1333 = vst [vmem:[#allocation2 + $0x68] sm:$0x1] %v1332_v37 }
  0x55   : > { %5888 = vmatmul.mubr.msk.bf16.gmra.mrb[20].mxu1 %vm963_vm5, %v6132_v39  ;;  %736 = vmatmul.mubr.bf16.gmra.mrb[8].mxu0 %v6154_v42  ;;  %v1303_v39 = vsel %vm6631_vm9, 0, %v1302_v38  ;;  %v1340_v42 = vld [vmem:[#allocation2 + $0x8c] sm:$0x1]  ;;  %vm6757_vm5 = vmand %vm1171_vm11, %vm1183_vm12  ;;  %vm1184_vm11 = vcmp.lt.s32.totalorder %v6750_v61, 16 }
  0x56   : > { %5113 = vmatprep.mubr.msk.bf16.mxu0 %vm652_vm6, %v6155_v43  ;;  %1304 = vst [vmem:[#allocation2 + $0x84] sm:$0x1] %v1303_v39  ;;  %v1341_v43 = vsel %vm6637_vm10, 0, %v1340_v42  ;;  %v1655_v42 = vld [vmem:[#allocation2 + $0xc] sm:$0xf]  ;;  %vm6822_vm12 = vmand %vm1645_vm15, %vm8743_vm2  ;;  %vm1192_vm2 = vcmp.lt.s32.totalorder %v6798_v29, 16 }
  0x57   : > { %1342 = vst [vmem:[#allocation2 + $0x8c] sm:$0x1] %v1341_v43 }
  0x5d   : > { %744 = vmatmul.mubr.bf16.gmra.mrb[12].mxu0 %v6157_v44  ;;  %v1337_v44 = vld [vmem:[#allocation2 + $0x80] sm:$0x1] }
  0x5e   : > { %5114 = vmatprep.mubr.msk.bf16.mxu0 %vm652_vm6, %v6158_v45  ;;  %v1338_v45 = vsel %vm6637_vm10, 0, %v1337_v44  ;;  %vm6767_vm10 = vmand %vm1170_vm13, %vm1182_vm14  ;;  %vm1187_vm13 = vcmp.lt.s32.totalorder %v6773_v12, 16 }
  0x5f   : > { %1339 = vst [vmem:[#allocation2 + $0x80] sm:$0x1] %v1338_v45 }
  0x65   : > { %752 = vmatmul.mubr.bf16.gmra.mrb[16].mxu0 %v6160_v46  ;;  %v6202_v46 = vld [vmem:[%s8738_s6 + $0x60] sm:$0xff]  }
  0x66   : > { %5115 = vmatprep.mubr.msk.bf16.mxu0 %vm652_vm6, %v6161_v47  ;;  %2307 = vmatpush1.bf16.msra.mxu1 %v6202_v46  ;;  %v6203_v47 = vld [vmem:[%s8738_s6 + $0x68] sm:$0xff]  }
  0x67   : > { %2308 = vmatprep.subr.bf16.mxu1 %v6390_v4 }
  0x6a   : > { %2309 = vmatpush1.bf16.msra.mxu1 %v6203_v47 }
  0x6b   : > { %2310 = vmatprep.subr.bf16.mxu1 %v6390_v4 }
  0x6d   : > { %760 = vmatmul.mubr.bf16.gmra.mrb[20].mxu0 %v6163_v48  ;;  %v6212_v48 = vld [vmem:[%s8738_s6] sm:$0xff]  }
  0x6e   : > { %5116 = vmatprep.mubr.msk.bf16.mxu0 %vm652_vm6, %v6164_v50  ;;  %2495 = vmatpush1.bf16.msra.mxu0 %v6212_v48  ;;  %v6214_v50 = vld [vmem:[%s8738_s6 + $0x8] sm:$0xff]  }
  0x6f   : > { %2496 = vmatprep.subr.bf16.mxu0 %v6390_v4  ;;  %2311 = vmatpush1.bf16.msra.mxu1 %v6204_v51 }
  0x70   : > { %2312 = vmatprep.subr.bf16.mxu1 %v6390_v4 }
  0x72   : > { %2497 = vmatpush1.bf16.msra.mxu0 %v6214_v50 }
  0x73   : > { %2498 = vmatprep.subr.bf16.mxu0 %v6390_v4 }
  0x75   : > { %768 = vmatmul.mubr.bf16.gmra.mrb[24].mxu0 %v6166_v53  ;;  %v6205_v53 = vld [vmem:[%s8738_s6 + $0x78] sm:$0xff]  }
  0x76   : > { %5117 = vmatprep.mubr.msk.bf16.mxu0 %vm652_vm6, %v6167_v1  ;;  %2499 = vmatpush1.bf16.msra.mxu0 %v6216_v52 }
  0x77   : > { %2313 = vmatpush1.bf16.msra.mxu1 %v6205_v53  ;;  %2500 = vmatprep.subr.bf16.mxu0 %v6390_v4 }
  0x78   : > { %2314 = vmatprep.subr.bf16.mxu1 %v6390_v4 }
  0x7b   : > { %2315 = vmatpush1.bf16.msra.mxu1 %v6206_v54 }
  0x7c   : > { %2316 = vmatprep.subr.bf16.mxu1 %v6390_v4 }
  0x7d   : > { %776 = vmatmul.mubr.bf16.gmra.mrb[28].mxu0 %v6169_v2 }
  0x7e   : > { %5118 = vmatprep.mubr.msk.bf16.mxu0 %vm652_vm6, %v6170_v14 }
  0x7f   : > { %2317 = vmatpush1.bf16.msra.mxu1 %v6207_v56 }
  0x80   : > { %2318 = vmatprep.subr.bf16.mxu1 %v6390_v4 }
  0x83   : > { %2319 = vmatpush1.bf16.msra.mxu1 %v6208_v58 }
  0x84   : > { %2320 = vmatprep.subr.bf16.mxu1 %v6390_v4 }
  0x85   : > { %784 = vmatmul.mubr.bf16.gmra.mrb[32].mxu0 %v6172_v16  ;;  %v6778_v16 = vadd.s32 7, %v1158_v55 }
  0x86   : > { %5119 = vmatprep.mubr.msk.bf16.mxu0 %vm652_vm6, %v6173_v20  ;;  %vm1173_vm6 = vcmp.ge.s32.totalorder %v6748_v60, 0  ;;  %v6785_v20 = vadd.s32 6, %v1158_v55 }
  0x87   : > { %2321 = vmatpush1.bf16.msra.mxu1 %v6209_v63  ;;  %vm6813_vm14 = vmand %vm1173_vm6, %vm1185_vm7  ;;  %v6213_v63 = vld [vmem:[%s8738_s6 + $0xb0] sm:$0xff]  }
  0x88   : > { %2322 = vmatprep.subr.bf16.mxu1 %v6390_v4  ;;  %vm6830_vm6 = vmand %vm1172_vm8, %vm1184_vm11  ;;  %vm1177_vm11 = vcmp.ge.s32.totalorder %v6778_v16, 0 }
  0x89   : > { %vm6839_vm7 = vmor %vm1267_vm1, %vm1403_vm0  ;;  %vm8766_vm1 = vcmp.ge.s32.totalorder %v6773_v12, 0 }
  0x8a   : > { %vm6876_vm0 = vmand %vm8766_vm1, %vm1187_vm13  ;;  %vm1189_vm13 = vcmp.lt.s32.totalorder %v6778_v16, 16  ;;  %vm2081_vm1 = vcmask 1046528  }
  0x8b   : > { %2323 = vmatpush1.bf16.msra.mxu1 %v6210_v17 }
  0x8c   : > { %2324 = vmatprep.subr.bf16.mxu1 %v6390_v4 }
  0x8d   : > { %792 = vmatmul.mubr.bf16.gmra.mrb[36].mxu0 %v6175_v21  ;;  %v6787_v21 = vadd.s32 9, %v1158_v55 }
  0x8f   : > { %2325 = vmatpush1.bf16.msra.mxu1 %v6211_v35 }
  0x90   : > { %2326 = vmatprep.subr.bf16.mxu1 %v6390_v4 }
  0x93   : > { %2327 = vmatpush1.bf16.msra.mxu1 %v6213_v63 }
  0x94   : > { %2328 = vmatprep.subr.bf16.mxu1 %v6390_v4 }
 0x100   : > { %v5869_v62 = vpop.f32.mrb[0].mxu1 }
 0x101   : > { %v1047_v0 = vadd.f32 %v5869_v62, %v6746_v59  ;;  %v1038_v1 = vpop.f32.mrb[1].mxu1 }
 0x102   : > { %v1039_v3 = vadd.f32 %v6746_v59, %v1038_v1  ;;  %v5870_v5 = vpop.f32.mrb[2].mxu1 }
 0x103   : > { %v1135_v6 = vmax.f32 %v1047_v0, 0.0  ;;  %v1050_v10 = vadd.f32 %v5870_v5, %v6746_v59  ;;  %v1041_v11 = vpop.f32.mrb[3].mxu1 }
 0x104   : > { %v1133_v13 = vmax.f32 %v1039_v3, 0.0  ;;  %v1042_v14 = vadd.f32 %v6746_v59, %v1041_v11  ;;  %v1659_v3 = vld [vmem:[#allocation2 + $0x14] sm:$0x1]  ;;  %v1652_v11 = vld [vmem:[#allocation2 + $0x8] sm:$0x1] }
 0x105   : > { %v1232_v18 = vsel %vm6757_vm5, %v1135_v6, 0.0  ;;  %v1136_v19 = vmax.f32 %v1050_v10, 0.0 }
 0x106   : > { %v5552_v22 = vpack.c.bf16 %v1232_v18, %v1232_v18  ;;  %v1230_v23 = vsel %vm6767_vm10, %v1133_v13, 0.0  ;;  %v1134_v24 = vmax.f32 %v1042_v14, 0.0 }
 0x107   : > { %v5550_v26 = vpack.c.bf16 %v1230_v23, %v1230_v23  ;;  %v1233_v27 = vsel %vm6757_vm5, %v1136_v19, 0.0  ;;  %vm1174_vm5 = vcmp.ge.s32.totalorder %v6776_v15, 0 }
 0x108   : > { %v1423_v30 = vshrl.u32 %v5552_v22, 16  ;;  %v1426_v31 = vshll.u32 %v5552_v22, 16  ;;  %v5553_v32 = vpack.c.bf16 %v1233_v27, %v1233_v27  ;;  %v1231_v33 = vsel %vm6767_vm10, %v1134_v24, 0.0  ;;  %v5873_v34 = vpop.f32.mrb[4].mxu1 }
 0x109   : > { %v1406_v36 = vshrl.u32 %v5550_v26, 16  ;;  %v1409_v37 = vshll.u32 %v5550_v26, 16  ;;  %v5551_v38 = vpack.c.bf16 %v1231_v33, %v1231_v33  ;;  %v1063_v39 = vadd.f32 %v5873_v34, %v6746_v59  ;;  %v1054_v40 = vpop.f32.mrb[5].mxu1 }
 0x10a   : > { %v1425_v41 = vrot.slane %v1423_v30, 7  ;;  %v1431_v43 = vshrl.u32 %v5553_v32, 16  ;;  %v1434_v44 = vshll.u32 %v5553_v32, 16  ;;  %v1055_v46 = vadd.f32 %v6746_v59, %v1054_v40  ;;  %v5874_v47 = vpop.f32.mrb[6].mxu1  ;;  %v6215_v30 = vld [vmem:[%s8738_s6 + $0xb8] sm:$0xff]  }
 0x10b   : > { %vm1186_vm10 = vcmp.lt.s32.totalorder %v6776_v15, 16  ;;  %v1408_v50 = vrot.slane %v1406_v36, 7  ;;  %v1414_v51 = vshrl.u32 %v5551_v38, 16  ;;  %v1417_v52 = vshll.u32 %v5551_v38, 16  ;;  %v1057_v54 = vpop.f32.mrb[7].mxu1  ;;  %2329 = vmatpush1.bf16.msra.mxu1 %v6215_v30 }
 0x10c   : > { %v1139_v53 = vmax.f32 %v1063_v39, 0.0  ;;  %v1428_v55 = vor.u32 %v1426_v31, %v1425_v41  ;;  %v1429_v56 = vrot.slane %v1425_v41, 4  ;;  %v1433_v58 = vrot.slane %v1431_v43, 7  ;;  %v1669_v41 = vld [vmem:[#allocation2 + $0x24] sm:$0xf]  ;;  %vm6889_vm8 = vmand %vm1174_vm5, %vm1186_vm10  ;;  %2707 = vmatprep.subr.bf16.mxu1 %v6390_v4 }
 0x10d   : > { %v1137_v60 = vmax.f32 %v1055_v46, 0.0  ;;  %v1411_v1 = vor.u32 %v1409_v37, %v1408_v50  ;;  %v1412_v2 = vrot.slane %v1408_v50, 4  ;;  %v1416_v5 = vrot.slane %v1414_v51, 7  ;;  %vm6932_vm10 = vmand %vm1177_vm11, %vm1189_vm13 }
 0x10e   : > { %v1236_v61 = vsel %vm6813_vm14, %v1139_v53, 0.0  ;;  %v1656_v6 = vsel %vm6822_vm12, %v1428_v55, %v1655_v42  ;;  %v1436_v7 = vor.u32 %v1434_v44, %v1433_v58  ;;  %v1438_v10 = vrot.slane %v1433_v58, 4 }
 0x10f   : > { %v5556_v13 = vpack.c.bf16 %v1236_v61, %v1236_v61  ;;  %1657 = vst [vmem:[#allocation2 + $0xc] sm:$0xf] %v1656_v6  ;;  %v1648_v14 = vsel %vm6822_vm12, %v1411_v1, %v1647_v57  ;;  %v1419_v17 = vor.u32 %v1417_v52, %v1416_v5  ;;  %v1421_v18 = vrot.slane %v1416_v5, 4 }
 0x110   : > { %v1234_v19 = vsel %vm6830_vm6, %v1137_v60, 0.0  ;;  %1649 = vst [vmem:[#allocation2] sm:$0xf] %v1648_v14  ;;  %v1437_v22 = vsel %vm6839_vm7, %v1429_v56, %v1436_v7  ;;  %v1660_v23 = vsel %vm6631_vm9, %v1438_v10, %v1659_v3  ;;  %v5877_v27 = vpop.f32.mrb[8].mxu1  ;;  %v1066_v34 = vadd.f32 %v5874_v47, %v6746_v59  ;;  %v1662_v60 = vld [vmem:[#allocation2 + $0x18] sm:$0xf] }
 0x111   : > { %v1457_v24 = vshrl.u32 %v5556_v13, 16  ;;  %v1460_v26 = vshll.u32 %v5556_v13, 16  ;;  %1658 = vst.msk [vmem:[#allocation2 + $0x10] sm:$0xf] %vm1645_vm15, %v1437_v22  ;;  %1661 = vst [vmem:[#allocation2 + $0x14] sm:$0x1] %v1660_v23  ;;  %v1420_v31 = vsel %vm6839_vm7, %v1412_v2, %v1419_v17  ;;  %v1653_v32 = vsel %vm6631_vm9, %v1421_v18, %v1652_v11 }
 0x112   : > { %v5554_v33 = vpack.c.bf16 %v1234_v19, %v1234_v19  ;;  %v1070_v35 = vpop.f32.mrb[9].mxu1  ;;  %1651 = vst.msk [vmem:[#allocation2 + $0x4] sm:$0xf] %vm1645_vm15, %v1420_v31  ;;  %1654 = vst [vmem:[#allocation2 + $0x8] sm:$0x1] %v1653_v32  ;;  %v1058_v37 = vadd.f32 %v6746_v59, %v1057_v54  ;;  %v1079_v38 = vadd.f32 %v5877_v27, %v6746_v59  ;;  %v1140_v44 = vmax.f32 %v1066_v34, 0.0 }
 0x113   : > { %v6867_v36 = vrot.slane %v1457_v24, 7  ;;  %v1071_v39 = vadd.f32 %v6746_v59, %v1070_v35  ;;  %v5878_v40 = vpop.f32.mrb[10].mxu1  ;;  %vm1188_vm5 = vcmp.lt.s32.totalorder %v6785_v20, 16  ;;  %v1673_v14 = vld [vmem:[#allocation2 + $0x2c] sm:$0x1]  ;;  %vm1191_vm11 = vcmp.lt.s32.totalorder %v6787_v21, 16 }
 0x114   : > { %v1440_v42 = vshrl.u32 %v5554_v33, 16  ;;  %v1443_v43 = vshll.u32 %v5554_v33, 16  ;;  %v1082_v47 = vadd.f32 %v5878_v40, %v6746_v59  ;;  %v1073_v50 = vpop.f32.mrb[11].mxu1  ;;  %v1138_v53 = vmax.f32 %v1058_v37, 0.0  ;;  %v1666_v32 = vld [vmem:[#allocation2 + $0x20] sm:$0x1] }
 0x115   : > { %v1462_v51 = vor.u32 %v1460_v26, %v6867_v36  ;;  %v1463_v52 = vrot.slane %v6867_v36, 4  ;;  %v1143_v54 = vmax.f32 %v1079_v38, 0.0  ;;  %v1237_v56 = vsel %vm6813_vm14, %v1140_v44, 0.0 }
 0x116   : > { %v1442_v55 = vrot.slane %v1440_v42, 7  ;;  %v1141_v57 = vmax.f32 %v1071_v39, 0.0  ;;  %v1144_v58 = vmax.f32 %v1082_v47, 0.0  ;;  %v5557_v63 = vpack.c.bf16 %v1237_v56, %v1237_v56  ;;  %v1683_v39 = vld [vmem:[#allocation2 + $0x3c] sm:$0xf] }
 0x117   : > { %v1670_v45 = vsel %vm6822_vm12, %v1462_v51, %v1669_v41  ;;  %v1235_v1 = vsel %vm6830_vm6, %v1138_v53, 0.0  ;;  %v1240_v15 = vsel %vm6876_vm0, %v1143_v54, 0.0  ;;  %vm1176_vm14 = vcmp.ge.s32.totalorder %v6785_v20, 0 }
 0x118   : > { %1671 = vst [vmem:[#allocation2 + $0x24] sm:$0xf] %v1670_v45  ;;  %v1445_v2 = vor.u32 %v1443_v43, %v1442_v55  ;;  %v1446_v3 = vrot.slane %v1442_v55, 4  ;;  %v5555_v5 = vpack.c.bf16 %v1235_v1, %v1235_v1  ;;  %v5560_v61 = vpack.c.bf16 %v1240_v15, %v1240_v15  ;;  %v5881_v11 = vpop.f32.mrb[12].mxu1  ;;  %vm6951_vm6 = vmand %vm1176_vm14, %vm1188_vm5 }
 0x119   : > { %v1465_v6 = vshrl.u32 %v5557_v63, 16  ;;  %v1468_v7 = vshll.u32 %v5557_v63, 16  ;;  %v1238_v10 = vsel %vm6889_vm8, %v1141_v57, 0.0  ;;  %v1241_v62 = vsel %vm6876_vm0, %v1144_v58, 0.0  ;;  %v1086_v22 = vpop.f32.mrb[13].mxu1 }
 0x11a   : > { %v1663_v13 = vsel %vm6822_vm12, %v1445_v2, %v1662_v60  ;;  %v1448_v17 = vshrl.u32 %v5555_v5, 16  ;;  %v1451_v18 = vshll.u32 %v5555_v5, 16  ;;  %v1491_v19 = vshrl.u32 %v5560_v61, 16  ;;  %v5882_v30 = vpop.f32.mrb[14].mxu1  ;;  %v1676_v57 = vld [vmem:[#allocation2 + $0x30] sm:$0xf] }
 0x11b   : > { %1664 = vst [vmem:[#allocation2 + $0x18] sm:$0xf] %v1663_v13  ;;  %v1467_v23 = vrot.slane %v1465_v6, 7  ;;  %v1494_v24 = vshll.u32 %v5560_v61, 16  ;;  %v5558_v26 = vpack.c.bf16 %v1238_v10, %v1238_v10  ;;  %v5561_v27 = vpack.c.bf16 %v1241_v62, %v1241_v62  ;;  %v1089_v36 = vpop.f32.mrb[15].mxu1 }
 0x11c   : > { %v1450_v31 = vrot.slane %v1448_v17, 7  ;;  %v1493_v33 = vrot.slane %v1491_v19, 7  ;;  %v1074_v34 = vadd.f32 %v6746_v59, %v1073_v50  ;;  %v1095_v35 = vadd.f32 %v5881_v11, %v6746_v59  ;;  %v1687_v2 = vld [vmem:[#allocation2 + $0x44] sm:$0x1] }
 0x11d   : > { %v1470_v37 = vor.u32 %v1468_v7, %v1467_v23  ;;  %v1472_v38 = vrot.slane %v1467_v23, 4  ;;  %v1474_v40 = vshrl.u32 %v5558_v26, 16  ;;  %v1477_v41 = vshll.u32 %v5558_v26, 16 }
 0x11e   : > { %v1453_v42 = vor.u32 %v1451_v18, %v1450_v31  ;;  %v1455_v43 = vrot.slane %v1450_v31, 4  ;;  %v1496_v44 = vor.u32 %v1494_v24, %v1493_v33  ;;  %v1497_v46 = vrot.slane %v1493_v33, 4 }
 0x11f   : > { %v1471_v47 = vsel %vm6839_vm7, %v1463_v52, %v1470_v37  ;;  %v1674_v51 = vsel %vm6631_vm9, %v1472_v38, %v1673_v14  ;;  %v6916_v53 = vrot.slane %v1474_v40, 7  ;;  %v1499_v50 = vshrl.u32 %v5561_v27, 16 }
 0x120   : > { %1672 = vst.msk [vmem:[#allocation2 + $0x28] sm:$0xf] %vm1645_vm15, %v1471_v47  ;;  %1675 = vst [vmem:[#allocation2 + $0x2c] sm:$0x1] %v1674_v51  ;;  %v1454_v54 = vsel %vm6839_vm7, %v1446_v3, %v1453_v42  ;;  %v1667_v55 = vsel %vm6631_vm9, %v1455_v43, %v1666_v32  ;;  %v1684_v56 = vsel %vm6822_vm12, %v1496_v44, %v1683_v39  ;;  %v1502_v52 = vshll.u32 %v5561_v27, 16  ;;  %v6936_v15 = vpop.f32.mrb[16].mxu1 }
 0x121   : > { %1665 = vst.msk [vmem:[#allocation2 + $0x1c] sm:$0xf] %vm1645_vm15, %v1454_v54  ;;  %1668 = vst [vmem:[#allocation2 + $0x20] sm:$0x1] %v1667_v55  ;;  %v1479_v58 = vor.u32 %v1477_v41, %v6916_v53  ;;  %v1480_v45 = vrot.slane %v6916_v53, 4  ;;  %v1501_v60 = vrot.slane %v1499_v50, 7  ;;  %v1087_v5 = vadd.f32 %v6746_v59, %v1086_v22 }
 0x122   : > { %1685 = vst [vmem:[#allocation2 + $0x3c] sm:$0xf] %v1684_v56  ;;  %v1142_v63 = vmax.f32 %v1074_v34, 0.0  ;;  %v1147_v3 = vmax.f32 %v1095_v35, 0.0  ;;  %v1098_v61 = vadd.f32 %v5882_v30, %v6746_v59  ;;  %v1090_v6 = vadd.f32 %v6746_v59, %v1089_v36  ;;  %v6941_v7 = vpop.f32.mrb[17].mxu1 }
 0x123   : > { %v1677_v10 = vsel %vm6822_vm12, %v1479_v58, %v1676_v57  ;;  %v1504_v16 = vor.u32 %v1502_v52, %v1501_v60  ;;  %v1506_v62 = vrot.slane %v1501_v60, 4  ;;  %v6955_v14 = vpop.f32.mrb[18].mxu1  ;;  %v1145_v19 = vmax.f32 %v1087_v5, 0.0  ;;  %v6965_v27 = vld [vmem:[#allocation2 + $0x10] sm:$0xf] }
 0x124   : > { %v1239_v11 = vsel %vm6889_vm8, %v1142_v63, 0.0  ;;  %1678 = vst [vmem:[#allocation2 + $0x30] sm:$0xf] %v1677_v10  ;;  %v1244_v18 = vsel %vm6932_vm10, %v1147_v3, 0.0  ;;  %v1148_v22 = vmax.f32 %v1098_v61, 0.0  ;;  %v6959_v23 = vpop.f32.mrb[19].mxu1 }
 0x125   : > { %v5559_v17 = vpack.c.bf16 %v1239_v11, %v1239_v11  ;;  %v1505_v12 = vsel %vm6839_vm7, %v1497_v46, %v1504_v16  ;;  %v1688_v20 = vsel %vm6631_vm9, %v1506_v62, %v1687_v2  ;;  %v5564_v24 = vpack.c.bf16 %v1244_v18, %v1244_v18  ;;  %v1734_v34 = vld [vmem:[#allocation2 + $0xc] sm:$0xf]  ;;  %v1680_v41 = vld [vmem:[#allocation2 + $0x38] sm:$0x1]  ;;  %v1697_v42 = vld [vmem:[#allocation2 + $0x54] sm:$0xf] }
 0x126   : > { %v1146_v26 = vmax.f32 %v1090_v6, 0.0  ;;  %1686 = vst.msk [vmem:[#allocation2 + $0x40] sm:$0xf] %vm1645_vm15, %v1505_v12  ;;  %1689 = vst [vmem:[#allocation2 + $0x44] sm:$0x1] %v1688_v20  ;;  %v1242_v32 = vsel %vm6951_vm6, %v1145_v19, 0.0  ;;  %v6979_v44 = vcombine.low %v1734_v34, %v6965_v27 }
 0x127   : > { %v1482_v30 = vshrl.u32 %v5559_v17, 16  ;;  %v1485_v31 = vshll.u32 %v5559_v17, 16  ;;  %v1245_v33 = vsel %vm6932_vm10, %v1148_v22, 0.0  ;;  %vm2118_vm0 = vcmask 523264   ;;  %v1769_v39 = vld [vmem:[#allocation2 + $0xc] sm:$0xe] }
 0x128   : > { %vm1179_vm8 = vcmp.ge.s32.totalorder %v6787_v21, 0  ;;  %v1525_v35 = vshrl.u32 %v5564_v24, 16  ;;  %v1528_v36 = vshll.u32 %v5564_v24, 16  ;;  %v5562_v37 = vpack.c.bf16 %v1242_v32, %v1242_v32  ;;  %v6982_v55 = vpop.f32.mrb[20].mxu1  ;;  %v1690_v52 = vld [vmem:[#allocation2 + $0x48] sm:$0xf] }
 0x129   : > { %v5565_v38 = vpack.c.bf16 %v1245_v33, %v1245_v33  ;;  %vm1178_vm13 = vcmp.ge.s32.totalorder %v6792_v25, 0  ;;  %vm1190_vm14 = vcmp.lt.s32.totalorder %v6792_v25, 16  ;;  %v1484_v40 = vrot.slane %v1482_v30, 7  ;;  %v6984_v63 = vld [vmem:[#allocation2 + $0x14] ss:$0 sps:$4 sm:$0x11]   ;;  %vm7032_vm5 = vmand %vm1179_vm8, %vm1191_vm11 }
 0x12a   : > { %v1243_v43 = vsel %vm6951_vm6, %v1146_v26, 0.0  ;;  %v5202_v46 = vcombine.low %v1769_v39, %v6965_v27  ;;  %v1527_v47 = vrot.slane %v1525_v35, 7  ;;  %v1508_v51 = vshrl.u32 %v5562_v37, 16  ;;  %v6986_v1 = vpop.f32.mrb[21].mxu1  ;;  %v1701_v6 = vld [vmem:[#allocation2 + $0x5c] sm:$0x1]  ;;  %vm7049_vm8 = vmand %vm1178_vm13, %vm1190_vm14 }
 0x12b   : > { %v1511_v50 = vshll.u32 %v5562_v37, 16  ;;  %v1533_v54 = vshrl.u32 %v5565_v38, 16  ;;  %v1487_v56 = vor.u32 %v1485_v31, %v1484_v40  ;;  %v1489_v57 = vrot.slane %v1484_v40, 4  ;;  %v6990_v10 = vpop.f32.mrb[22].mxu1  ;;  %v1732_v17 = vld [vmem:[#allocation2] sm:$0xf] }
 0x12c   : > { %v1536_v58 = vshll.u32 %v5565_v38, 16  ;;  %v5563_v60 = vpack.c.bf16 %v1243_v43, %v1243_v43  ;;  %v1530_v2 = vor.u32 %v1528_v36, %v1527_v47  ;;  %v1531_v3 = vrot.slane %v1527_v47, 4  ;;  %v1733_v18 = vld [vmem:[#allocation2 + $0x4] sm:$0xf]  ;;  %v6998_v19 = vpop.f32.mrb[23].mxu1  ;;  %v6218_v37 = vld [vmem:[%s8738_s6 + $0x18] sm:$0xff]  }
 0x12d   : > { %v1510_v5 = vrot.slane %v1508_v51, 7  ;;  %v1535_v61 = vrot.slane %v1533_v54, 7  ;;  %vm1193_vm10 = vcmp.lt.s32.totalorder %v6796_v28, 16  ;;  %v1488_v16 = vsel %vm6839_vm7, %v1480_v45, %v1487_v56  ;;  %v1768_v24 = vld [vmem:[#allocation2] sm:$0xe]  ;;  %2501 = vmatpush1.bf16.msra.mxu0 %v6218_v37 }
 0x12e   : > { %v1681_v62 = vsel %vm6631_vm9, %v1489_v57, %v1680_v41  ;;  %v1516_v11 = vshrl.u32 %v5563_v60, 16  ;;  %v1519_v13 = vshll.u32 %v5563_v60, 16  ;;  %1679 = vst.msk [vmem:[#allocation2 + $0x34] sm:$0xf] %vm1645_vm15, %v1488_v16  ;;  %v1698_v22 = vsel %vm6822_vm12, %v1530_v2, %v1697_v42  ;;  %v1694_v34 = vld [vmem:[#allocation2 + $0x50] sm:$0x1]  ;;  %2502 = vmatprep.subr.bf16.mxu0 %v6390_v4 }
 0x12f   : > { %1682 = vst [vmem:[#allocation2 + $0x38] sm:$0x1] %v1681_v62  ;;  %v1513_v12 = vor.u32 %v1511_v50, %v1510_v5  ;;  %v1514_v53 = vrot.slane %v1510_v5, 4  ;;  %v1538_v20 = vor.u32 %v1536_v58, %v1535_v61  ;;  %v7003_v45 = vld [vmem:[#allocation2 + $0x8] ss:$0 sps:$4 sm:$0x11]   ;;  %v7012_v35 = vcombine.low %v1732_v17, %v1733_v18 }
 0x130   : > { %vm1180_vm6 = vcmp.ge.s32.totalorder %v6798_v29, 0  ;;  %1699 = vst [vmem:[#allocation2 + $0x54] sm:$0xf] %v1698_v22  ;;  %v1540_v26 = vrot.slane %v1535_v61, 4  ;;  %v1518_v27 = vrot.slane %v1516_v11, 7  ;;  %v2085_v30 = vrot.slane %v5202_v46, 1 }
 0x131   : > { %v2086_v31 = vrot.slane %v6984_v63, 1  ;;  %v1691_v32 = vsel %vm6822_vm12, %v1513_v12, %v1690_v52  ;;  %v1539_v33 = vsel %vm6839_vm7, %v1531_v3, %v1538_v20  ;;  %v5201_v36 = vcombine.low %v1768_v24, %v1733_v18  ;;  %v6220_v50 = vld [vmem:[%s8738_s6 + $0x20] sm:$0xff]   ;;  %v7066_v61 = vld [vmem:[#allocation2 + $0x28] sm:$0xf]  ;;  %vm7090_vm14 = vmand %vm1180_vm6, %vm1192_vm2 }
 0x132   : > { %1692 = vst [vmem:[#allocation2 + $0x48] sm:$0xf] %v1691_v32  ;;  %1700 = vst.msk [vmem:[#allocation2 + $0x58] sm:$0xf] %vm1645_vm15, %v1539_v33  ;;  %v1702_v38 = vsel %vm6631_vm9, %v1540_v26, %v1701_v6  ;;  %v1521_v39 = vor.u32 %v1519_v13, %v1518_v27  ;;  %v1523_v40 = vrot.slane %v1518_v27, 4  ;;  %v2083_v43 = vrot.slane %v7003_v45, 1  ;;  %2503 = vmatpush1.bf16.msra.mxu0 %v6220_v50 }
 0x133   : > { %v7021_v41 = vsel %vm2081_vm1, %v2085_v30, %v2086_v31  ;;  %1703 = vst [vmem:[#allocation2 + $0x5c] sm:$0x1] %v1702_v38  ;;  %v2082_v42 = vrot.slane %v5201_v36, 1  ;;  %v1111_v46 = vadd.f32 %v6936_v15, %v6746_v59  ;;  %v1103_v51 = vadd.f32 %v6746_v59, %v6941_v7  ;;  %v1738_v17 = vld [vmem:[#allocation2 + $0x24] sm:$0xf]  ;;  %2504 = vmatprep.subr.bf16.mxu0 %v6390_v4 }
 0x134   : > { %5249 = vmatprep.mubr.msk.bf16.mxu1 %vm2118_vm0, %v7021_v41  ;;  %v1522_v54 = vsel %vm6839_vm7, %v1514_v53, %v1521_v39  ;;  %v1695_v15 = vsel %vm6631_vm9, %v1523_v40, %v1694_v34  ;;  %v1890_v7 = vshrl.u32 %v6979_v44, 16  ;;  %v1892_v56 = vshll.u32 %v6979_v44, 16  ;;  %v1711_v34 = vld [vmem:[#allocation2 + $0x6c] sm:$0xf]  ;;  %v1704_v37 = vld [vmem:[#allocation2 + $0x60] sm:$0xf] }
 0x135   : > { %1693 = vst.msk [vmem:[#allocation2 + $0x4c] sm:$0xf] %vm1645_vm15, %v1522_v54  ;;  %1696 = vst [vmem:[#allocation2 + $0x50] sm:$0x1] %v1695_v15  ;;  %v2084_v57 = vsel %vm2081_vm1, %v2082_v42, %v2083_v43  ;;  %v1151_v52 = vmax.f32 %v1111_v46, 0.0  ;;  %v1149_v58 = vmax.f32 %v1103_v51, 0.0  ;;  %v1114_v2 = vadd.f32 %v6955_v14, %v6746_v59 }
 0x136   : > { %v1897_v60 = vshll.u32 %v6984_v63, 16  ;;  %5271 = vmatprep.mubr.msk.bf16.mxu0 %vm2118_vm0, %v2084_v57  ;;  %v1894_v25 = vrot.slane %v1892_v56, 1  ;;  %v1106_v3 = vadd.f32 %v6746_v59, %v6959_v23  ;;  %v1127_v5 = vadd.f32 %v6982_v55, %v6746_v59  ;;  %v7106_v54 = vld [vmem:[#allocation2 + $0x2c] ss:$0 sps:$4 sm:$0x11]  }
 0x137   : > { %v1248_v6 = vsel %vm7032_vm5, %v1151_v52, 0.0  ;;  %v1246_v63 = vsel %vm7049_vm8, %v1149_v58, 0.0  ;;  %v1119_v62 = vadd.f32 %v6746_v59, %v6986_v1  ;;  %v1152_v23 = vmax.f32 %v1114_v2, 0.0  ;;  %v1715_v2 = vld [vmem:[#allocation2 + $0x74] sm:$0x1] }
 0x138   : > { %v1899_v16 = vrot.slane %v1897_v60, 1  ;;  %v5568_v14 = vpack.c.bf16 %v1248_v6, %v1248_v6  ;;  %v5566_v11 = vpack.c.bf16 %v1246_v63, %v1246_v63  ;;  %v1895_v13 = vor.u32 %v1894_v25, %v1890_v7  ;;  %v1708_v63 = vld [vmem:[#allocation2 + $0x68] sm:$0x1] }
 0x139   : > { %vm8779_vm11 = vcmp.ge.s32.totalorder %v6796_v28, 0  ;;  %v1150_v18 = vmax.f32 %v1106_v3, 0.0  ;;  %v1155_v22 = vmax.f32 %v1127_v5, 0.0  ;;  %v1153_v12 = vmax.f32 %v1119_v62, 0.0  ;;  %v1725_v62 = vld [vmem:[#allocation2 + $0x84] sm:$0xf] }
 0x13a   : > { %vm7078_vm13 = vmand %vm8779_vm11, %vm1193_vm10  ;;  %v7084_v1 = vcombine.low %v1738_v17, %v7066_v61  ;;  %v1559_v53 = vshrl.u32 %v5568_v14, 16  ;;  %v1562_v20 = vshll.u32 %v5568_v14, 16  ;;  %v1542_v24 = vshrl.u32 %v5566_v11, 16 }
 0x13b   : > { %v1545_v26 = vshll.u32 %v5566_v11, 16  ;;  %vm8784_vm10 = vsmask.f32 7424  ;;  %v1249_v30 = vsel %vm7032_vm5, %v1152_v23, 0.0  ;;  %v1247_v31 = vsel %vm7049_vm8, %v1150_v18, 0.0 }
 0x13c   : > { %v1900_v27 = vsel %vm8784_vm10, %v1895_v13, %v1899_v16  ;;  %v1252_v32 = vsel %vm7078_vm13, %v1155_v22, 0.0  ;;  %v1561_v33 = vrot.slane %v1559_v53, 7  ;;  %v1544_v36 = vrot.slane %v1542_v24, 7  ;;  %vm8785_vm2 = vmmov %vm8784_vm10 }
 0x13d   : > { %2023 = vrot.lane.b32.xlu0 %v1900_v27, %s6391_s24  ;;  %v5569_v29 = vpack.c.bf16 %v1249_v30, %v1249_v30  ;;  %v5567_v38 = vpack.c.bf16 %v1247_v31, %v1247_v31  ;;  %v5572_v39 = vpack.c.bf16 %v1252_v32, %v1252_v32  ;;  %v1250_v40 = vsel %vm7090_vm14, %v1153_v12, 0.0  ;;  %v7119_v12 = vld [vmem:[#allocation2 + $0x20] ss:$0 sps:$4 sm:$0x11]   ;;  %v7123_v27 = vld [vmem:[#allocation2 + $0x1c] sm:$0xf]  ;;  %vm8787_vm5 = vmmov %vm8785_vm2 }
 0x13e   : > { %v1914_v42 = vshrl.u32 %v7084_v1, 16  ;;  %v1916_v43 = vshll.u32 %v7084_v1, 16  ;;  %v1564_v46 = vor.u32 %v1562_v20, %v1561_v33  ;;  %v1565_v47 = vrot.slane %v1561_v33, 4  ;;  %v1718_v32 = vld [vmem:[#allocation2 + $0x78] sm:$0xf]  ;;  %vm8790_vm6 = vmmov %vm8785_vm2 }
 0x13f   : > { %v1547_v51 = vor.u32 %v1545_v26, %v1544_v36  ;;  %v1548_v50 = vrot.slane %v1544_v36, 4  ;;  %v1567_v15 = vshrl.u32 %v5569_v29, 16  ;;  %v1570_v21 = vshll.u32 %v5569_v29, 16  ;;  %v1742_v33 = vld [vmem:[#allocation2 + $0x3c] sm:$0xf]  ;;  %vm8791_vm8 = vmmov %vm8785_vm2 }
 0x140   : > { %v1550_v7 = vshrl.u32 %v5567_v38, 16  ;;  %v1553_v56 = vshll.u32 %v5567_v38, 16  ;;  %v1712_v57 = vsel %vm6822_vm12, %v1564_v46, %v1711_v34  ;;  %v1593_v58 = vshrl.u32 %v5572_v39, 16  ;;  %v7136_v34 = vld [vmem:[#allocation2 + $0x40] sm:$0xf]  ;;  %vm8792_vm11 = vmmov %vm8785_vm2 }
 0x141   : > { %v1705_v52 = vsel %vm6822_vm12, %v1547_v51, %v1704_v37  ;;  %v1596_v60 = vshll.u32 %v5572_v39, 16  ;;  %1713 = vst [vmem:[#allocation2 + $0x6c] sm:$0xf] %v1712_v57  ;;  %v1569_v25 = vrot.slane %v1567_v15, 7  ;;  %v5570_v5 = vpack.c.bf16 %v1250_v40, %v1250_v40  ;;  %v1736_v39 = vld [vmem:[#allocation2 + $0x18] sm:$0xf]  ;;  %vm8795_vm10 = vmmov %vm8785_vm2 }
 0x142   : > { %1706 = vst [vmem:[#allocation2 + $0x60] sm:$0xf] %v1705_v52  ;;  %v1552_v3 = vrot.slane %v1550_v7, 7  ;;  %v1918_v6 = vrot.slane %v1916_v43, 1  ;;  %v7112_v16 = vrot.slane %v1593_v58, 7  ;;  %v1921_v14 = vshll.u32 %v7106_v54, 16 }
 0x143   : > { %v1130_v11 = vadd.f32 %v6990_v10, %v6746_v59  ;;  %v1122_v13 = vadd.f32 %v6746_v59, %v6998_v19  ;;  %v1572_v23 = vor.u32 %v1570_v21, %v1569_v25  ;;  %v1574_v17 = vrot.slane %v1569_v25, 4  ;;  %v6222_v10 = vld [vmem:[%s8738_s6 + $0x28] sm:$0xff]   ;;  %v6223_v40 = vld [vmem:[%s8738_s6 + $0x30] sm:$0xff]  }
 0x144   : > { %v1555_v18 = vor.u32 %v1553_v56, %v1552_v3  ;;  %v1557_v22 = vrot.slane %v1552_v3, 4  ;;  %v1598_v53 = vor.u32 %v1596_v60, %v7112_v16  ;;  %v1599_v20 = vrot.slane %v7112_v16, 4  ;;  %2505 = vmatpush1.bf16.msra.mxu0 %v6222_v10  ;;  %v1740_v56 = vld [vmem:[#allocation2 + $0x30] sm:$0xf]  ;;  %v7167_v25 = vld [vmem:[#allocation2 + $0x34] sm:$0xf] }
 0x145   : > { %v1576_v24 = vshrl.u32 %v5570_v5, 16  ;;  %v1579_v26 = vshll.u32 %v5570_v5, 16  ;;  %v1573_v59 = vsel %vm6839_vm7, %v1565_v47, %v1572_v23  ;;  %v1716_v19 = vsel %vm6631_vm9, %v1574_v17, %v1715_v2  ;;  %2506 = vmatprep.subr.bf16.mxu0 %v6390_v4 }
 0x146   : > { %v1556_v30 = vsel %vm6839_vm7, %v1548_v50, %v1555_v18  ;;  %v1709_v31 = vsel %vm6631_vm9, %v1557_v22, %v1708_v63  ;;  %1714 = vst.msk [vmem:[#allocation2 + $0x70] sm:$0xf] %vm1645_vm15, %v1573_v59  ;;  %1717 = vst [vmem:[#allocation2 + $0x74] sm:$0x1] %v1716_v19  ;;  %v1726_v36 = vsel %vm6822_vm12, %v1598_v53, %v1725_v62  ;;  %v1923_v38 = vrot.slane %v1921_v14, 1  ;;  %v6225_v22 = vld [vmem:[%s8738_s6 + $0x38] sm:$0xff]  }
 0x147   : > { %1707 = vst.msk [vmem:[#allocation2 + $0x64] sm:$0xf] %vm1645_vm15, %v1556_v30  ;;  %1710 = vst [vmem:[#allocation2 + $0x68] sm:$0x1] %v1709_v31  ;;  %v7142_v37 = vrot.slane %v1576_v24, 7  ;;  %v1919_v29 = vor.u32 %v1918_v6, %v1914_v42  ;;  %v1156_v43 = vmax.f32 %v1130_v11, 0.0  ;;  %v7148_v47 = vcombine.low %v1736_v39, %v7123_v27 }
 0x148   : > { %1727 = vst [vmem:[#allocation2 + $0x84] sm:$0xf] %v1726_v36  ;;  %v1154_v46 = vmax.f32 %v1122_v13, 0.0  ;;  %v1909_v51 = vshll.u32 %v7119_v12, 16  ;;  %v7158_v7 = vcombine.low %v1742_v33, %v7136_v34  ;;  %v1746_v62 = vld [vmem:[#allocation2 + $0x54] sm:$0xf]  ;;  %2507 = vmatpush1.bf16.msra.mxu0 %v6223_v40  ;;  %v7183_v19 = vcombine.low %v1740_v56, %v7167_v25 }
 0x149   : > { %v7151_v50 = vld [vmem:[#allocation2 + $0x44] ss:$0 sps:$4 sm:$0x11]   ;;  %v1581_v42 = vor.u32 %v1579_v26, %v7142_v37  ;;  %v1582_v15 = vrot.slane %v7142_v37, 4  ;;  %v1924_v21 = vsel %vm8785_vm2, %v1919_v29, %v1923_v38  ;;  %v1253_v57 = vsel %vm7078_vm13, %v1156_v43, 0.0  ;;  %2508 = vmatprep.subr.bf16.mxu0 %v6390_v4  ;;  %vm8793_vm13 = vmmov %vm8785_vm2 }
 0x14a   : > { %2027 = vrot.lane.b32.xlu1 %v1924_v21, %s6391_s24  ;;  %v1251_v52 = vsel %vm7090_vm14, %v1154_v46, 0.0  ;;  %v1902_v58 = vshrl.u32 %v7148_v47, 16  ;;  %v1904_v60 = vshll.u32 %v7148_v47, 16  ;;  %v5573_v3 = vpack.c.bf16 %v1253_v57, %v1253_v57  ;;  %v7171_v63 = vld [vmem:[#allocation2 + $0x38] ss:$0 sps:$4 sm:$0x11]   ;;  %vm8794_vm14 = vmmov %vm8785_vm2 }
 0x14b   : > { %v1719_v2 = vsel %vm6822_vm12, %v1581_v42, %v1718_v32  ;;  %v5571_v5 = vpack.c.bf16 %v1251_v52, %v1251_v52  ;;  %v1911_v6 = vrot.slane %v1909_v51, 1  ;;  %v1938_v28 = vshrl.u32 %v7158_v7, 16  ;;  %v7176_v13 = vld [vmem:[#allocation2 + $0x58] sm:$0xf]  ;;  %v1729_v53 = vld [vmem:[#allocation2 + $0x8c] sm:$0x1]  ;;  %vm8786_vm12 = vmmov %vm8785_vm2 }
 0x14c   : > { %1720 = vst [vmem:[#allocation2 + $0x78] sm:$0xf] %v1719_v2  ;;  %v1906_v55 = vrot.slane %v1904_v60, 1  ;;  %v1940_v14 = vshll.u32 %v7158_v7, 16  ;;  %v1945_v11 = vshll.u32 %v7151_v50, 16  ;;  %v1601_v48 = vshrl.u32 %v5573_v3, 16  ;;  %2509 = vmatpush1.bf16.msra.mxu0 %v6225_v22 }
 0x14d   : > { %v1604_v23 = vshll.u32 %v5573_v3, 16  ;;  %v1584_v17 = vshrl.u32 %v5571_v5, 16  ;;  %v1587_v18 = vshll.u32 %v5571_v5, 16  ;;  %v1722_v24 = vld [vmem:[#allocation2 + $0x80] sm:$0x1]  ;;  %v1933_v33 = vshll.u32 %v7171_v63, 16  ;;  %2510 = vmatprep.subr.bf16.mxu0 %v6390_v4 }
 0x14e   : > { %v1907_v26 = vor.u32 %v1906_v55, %v1902_v58  ;;  %v1942_v10 = vrot.slane %v1940_v14, 1  ;;  %v1947_v59 = vrot.slane %v1945_v11, 1  ;;  %v7185_v30 = vld [vmem:[#allocation2 + $0x5c] ss:$0 sps:$4 sm:$0x11]   ;;  %v1603_v31 = vrot.slane %v1601_v48, 7 }
 0x14f   : > { %v1586_v32 = vrot.slane %v1584_v17, 7  ;;  %v7189_v36 = vcombine.low %v1746_v62, %v7176_v13  ;;  %v1744_v29 = vld [vmem:[#allocation2 + $0x48] sm:$0xf]  ;;  %v7191_v38 = vld [vmem:[#allocation2 + $0x4c] sm:$0xf]  ;;  %v1926_v46 = vshrl.u32 %v7183_v19, 16 }
 0x150   : > { %v7193_v39 = vld [vmem:[#allocation2 + $0x50] ss:$0 sps:$4 sm:$0x11]   ;;  %v1912_v40 = vsel %vm8786_vm12, %v1907_v26, %v1911_v6  ;;  %v1943_v43 = vor.u32 %v1942_v10, %v1938_v28  ;;  %v1928_v51 = vshll.u32 %v7183_v19, 16  ;;  %v1750_v42 = vld [vmem:[#allocation2 + $0x6c] sm:$0xf]  ;;  %v1606_v57 = vor.u32 %v1604_v23, %v1603_v31 }
 0x151   : > { %v7198_v21 = vld [vmem:[#allocation2 + $0x70] sm:$0xf]  ;;  %v1748_v56 = vld [vmem:[#allocation2 + $0x60] sm:$0xf]  ;;  %v1608_v52 = vrot.slane %v1603_v31, 4  ;;  %v1589_v58 = vor.u32 %v1587_v18, %v1586_v32  ;;  %v1591_v60 = vrot.slane %v1586_v32, 4  ;;  %2025 = vrot.lane.b32.xlu0 %v1912_v40, %s6391_s24  ;;  %v7228_v37 = vcombine.low %v1744_v29, %v7191_v38 }
 0x152   : > { %v7202_v2 = vld [vmem:[#allocation2 + $0x74] ss:$0 sps:$4 sm:$0x11]   ;;  %v6227_v3 = vld [vmem:[%s8738_s6 + $0x40] sm:$0xff]   ;;  %v1948_v5 = vsel %vm8787_vm5, %v1943_v43, %v1947_v59  ;;  %v1930_v6 = vrot.slane %v1928_v51, 1  ;;  %v1935_v62 = vrot.slane %v1933_v33, 1  ;;  %v1607_v14 = vsel %vm6839_vm7, %v1599_v20, %v1606_v57 }
 0x153   : > { %v1962_v55 = vshrl.u32 %v7189_v36, 16  ;;  %v7209_v28 = vld [vmem:[#allocation2 + $0x64] sm:$0xf]  ;;  %v1730_v11 = vsel %vm6631_vm9, %v1608_v52, %v1729_v53  ;;  %v1590_v48 = vsel %vm6839_vm7, %v1582_v15, %v1589_v58  ;;  %v1723_v23 = vsel %vm6631_vm9, %v1591_v60, %v1722_v24  ;;  %2511 = vmatpush1.bf16.msra.mxu0 %v6227_v3  ;;  %1728 = vst.msk [vmem:[#allocation2 + $0x88] sm:$0xf] %vm1645_vm15, %v1607_v14  ;;  %v6229_v24 = vld [vmem:[%s8738_s6 + $0x48] sm:$0xff]   ;;  %vm8788_vm9 = vmmov %vm8785_vm2 }
 0x154   : > { %1731 = vst [vmem:[#allocation2 + $0x8c] sm:$0x1] %v1730_v11  ;;  %1721 = vst.msk [vmem:[#allocation2 + $0x7c] sm:$0xf] %vm1645_vm15, %v1590_v48  ;;  %v1931_v16 = vor.u32 %v1930_v6, %v1926_v46  ;;  %v1964_v20 = vshll.u32 %v7189_v36, 16  ;;  %v1969_v17 = vshll.u32 %v7185_v30, 16  ;;  %2512 = vmatprep.subr.bf16.mxu0 %v6390_v4  ;;  %v7234_v15 = vcombine.low %v1750_v42, %v7198_v21 }
 0x155   : > { %1724 = vst [vmem:[#allocation2 + $0x80] sm:$0x1] %v1723_v23  ;;  %2031 = vrot.lane.b32.xlu0 %v1948_v5, %s6391_s24  ;;  %v1957_v49 = vshll.u32 %v7193_v39, 16  ;;  %v1993_v18 = vshll.u32 %v7202_v2, 16  ;;  %v7238_v22 = vcombine.low %v1748_v56, %v7209_v28  ;;  %v1950_v31 = vshrl.u32 %v7228_v37, 16  ;;  %v6232_v43 = vld [vmem:[%s8738_s6 + $0x50] sm:$0xff]   ;;  %vm8789_vm15 = vmmov %vm8785_vm2 }
 0x156   : > { %v7240_v53 = vld [vmem:[#allocation2 + $0x68] ss:$0 sps:$4 sm:$0x11]   ;;  %v1936_v26 = vsel %vm8788_vm9, %v1931_v16, %v1935_v62  ;;  %v1966_v10 = vrot.slane %v1964_v20, 1  ;;  %v1971_v59 = vrot.slane %v1969_v17, 1  ;;  %v1952_v32 = vshll.u32 %v7228_v37, 16 }
 0x157   : > { %2029 = vrot.lane.b32.xlu1 %v1936_v26, %s6391_s24  ;;  %v1959_v33 = vrot.slane %v1957_v49, 1  ;;  %v1986_v29 = vshrl.u32 %v7234_v15, 16  ;;  %v1988_v40 = vshll.u32 %v7234_v15, 16  ;;  %2513 = vmatpush1.bf16.msra.mxu0 %v6229_v24  ;;  %v1995_v51 = vrot.slane %v1993_v18, 1  ;;  %v1770_v57 = vld [vmem:[#allocation2 + $0x18] sm:$0xe] }
 0x158   : > { %v1967_v46 = vor.u32 %v1966_v10, %v1962_v55  ;;  %v1974_v42 = vshrl.u32 %v7238_v22, 16  ;;  %v1976_v56 = vshll.u32 %v7238_v22, 16  ;;  %2514 = vmatprep.subr.bf16.mxu0 %v6390_v4  ;;  %v1954_v52 = vrot.slane %v1952_v32, 1  ;;  %v1752_v5 = vld [vmem:[#allocation2 + $0x78] sm:$0xf] }
 0x159   : > { %v1990_v58 = vrot.slane %v1988_v40, 1  ;;  %v1981_v60 = vshll.u32 %v7240_v53, 16  ;;  %v1878_v3 = vshrl.u32 %v7012_v35, 16  ;;  %v1880_v55 = vshll.u32 %v7012_v35, 16  ;;  %v1754_v11 = vld [vmem:[#allocation2 + $0x84] sm:$0xf] }
 0x15a   : > { %v1972_v6 = vsel %vm8789_vm15, %v1967_v46, %v1971_v59  ;;  %v1978_v62 = vrot.slane %v1976_v56, 1  ;;  %v1885_v14 = vshll.u32 %v7003_v45, 16  ;;  %v1955_v48 = vor.u32 %v1954_v52, %v1950_v31  ;;  %v1771_v45 = vld [vmem:[#allocation2 + $0x24] sm:$0xe]  ;;  %v7274_v32 = vld [vmem:[#allocation2 + $0x88] sm:$0xf] }
 0x15b   : > { %2035 = vrot.lane.b32.xlu0 %v1972_v6, %s6391_s24  ;;  %v1991_v23 = vor.u32 %v1990_v58, %v1986_v29  ;;  %v1983_v16 = vrot.slane %v1981_v60, 1  ;;  %v7263_v20 = vld [vmem:[#allocation2 + $0x7c] sm:$0xf]  ;;  %v5203_v17 = vcombine.low %v1770_v57, %v7123_v27  ;;  %2515 = vmatpush1.bf16.msra.mxu0 %v6232_v43  ;;  %v1882_v18 = vrot.slane %v1880_v55, 1  ;;  %v1772_v58 = vld [vmem:[#allocation2 + $0x30] sm:$0xe] }
 0x15c   : > { %v1979_v49 = vor.u32 %v1978_v62, %v1974_v42  ;;  %v1887_v24 = vrot.slane %v1885_v14, 1  ;;  %v7267_v26 = vcombine.low %v1752_v5, %v7263_v20  ;;  %v7269_v10 = vld [vmem:[#allocation2 + $0x80] ss:$0 sps:$4 sm:$0x11]   ;;  %2516 = vmatprep.subr.bf16.mxu0 %v6390_v4  ;;  %v1960_v59 = vsel %vm8790_vm6, %v1955_v48, %v1959_v33  ;;  %v6233_v33 = vld [vmem:[%s8738_s6 + $0x58] sm:$0xff]  }
 0x15d   : > { %v1996_v31 = vsel %vm8791_vm8, %v1991_v23, %v1995_v51  ;;  %v2088_v29 = vrot.slane %v5203_v17, 1  ;;  %v2089_v27 = vrot.slane %v7119_v12, 1  ;;  %2033 = vrot.lane.b32.xlu1 %v1960_v59, %s6391_s24  ;;  %v1883_v43 = vor.u32 %v1882_v18, %v1878_v3  ;;  %v7281_v56 = vld [vmem:[#allocation2 + $0x8c] ss:$0 sps:$4 sm:$0x11]  }
 0x15e   : > { %v1984_v40 = vsel %vm8792_vm11, %v1979_v49, %v1983_v16  ;;  %v1998_v46 = vshrl.u32 %v7267_v26, 16  ;;  %v2000_v42 = vshll.u32 %v7267_v26, 16  ;;  %v2005_v51 = vshll.u32 %v7269_v10, 16  ;;  %v1773_v62 = vld [vmem:[#allocation2 + $0x3c] sm:$0xe] }
 0x15f   : > { %2039 = vrot.lane.b32.xlu0 %v1996_v31, %s6391_s24  ;;  %v7289_v12 = vcombine.low %v1754_v11, %v7274_v32  ;;  %v7292_v57 = vsel %vm2081_vm1, %v2088_v29, %v2089_v27  ;;  %v5204_v52 = vcombine.low %v1771_v45, %v7066_v61  ;;  %v1888_v60 = vsel %vm8793_vm13, %v1883_v43, %v1887_v24  ;;  %v1774_v23 = vld [vmem:[#allocation2 + $0x48] sm:$0xe]  ;;  %v1775_v18 = vld [vmem:[#allocation2 + $0x54] sm:$0xe]  ;;  %v1776_v31 = vld [vmem:[#allocation2 + $0x60] sm:$0xe] }
 0x160   : > { %v2002_v3 = vrot.slane %v2000_v42, 1  ;;  %v2017_v5 = vshll.u32 %v7281_v56, 16  ;;  %v2092_v6 = vrot.slane %v7106_v54, 1  ;;  %2517 = vmatpush1.bf16.msra.mxu0 %v6233_v33  ;;  %v2007_v55 = vrot.slane %v2005_v51, 1  ;;  %v1778_v51 = vld [vmem:[#allocation2 + $0x78] sm:$0xe] }
 0x161   : > { %v2010_v14 = vshrl.u32 %v7289_v12, 16  ;;  %v2012_v11 = vshll.u32 %v7289_v12, 16  ;;  %v2091_v48 = vrot.slane %v5204_v52, 1  ;;  %2037 = vrot.lane.b32.xlu1 %v1984_v40, %s6391_s24  ;;  %v5205_v17 = vcombine.low %v1772_v58, %v7167_v25  ;;  %v1779_v58 = vld [vmem:[#allocation2 + $0x84] sm:$0xe] }
 0x162   : > { %v2003_v61 = vor.u32 %v2002_v3, %v1998_v46  ;;  %v2019_v16 = vrot.slane %v2017_v5, 1  ;;  %v2095_v49 = vrot.slane %v7171_v63, 1  ;;  %v5206_v45 = vcombine.low %v1773_v62, %v7136_v34  ;;  %v1777_v63 = vld [vmem:[#allocation2 + $0x6c] sm:$0xe] }
 0x163   : > { %2021 = vrot.lane.b32.xlu0 %v1888_v60, %s6391_s24  ;;  %v2014_v54 = vrot.slane %v2012_v11, 1  ;;  %v7305_v24 = vsel %vm2081_vm1, %v2091_v48, %v2092_v6  ;;  %v2098_v59 = vrot.slane %v7151_v50, 1  ;;  %v2094_v27 = vrot.slane %v5205_v17, 1  ;;  %v6224_v17 = vld [vmem:[%s8738_s6 + $0xd0] sm:$0xff]  }
 0x164   : > { %v2008_v29 = vsel %vm8794_vm14, %v2003_v61, %v2007_v55  ;;  %v5207_v40 = vcombine.low %v1774_v23, %v7191_v38  ;;  %v2101_v25 = vrot.slane %v7193_v39, 1  ;;  %v2097_v46 = vrot.slane %v5206_v45, 1 }
 0x165   : > { %v2015_v43 = vor.u32 %v2014_v54, %v2010_v14  ;;  %v5208_v42 = vcombine.low %v1775_v18, %v7176_v13  ;;  %v2104_v33 = vrot.slane %v7185_v30, 1  ;;  %2041 = vrot.lane.b32.xlu1 %v2008_v29, %s6391_s24  ;;  %v7316_v34 = vsel %vm2081_vm1, %v2094_v27, %v2095_v49  ;;  %v6231_v49 = vld [vmem:[%s8738_s6 + $0xe0] sm:$0xff]   ;;  %v6235_v18 = vld [vmem:[%s8738_s6 + $0xe8] sm:$0xff]  }
 0x166   : > { %v2100_v50 = vrot.slane %v5207_v40, 1  ;;  %v5209_v52 = vcombine.low %v1776_v31, %v7209_v28  ;;  %v2107_v38 = vrot.slane %v7240_v53, 1  ;;  %v7322_v60 = vsel %vm2081_vm1, %v2097_v46, %v2098_v59  ;;  %v6236_v59 = vld [vmem:[%s8738_s6 + $0xf0] sm:$0xff]  }
 0x167   : > { %v2020_v39 = vsel %vm8795_vm10, %v2015_v43, %v2019_v16  ;;  %v2103_v13 = vrot.slane %v5208_v42, 1  ;;  %v5210_v30 = vcombine.low %v1777_v63, %v7198_v21  ;;  %v2110_v6 = vrot.slane %v7202_v2, 1 }
 0x168   : > { %v7326_v3 = vsel %vm2081_vm1, %v2100_v50, %v2101_v25  ;;  %v2106_v5 = vrot.slane %v5209_v52, 1  ;;  %v5211_v62 = vcombine.low %v1778_v51, %v7263_v20  ;;  %v2113_v55 = vrot.slane %v7269_v10, 1  ;;  %v6219_v10 = vld [vmem:[%s8738_s6 + $0xc0] sm:$0xff]   ;;  %v6244_v50 = vld [vmem:[%s8738_s6 + $0x110] sm:$0xff]  }
 0x169   : > { %v7331_v28 = vsel %vm2081_vm1, %v2103_v13, %v2104_v33  ;;  %v2109_v53 = vrot.slane %v5210_v30, 1  ;;  %v5212_v14 = vcombine.low %v1779_v58, %v7274_v32  ;;  %2043 = vrot.lane.b32.xlu1 %v2020_v39, %s6391_s24  ;;  %v2116_v48 = vrot.slane %v7281_v56, 1  ;;  %v6221_v56 = vld [vmem:[%s8738_s6 + $0xc8] sm:$0xff]   ;;  %v6240_v25 = vld [vmem:[%s8738_s6 + $0x100] sm:$0xff]   ;;  %v7414_v33 = vpop.f32.mrb[0].mxu0 }
 0x16a   : > { %v7337_v21 = vsel %vm2081_vm1, %v2106_v5, %v2107_v38  ;;  %v2112_v11 = vrot.slane %v5211_v62, 1  ;;  %v723_v52 = vpop.f32.mrb[1].mxu0  ;;  %vm3311_vm2 = vcmask 1043456   ;;  %vm8802_vm6 = vsmask.f32 7938 }
 0x16b   : > { %v7341_v2 = vsel %vm2081_vm1, %v2109_v53, %v2110_v6  ;;  %v2115_v20 = vrot.slane %v5212_v14, 1  ;;  %v3000_v52 = vld [vmem:[#allocation3] sm:$0x1]  ;;  %vm7917_vm8 = vmand %vm3311_vm2, %vm8802_vm6 }
 0x16c   : > { %v7344_v23 = vsel %vm2081_vm1, %v2112_v11, %v2113_v55 }
 0x16d   : > { %v7347_v61 = vsel %vm2081_vm1, %v2115_v20, %v2116_v48 }
 0x1af   : > { %v2024_v32 = vpop.permute.xlu0 %2023 }
 0x1b0   : > { %v7354_v16 = vsel %vm2118_vm0, %v6979_v44, %v2024_v32  ;;  %v6228_v44 = vld [vmem:[%s8738_s6 + $0xd8] sm:$0xff]  }
 0x1b1   : > { %2339 = vmatmul.mubr.bf16.vlgmr.msra.gmra.mrb[24].mxu1 %v7354_v16 }
 0x1b2   : > { %5250 = vmatprep.mubr.msk.bf16.mxu1 %vm2118_vm0, %v7292_v57  ;;  %2708 = vmatpush1.bf16.msra.mxu1 %v6219_v10 }
 0x1b3   : > { %2709 = vmatprep.subr.bf16.mxu1 %v6390_v4 }
 0x1b6   : > { %2710 = vmatpush1.bf16.msra.mxu1 %v6221_v56 }
 0x1b7   : > { %2711 = vmatprep.subr.bf16.mxu1 %v6390_v4 }
 0x1ba   : > { %2712 = vmatpush1.bf16.msra.mxu1 %v6224_v17 }
 0x1bb   : > { %2713 = vmatprep.subr.bf16.mxu1 %v6390_v4 }
 0x1bc   : > { %v2028_v31 = vpop.permute.xlu1 %2027 }
 0x1bd   : > { %v7396_v27 = vsel %vm2118_vm0, %v7084_v1, %v2028_v31  ;;  %v6242_v1 = vld [vmem:[%s8738_s6 + $0x108] sm:$0xff]  }
 0x1be   : > { %2714 = vmatpush1.bf16.msra.mxu1 %v6228_v44 }
 0x1bf   : > { %2715 = vmatprep.subr.bf16.mxu1 %v6390_v4 }
 0x1c2   : > { %2716 = vmatpush1.bf16.msra.mxu1 %v6231_v49 }
 0x1c3   : > { %v2026_v54 = vpop.permute.xlu0 %2025  ;;  %2717 = vmatprep.subr.bf16.mxu1 %v6390_v4 }
 0x1c4   : > { %v7381_v45 = vsel %vm2118_vm0, %v7148_v47, %v2026_v54  ;;  %v6238_v47 = vld [vmem:[%s8738_s6 + $0xf8] sm:$0xff]  }
 0x1c5   : > { %2347 = vmatmul.mubr.bf16.gmra.mrb[28].mxu1 %v7381_v45 }
 0x1c6   : > { %5251 = vmatprep.mubr.msk.bf16.mxu1 %vm2118_vm0, %v7305_v24  ;;  %2718 = vmatpush1.bf16.msra.mxu1 %v6235_v18 }
 0x1c7   : > { %2719 = vmatprep.subr.bf16.mxu1 %v6390_v4  ;;  %v2032_v29 = vpop.permute.xlu0 %2031 }
 0x1c8   : > { %v7436_v13 = vsel %vm2118_vm0, %v7158_v7, %v2032_v29 }
 0x1c9   : > { %v2030_v63 = vpop.permute.xlu1 %2029 }
 0x1ca   : > { %2720 = vmatpush1.bf16.msra.mxu1 %v6236_v59  ;;  %v7411_v46 = vsel %vm2118_vm0, %v7183_v19, %v2030_v63  ;;  %v7424_v19 = vpop.f32.mrb[2].mxu0 }
 0x1cb   : > { %2721 = vmatprep.subr.bf16.mxu1 %v6390_v4  ;;  %v726_v38 = vpop.f32.mrb[3].mxu0 }
 0x1cc   : > { %v7428_v58 = vpop.f32.mrb[4].mxu0  ;;  %v3001_v38 = vsel %vm6511_vm3, 0, %v3000_v52  ;;  %v6274_v52 = vld [vmem:[%s8740_s8 + $0x30] sm:$0xff]  }
 0x1cd   : > { %2355 = vmatmul.mubr.bf16.gmra.mrb[32].mxu1 %v7396_v27  ;;  %v2036_v40 = vpop.permute.xlu0 %2035  ;;  %v731_v39 = vpop.f32.mrb[5].mxu0  ;;  %3002 = vst [vmem:[#allocation3] sm:$0x1] %v3001_v38  ;;  %v3043_v38 = vld [vmem:[#allocation3 + $0x38] sm:$0x1] }
 0x1ce   : > { %5252 = vmatprep.mubr.msk.bf16.mxu1 %vm2118_vm0, %v7316_v34  ;;  %2722 = vmatpush1.bf16.msra.mxu1 %v6238_v47  ;;  %v7489_v6 = vpop.f32.mrb[6].mxu0  ;;  %v6255_v39 = vld [vmem:[%s8740_s8 + $0x40] sm:$0xff]  }
 0x1cf   : > { %2723 = vmatprep.subr.bf16.mxu1 %v6390_v4 }
 0x1d1   : > { %v2040_v43 = vpop.permute.xlu0 %2039 }
 0x1d2   : > { %2724 = vmatpush1.bf16.msra.mxu1 %v6240_v25 }
 0x1d3   : > { %2725 = vmatprep.subr.bf16.mxu1 %v6390_v4 }
 0x1d5   : > { %2363 = vmatmul.mubr.bf16.gmra.mrb[36].mxu1 %v7411_v46  ;;  %v2022_v42 = vpop.permute.xlu0 %2021 }
 0x1d6   : > { %5253 = vmatprep.mubr.msk.bf16.mxu1 %vm2118_vm0, %v7322_v60  ;;  %v2120_v51 = vsel %vm2118_vm0, %v7012_v35, %v2022_v42  ;;  %2726 = vmatpush1.bf16.msra.mxu1 %v6242_v1  ;;  %v6245_v35 = vld [vmem:[%s8738_s6 + $0x118] sm:$0xff]   ;;  %v6247_v1 = vld [vmem:[%s8740_s8 + $0x100] sm:$0xff]   ;;  %v6252_v42 = vld [vmem:[%s8740_s8 + $0xd0] sm:$0xff]  }
 0x1d7   : > { %2527 = vmatmul.mubr.bf16.vlgmr.msra.gmra.mrb[40].mxu0 %v2120_v51  ;;  %2727 = vmatprep.subr.bf16.mxu1 %v6390_v4 }
 0x1d8   : > { %5272 = vmatprep.mubr.msk.bf16.mxu0 %vm2118_vm0, %v7021_v41  ;;  %v2034_v41 = vpop.permute.xlu1 %2033  ;;  %5613 = vmatprep.subr.bf16.mxu0 %v6247_v1  ;;  %v6268_v1 = vld [vmem:[%s8740_s8 + $0x20] sm:$0xff]  }
 0x1d9   : > { %v7446_v30 = vsel %vm2118_vm0, %v7228_v37, %v2034_v41  ;;  %v6257_v41 = vld [vmem:[%s8740_s8 + $0x120] sm:$0xff]  }
 0x1da   : > { %2728 = vmatpush1.bf16.msra.mxu1 %v6244_v50  ;;  %v6253_v50 = vld [vmem:[%s8740_s8 + $0x118] sm:$0xff]  }
 0x1db   : > { %2729 = vmatprep.subr.bf16.mxu1 %v6390_v4  ;;  %v7456_v4 = vsel %vm2118_vm0, %v7189_v36, %v2036_v40  ;;  %v7476_v36 = vsel %vm2118_vm0, %v7234_v15, %v2040_v43  ;;  %v734_v15 = vpop.f32.mrb[7].mxu0 }
 0x1dc   : > { %v2038_v7 = vpop.permute.xlu1 %2037  ;;  %v7494_v62 = vpop.f32.mrb[8].mxu0  ;;  %v6261_v15 = vld [vmem:[%s8740_s8 + $0x50] sm:$0xff]  }
 0x1dd   : > { %2371 = vmatmul.mubr.bf16.gmra.mrb[40].mxu1 %v7436_v13  ;;  %v7466_v37 = vsel %vm2118_vm0, %v7238_v22, %v2038_v7  ;;  %v739_v53 = vpop.f32.mrb[9].mxu0 }
 0x1de   : > { %5254 = vmatprep.mubr.msk.bf16.mxu1 %vm2118_vm0, %v7326_v3  ;;  %2730 = vmatpush1.bf16.msra.mxu1 %v6245_v35  ;;  %v7498_v55 = vpop.f32.mrb[10].mxu0  ;;  %v3031_v35 = vld [vmem:[#allocation3 + $0x8] sm:$0x1]  ;;  %v3006_v53 = vld [vmem:[#allocation3 + $0x18] sm:$0x1] }
 0x1df   : > { %2535 = vmatmul.mubr.bf16.gmra.mrb[44].mxu0 %v7354_v16  ;;  %5693 = vmatprep.subr.bf16.mxu1 %v6255_v39  ;;  %v6276_v39 = vld [vmem:[%s8740_s8 + $0x138] sm:$0xff]  }
 0x1e0   : > { %5273 = vmatprep.mubr.msk.bf16.mxu0 %vm2118_vm0, %v7292_v57  ;;  %v2042_v22 = vpop.permute.xlu1 %2041 }
 0x1e1   : > { %v7486_v5 = vsel %vm2118_vm0, %v7267_v26, %v2042_v22  ;;  %v742_v26 = vpop.f32.mrb[11].mxu0  ;;  %v6259_v22 = vld [vmem:[%s8740_s8 + $0x48] sm:$0xff]  }
 0x1e2   : > { %v7500_v14 = vpop.f32.mrb[12].mxu0  ;;  %v3007_v26 = vsel %vm6511_vm3, 0, %v3006_v53  ;;  %v7691_v53 = vld [vmem:[%s8740_s8 + $0x140] sm:$0xff]  }
 0x1e3   : > { %v747_v11 = vpop.f32.mrb[13].mxu0  ;;  %3008 = vst [vmem:[#allocation3 + $0x18] sm:$0x1] %v3007_v26  ;;  %v3018_v26 = vld [vmem:[#allocation3 + $0x48] sm:$0x1] }
 0x1e4   : > { %v6262_v11 = vld [vmem:[%s8740_s8 + $0x128] sm:$0xff]  }
 0x1e5   : > { %2379 = vmatmul.mubr.bf16.gmra.mrb[44].mxu1 %v7446_v30 }
 0x1e6   : > { %5255 = vmatprep.mubr.msk.bf16.mxu1 %vm2118_vm0, %v7331_v28 }
 0x1e7   : > { %2543 = vmatmul.mubr.bf16.gmra.mrb[48].mxu0 %v7381_v45 }
 0x1e8   : > { %5274 = vmatprep.mubr.msk.bf16.mxu0 %vm2118_vm0, %v7305_v24 }
 0x1ed   : > { %2387 = vmatmul.mubr.bf16.gmra.mrb[48].mxu1 %v7456_v4 }
 0x1ee   : > { %5256 = vmatprep.mubr.msk.bf16.mxu1 %vm2118_vm0, %v7337_v21 }
 0x1ef   : > { %2551 = vmatmul.mubr.bf16.gmra.mrb[52].mxu0 %v7396_v27 }
 0x1f0   : > { %5275 = vmatprep.mubr.msk.bf16.mxu0 %vm2118_vm0, %v7316_v34 }
 0x1f5   : > { %2395 = vmatmul.mubr.bf16.gmra.mrb[52].mxu1 %v7466_v37 }
 0x1f6   : > { %5257 = vmatprep.mubr.msk.bf16.mxu1 %vm2118_vm0, %v7341_v2 }
 0x1f7   : > { %2559 = vmatmul.mubr.bf16.gmra.mrb[56].mxu0 %v7411_v46 }
 0x1f8   : > { %5276 = vmatprep.mubr.msk.bf16.mxu0 %vm2118_vm0, %v7322_v60 }
 0x1fd   : > { %2403 = vmatmul.mubr.bf16.gmra.mrb[56].mxu1 %v7476_v36 }
 0x1fe   : > { %5258 = vmatprep.mubr.msk.bf16.mxu1 %vm2118_vm0, %v7344_v23 }
 0x1ff   : > { %2567 = vmatmul.mubr.bf16.gmra.mrb[60].mxu0 %v7436_v13 }
 0x200   : > { %5277 = vmatprep.mubr.msk.bf16.mxu0 %vm2118_vm0, %v7326_v3 }
 0x205   : > { %2411 = vmatmul.mubr.bf16.gmra.mrb[60].mxu1 %v7486_v5 }
 0x206   : > { %5317 = vmatprep.mubr.msk.bf16.mxu1 %vm2118_vm0, %v7292_v57  ;;  %v7514_v57 = vpop.f32.mrb[14].mxu0 }
 0x207   : > { %2575 = vmatmul.mubr.bf16.gmra.mrb[64].mxu0 %v7446_v30  ;;  %v750_v48 = vpop.f32.mrb[15].mxu0 }
 0x208   : > { %5278 = vmatprep.mubr.msk.bf16.mxu0 %vm2118_vm0, %v7331_v28  ;;  %v7516_v20 = vpop.f32.mrb[16].mxu0  ;;  %v6263_v48 = vld [vmem:[%s8740_s8 + $0x10] sm:$0xff]  }
 0x20d   : > { %2740 = vmatmul.mubr.bf16.vlgmr.msra.gmra.mrb[64].mxu1 %v7381_v45 }
 0x20e   : > { %5318 = vmatprep.mubr.msk.bf16.mxu1 %vm2118_vm0, %v7305_v24  ;;  %v755_v24 = vpop.f32.mrb[17].mxu0 }
 0x20f   : > { %2583 = vmatmul.mubr.bf16.gmra.mrb[68].mxu0 %v7456_v4  ;;  %v7518_v10 = vpop.f32.mrb[18].mxu0  ;;  %v6264_v24 = vld [vmem:[%s8740_s8 + $0xe8] sm:$0xff]  }
 0x210   : > { %5279 = vmatprep.mubr.msk.bf16.mxu0 %vm2118_vm0, %v7337_v21  ;;  %v758_v32 = vpop.f32.mrb[19].mxu0 }
 0x215   : > { %2748 = vmatmul.mubr.bf16.gmra.mrb[68].mxu1 %v7396_v27 }
 0x216   : > { %5319 = vmatprep.mubr.msk.bf16.mxu1 %vm2118_vm0, %v7316_v34  ;;  %v7523_v34 = vpop.f32.mrb[20].mxu0 }
 0x217   : > { %2591 = vmatmul.mubr.bf16.gmra.mrb[72].mxu0 %v7466_v37  ;;  %v763_v16 = vpop.f32.mrb[21].mxu0 }
 0x218   : > { %5280 = vmatprep.mubr.msk.bf16.mxu0 %vm2118_vm0, %v7341_v2  ;;  %v7526_v56 = vpop.f32.mrb[22].mxu0  ;;  %v3037_v16 = vld [vmem:[#allocation3 + $0x20] sm:$0x1] }
 0x219   : > { %v766_v17 = vpop.f32.mrb[23].mxu0 }
 0x21a   : > { %v7528_v44 = vpop.f32.mrb[24].mxu0 }
 0x21b   : > { %v771_v49 = vpop.f32.mrb[25].mxu0 }
 0x21c   : > { %v7530_v18 = vpop.f32.mrb[26].mxu0  ;;  %v3038_v49 = vsel %vm6518_vm4, 0, %v3037_v16 }
 0x21d   : > { %2756 = vmatmul.mubr.bf16.gmra.mrb[72].mxu1 %v7411_v46  ;;  %v774_v54 = vpop.f32.mrb[27].mxu0  ;;  %v6248_v46 = vld [vmem:[%s8740_s8 + $0xc0] sm:$0xff]   ;;  %3039 = vst [vmem:[#allocation3 + $0x20] sm:$0x1] %v3038_v49 }
 0x21e   : > { %5320 = vmatprep.mubr.msk.bf16.mxu1 %vm2118_vm0, %v7322_v60  ;;  %v7535_v60 = vpop.f32.mrb[28].mxu0  ;;  %5614 = vmatpush3.bf16.msra.mxu0 %v6248_v46  ;;  %v6265_v54 = vld [vmem:[%s8740_s8 + $0x58] sm:$0xff]   ;;  %v3049_v49 = vld [vmem:[#allocation3 + $0x50] sm:$0x1] }
 0x21f   : > { %2599 = vmatmul.mubr.bf16.gmra.mrb[76].mxu0 %v7476_v36  ;;  %v779_v45 = vpop.f32.mrb[29].mxu0  ;;  %v3040_v46 = vld [vmem:[#allocation3 + $0x2c] sm:$0x1] }
 0x220   : > { %v7537_v59 = vpop.f32.mrb[30].mxu0  ;;  %v6266_v45 = vld [vmem:[%s8740_s8 + $0x18] sm:$0xff]  }
 0x221   : > { %v782_v31 = vpop.f32.mrb[31].mxu0 }
 0x222   : > { %v7539_v29 = vpop.f32.mrb[32].mxu0 }
 0x223   : > { %v787_v47 = vpop.f32.mrb[33].mxu0 }
 0x224   : > { %v7541_v27 = vpop.f32.mrb[34].mxu0  ;;  %v6267_v47 = vld [vmem:[%s8740_s8 + $0x60] sm:$0xff]  }
 0x225   : > { %2764 = vmatmul.mubr.bf16.gmra.mrb[76].mxu1 %v7436_v13  ;;  %v790_v40 = vpop.f32.mrb[35].mxu0  ;;  %v6256_v13 = vld [vmem:[%s8740_s8] sm:$0xff]  }
 0x226   : > { %5321 = vmatprep.mubr.msk.bf16.mxu1 %vm2118_vm0, %v7326_v3  ;;  %v7546_v25 = vpop.f32.mrb[36].mxu0  ;;  %5694 = vmatpush3.bf16.msra.mxu1 %v6256_v13  ;;  %v3009_v40 = vld [vmem:[#allocation3 + $0x24] sm:$0x1]  ;;  %v6277_v13 = vld [vmem:[%s8740_s8 + $0x38] sm:$0xff]  }
 0x227   : > { %v795_v3 = vpop.f32.mrb[37].mxu0  ;;  %5695 = vmatprep.subr.bf16.mxu1 %v6259_v22 }
 0x228   : > { %v7548_v63 = vpop.f32.mrb[38].mxu0 }
 0x229   : > { %v798_v43 = vpop.f32.mrb[39].mxu0 }
 0x22a   : > { %v3010_v43 = vsel %vm6511_vm3, 0, %v3009_v40 }
 0x22b   : > { %3011 = vst [vmem:[#allocation3 + $0x24] sm:$0x1] %v3010_v43 }
 0x22d   : > { %2772 = vmatmul.mubr.bf16.gmra.mrb[80].mxu1 %v7446_v30  ;;  %v6258_v30 = vld [vmem:[%s8740_s8 + $0xe0] sm:$0xff]  }
 0x22e   : > { %5322 = vmatprep.mubr.msk.bf16.mxu1 %vm2118_vm0, %v7331_v28  ;;  %v6249_v28 = vld [vmem:[%s8740_s8 + $0x108] sm:$0xff]  }
 0x22f   : > { %5615 = vmatprep.subr.bf16.mxu0 %v6249_v28  ;;  %v3041_v28 = vsel %vm6518_vm4, 0, %v3040_v46 }
 0x230   : > { %3042 = vst [vmem:[#allocation3 + $0x2c] sm:$0x1] %v3041_v28 }
 0x235   : > { %2780 = vmatmul.mubr.bf16.gmra.mrb[84].mxu1 %v7456_v4  ;;  %v3003_v4 = vld [vmem:[#allocation3 + $0xc] sm:$0x1] }
 0x236   : > { %5323 = vmatprep.mubr.msk.bf16.mxu1 %vm2118_vm0, %v7337_v21  ;;  %v6250_v21 = vld [vmem:[%s8740_s8 + $0xc8] sm:$0xff]   ;;  %v3004_v7 = vsel %vm6511_vm3, 0, %v3003_v4 }
 0x237   : > { %5616 = vmatpush3.bf16.msra.mxu0 %v6250_v21  ;;  %3005 = vst [vmem:[#allocation3 + $0xc] sm:$0x1] %v3004_v7  ;;  %v6269_v21 = vld [vmem:[%s8740_s8 + $0x130] sm:$0xff]  }
 0x23d   : > { %2788 = vmatmul.mubr.bf16.gmra.mrb[88].mxu1 %v7466_v37  ;;  %v3034_v37 = vld [vmem:[#allocation3 + $0x14] sm:$0x1] }
 0x23e   : > { %5324 = vmatprep.mubr.msk.bf16.mxu1 %vm2118_vm0, %v7341_v2  ;;  %v2044_v2 = vpop.permute.xlu1 %2043 }
 0x23f   : > { %v2153_v51 = vsel %vm2118_vm0, %v7289_v12, %v2044_v2  ;;  %v3032_v12 = vsel %vm6518_vm4, 0, %v3031_v35  ;;  %v6270_v2 = vld [vmem:[%s8740_s8 + $0xf0] sm:$0xff]   ;;  %v3044_v35 = vsel %vm6518_vm4, 0, %v3043_v38 }
 0x240   : > { %3033 = vst [vmem:[#allocation3 + $0x8] sm:$0x1] %v3032_v12  ;;  %3045 = vst [vmem:[#allocation3 + $0x38] sm:$0x1] %v3044_v35  ;;  %v6275_v12 = vld [vmem:[%s8740_s8 + $0x78] sm:$0xff]  }
 0x245   : > { %2796 = vmatmul.mubr.bf16.gmra.mrb[92].mxu1 %v7476_v36  ;;  %v3035_v36 = vsel %vm6518_vm4, 0, %v3034_v37 }
 0x246   : > { %5325 = vmatprep.mubr.msk.bf16.mxu1 %vm2118_vm0, %v7344_v23  ;;  %v6251_v23 = vld [vmem:[%s8740_s8 + $0x110] sm:$0xff]   ;;  %3036 = vst [vmem:[#allocation3 + $0x14] sm:$0x1] %v3035_v36 }
 0x247   : > { %5617 = vmatprep.subr.bf16.mxu0 %v6251_v23  ;;  %v6271_v23 = vld [vmem:[%s8740_s8 + $0x68] sm:$0xff]  }
 0x248   : > { %5618 = vmatpush3.bf16.msra.mxu0 %v6252_v42  ;;  %v6272_v42 = vld [vmem:[%s8740_s8 + $0x28] sm:$0xff]  }
 0x249   : > { %5619 = vmatprep.subr.bf16.mxu0 %v6253_v50  ;;  %v3012_v50 = vld [vmem:[#allocation3 + $0x30] sm:$0x1] }
 0x24d   : > { %2804 = vmatmul.mubr.bf16.gmra.mrb[96].mxu1 %v7486_v5  ;;  %v6260_v5 = vld [vmem:[%s8740_s8 + $0x8] sm:$0xff]  }
 0x24e   : > { %5326 = vmatprep.mubr.msk.bf16.mxu1 %vm2118_vm0, %v7347_v61  ;;  %v6254_v61 = vld [vmem:[%s8740_s8 + $0xd8] sm:$0xff]   ;;  %5696 = vmatpush3.bf16.msra.mxu1 %v6260_v5  ;;  %v3046_v5 = vld [vmem:[#allocation3 + $0x44] sm:$0x1] }
 0x24f   : > { %5620 = vmatpush3.bf16.msra.mxu0 %v6254_v61  ;;  %5697 = vmatprep.subr.bf16.mxu1 %v6261_v15  ;;  %v3013_v61 = vsel %vm6511_vm3, 0, %v3012_v50  ;;  %v3047_v15 = vsel %vm6518_vm4, 0, %v3046_v5 }
 0x250   : > { %5621 = vmatprep.subr.bf16.mxu0 %v6257_v41  ;;  %3014 = vst [vmem:[#allocation3 + $0x30] sm:$0x1] %v3013_v61  ;;  %v6278_v41 = vld [vmem:[%s8740_s8 + $0xf8] sm:$0xff]   ;;  %3048 = vst [vmem:[#allocation3 + $0x44] sm:$0x1] %v3047_v15 }
 0x251   : > { %v3024_v61 = vld [vmem:[#allocation3 + $0x60] sm:$0x1]  ;;  %v3027_v15 = vld [vmem:[#allocation3 + $0x6c] sm:$0x1] }
 0x252   : > { %5698 = vmatpush3.bf16.msra.mxu1 %v6263_v48 }
 0x253   : > { %5622 = vmatpush3.bf16.msra.mxu0 %v6258_v30  ;;  %5699 = vmatprep.subr.bf16.mxu1 %v6265_v54  ;;  %v3015_v30 = vld [vmem:[#allocation3 + $0x3c] sm:$0x1]  ;;  %v3050_v54 = vsel %vm6518_vm4, 0, %v3049_v49 }
 0x254   : > { %5623 = vmatprep.subr.bf16.mxu0 %v6262_v11  ;;  %v3016_v7 = vsel %vm6511_vm3, 0, %v3015_v30  ;;  %v3019_v11 = vsel %vm6511_vm3, 0, %v3018_v26  ;;  %3051 = vst [vmem:[#allocation3 + $0x50] sm:$0x1] %v3050_v54 }
 0x255   : > { %2812 = vmatmul.mubr.bf16.gmra.mrb[100].mxu1 %v2153_v51  ;;  %v6273_v51 = vld [vmem:[%s8740_s8 + $0x70] sm:$0xff]   ;;  %3017 = vst [vmem:[#allocation3 + $0x3c] sm:$0x1] %v3016_v7  ;;  %3020 = vst [vmem:[#allocation3 + $0x48] sm:$0x1] %v3019_v11 }
 0x256   : > { %5700 = vmatpush3.bf16.msra.mxu1 %v6266_v45  ;;  %v3021_v45 = vld [vmem:[#allocation3 + $0x54] sm:$0x1] }
 0x257   : > { %5624 = vmatpush3.bf16.msra.mxu0 %v6264_v24  ;;  %5701 = vmatprep.subr.bf16.mxu1 %v6267_v47  ;;  %v3022_v40 = vsel %vm6511_vm3, 0, %v3021_v45 }
 0x258   : > { %5625 = vmatprep.subr.bf16.mxu0 %v6269_v21  ;;  %3023 = vst [vmem:[#allocation3 + $0x54] sm:$0x1] %v3022_v40 }
 0x25a   : > { %5702 = vmatpush3.bf16.msra.mxu1 %v6268_v1 }
 0x25b   : > { %5626 = vmatpush3.bf16.msra.mxu0 %v6270_v2  ;;  %5703 = vmatprep.subr.bf16.mxu1 %v6271_v23  ;;  %v3052_v2 = vld [vmem:[#allocation3 + $0x5c] sm:$0x1] }
 0x25c   : > { %5627 = vmatprep.subr.bf16.mxu0 %v6276_v39 }
 0x25e   : > { %5704 = vmatpush3.bf16.msra.mxu1 %v6272_v42  ;;  %v3053_v42 = vsel %vm6518_vm4, 0, %v3052_v2 }
 0x25f   : > { %5705 = vmatprep.subr.bf16.mxu1 %v6273_v51  ;;  %5628 = vmatpush3.bf16.msra.mxu0 %v6278_v41  ;;  %3054 = vst [vmem:[#allocation3 + $0x5c] sm:$0x1] %v3053_v42 }
 0x260   : > { %5891 = vmatprep.subr.bf16.mxu0 %v7691_v53 }
 0x262   : > { %5706 = vmatpush3.bf16.msra.mxu1 %v6274_v52  ;;  %v3025_v52 = vsel %vm6511_vm3, 0, %v3024_v61 }
 0x263   : > { %5707 = vmatprep.subr.bf16.mxu1 %v6275_v12  ;;  %3026 = vst [vmem:[#allocation3 + $0x60] sm:$0x1] %v3025_v52 }
 0x266   : > { %5708 = vmatpush3.bf16.msra.mxu1 %v6277_v13 }
 0x284   : > { %v7628_v32 = vpop.f32.mrb[24].mxu1 }
 0x285   : > { %v2342_v17 = vpop.f32.mrb[25].mxu1 }
 0x286   : > { %v7638_v31 = vpop.f32.mrb[26].mxu1 }
 0x287   : > { %v2345_v3 = vpop.f32.mrb[27].mxu1 }
 0x298   : > { %v2348_v4 = vpop.f32.mrb[28].mxu1 }
 0x299   : > { %v2350_v37 = vpop.f32.mrb[29].mxu1 }
 0x29a   : > { %v2351_v36 = vpop.f32.mrb[30].mxu1  ;;  %v3055_v37 = vld [vmem:[#allocation3 + $0x68] sm:$0x1] }
 0x29b   : > { %v2353_v22 = vpop.f32.mrb[31].mxu1  ;;  %v3056_v5 = vsel %vm6518_vm4, 0, %v3055_v37 }
 0x29c   : > { %v7717_v22 = vld [vmem:[%s8740_s8 + $0x80] sm:$0xff]   ;;  %3057 = vst [vmem:[#allocation3 + $0x68] sm:$0x1] %v3056_v5 }
 0x29d   : > { %5923 = vmatprep.subr.bf16.mxu1 %v7717_v22 }
 0x2a0   : > { %v2356_v48 = vpop.f32.mrb[32].mxu1 }
 0x2a1   : > { %v2358_v24 = vpop.f32.mrb[33].mxu1 }
 0x2a2   : > { %v2359_v16 = vpop.f32.mrb[34].mxu1 }
 0x2a3   : > { %v2361_v17 = vpop.f32.mrb[35].mxu1 }
 0x2a8   : > { %v2364_v47 = vpop.f32.mrb[36].mxu1 }
 0x2a9   : > { %v2366_v3 = vpop.f32.mrb[37].mxu1 }
 0x2aa   : > { %v2367_v43 = vpop.f32.mrb[38].mxu1  ;;  %v2528_v1 = vpop.f32.mrb[40].mxu0 }
 0x2ab   : > { %v2369_v46 = vpop.f32.mrb[39].mxu1  ;;  %v7701_v28 = vadd.f32 %v2528_v1, %v7628_v32  ;;  %v2530_v21 = vpop.f32.mrb[41].mxu0  ;;  %v3058_v1 = vld [vmem:[#allocation3 + $0x74] sm:$0x1] }
 0x2ac   : > { %v2531_v23 = vpop.f32.mrb[42].mxu0  ;;  %v3059_v46 = vsel %vm6518_vm4, 0, %v3058_v1 }
 0x2ad   : > { %v7706_v51 = vadd.f32 %v2531_v23, %v7638_v31  ;;  %v2533_v50 = vpop.f32.mrb[43].mxu0  ;;  %3060 = vst [vmem:[#allocation3 + $0x74] sm:$0x1] %v3059_v46 }
 0x2b0   : > { %v2372_v38 = vpop.f32.mrb[40].mxu1 }
 0x2b1   : > { %v2374_v35 = vpop.f32.mrb[41].mxu1 }
 0x2b2   : > { %v2375_v32 = vpop.f32.mrb[42].mxu1  ;;  %v2536_v12 = vpop.f32.mrb[44].mxu0 }
 0x2b3   : > { %v2377_v39 = vpop.f32.mrb[43].mxu1  ;;  %v7710_v13 = vadd.f32 %v2536_v12, %v2348_v4  ;;  %v2538_v41 = vpop.f32.mrb[45].mxu0  ;;  %v3028_v4 = vsel %vm6511_vm3, 0, %v3027_v15 }
 0x2b4   : > { %v2539_v30 = vpop.f32.mrb[46].mxu0  ;;  %3029 = vst [vmem:[#allocation3 + $0x6c] sm:$0x1] %v3028_v4 }
 0x2b5   : > { %v7712_v7 = vadd.f32 %v2539_v30, %v2351_v36  ;;  %v2541_v31 = vpop.f32.mrb[47].mxu0 }
 0x2b8   : > { %v2380_v26 = vpop.f32.mrb[44].mxu1 }
 0x2b9   : > { %v2382_v36 = vpop.f32.mrb[45].mxu1 }
 0x2ba   : > { %v2383_v11 = vpop.f32.mrb[46].mxu1  ;;  %v2544_v24 = vpop.f32.mrb[48].mxu0 }
 0x2bb   : > { %v2385_v17 = vpop.f32.mrb[47].mxu1  ;;  %v7724_v49 = vadd.f32 %v2544_v24, %v2356_v48  ;;  %v2546_v54 = vpop.f32.mrb[49].mxu0 }
 0x2bc   : > { %v2547_v45 = vpop.f32.mrb[50].mxu0 }
 0x2bd   : > { %v7726_v40 = vadd.f32 %v2547_v45, %v2359_v16  ;;  %v2549_v3 = vpop.f32.mrb[51].mxu0 }
 0x2c0   : > { %v2388_v21 = vpop.f32.mrb[48].mxu1 }
 0x2c1   : > { %v2390_v2 = vpop.f32.mrb[49].mxu1 }
 0x2c2   : > { %v2391_v23 = vpop.f32.mrb[50].mxu1  ;;  %v2552_v42 = vpop.f32.mrb[52].mxu0 }
 0x2c3   : > { %v2393_v50 = vpop.f32.mrb[51].mxu1  ;;  %v7730_v61 = vadd.f32 %v2552_v42, %v2364_v47  ;;  %v2554_v52 = vpop.f32.mrb[53].mxu0 }
 0x2c4   : > { %v2555_v48 = vpop.f32.mrb[54].mxu0 }
 0x2c5   : > { %v7732_v35 = vadd.f32 %v2555_v48, %v2367_v43  ;;  %v2557_v12 = vpop.f32.mrb[55].mxu0 }
 0x2c8   : > { %v7734_v16 = vpop.f32.mrb[52].mxu1 }
 0x2c9   : > { %v2398_v39 = vpop.f32.mrb[53].mxu1 }
 0x2ca   : > { %v7736_v41 = vpop.f32.mrb[54].mxu1  ;;  %v2560_v9 = vpop.f32.mrb[56].mxu0 }
 0x2cb   : > { %v2401_v30 = vpop.f32.mrb[55].mxu1  ;;  %v7738_v31 = vadd.f32 %v2560_v9, %v2372_v38  ;;  %v2562_v37 = vpop.f32.mrb[57].mxu0 }
 0x2cc   : > { %v2563_v5 = vpop.f32.mrb[58].mxu0 }
 0x2cd   : > { %v7740_v15 = vadd.f32 %v2563_v5, %v2375_v32  ;;  %v2565_v47 = vpop.f32.mrb[59].mxu0  ;;  %v7753_v32 = vld [vmem:[%s8735_s3] ss:$0 sm:$0xff] }
 0x2ce   : > { %v7759_v42 = vadd.f32 %v7753_v32, %v7414_v33  ;;  %v7769_v52 = vadd.f32 %v7753_v32, %v7428_v58  ;;  %v7773_v48 = vadd.f32 %v7753_v32, %v7489_v6  ;;  %v7777_v12 = vadd.f32 %v7753_v32, %v7494_v62 }
 0x2cf   : > { %v7783_v9 = vadd.f32 %v7753_v32, %v7498_v55  ;;  %v3317_v55 = vld [vmem:[#allocation3 + $0x8] sm:$0x1] }
 0x2d0   : > { %v7742_v4 = vpop.f32.mrb[56].mxu1  ;;  %v800_v6 = vmax.f32 %v7759_v42, 0.0  ;;  %v802_v62 = vmax.f32 %v7769_v52, 0.0  ;;  %v803_v47 = vmax.f32 %v7773_v48, 0.0  ;;  %v7828_v42 = vadd.f32 %v7753_v32, %v7528_v44 }
 0x2d1   : > { %v2406_v36 = vpop.f32.mrb[57].mxu1 }
 0x2d2   : > { %v7744_v43 = vpop.f32.mrb[58].mxu1  ;;  %v2568_v24 = vpop.f32.mrb[60].mxu0  ;;  %v7793_v36 = vstv %s5328_s20 }
 0x2d3   : > { %v2409_v17 = vpop.f32.mrb[59].mxu1  ;;  %v7746_v54 = vadd.f32 %v2568_v24, %v2380_v26  ;;  %v2570_v45 = vpop.f32.mrb[61].mxu0  ;;  %v7763_v26 = vadd.f32 %v7753_v32, %v7424_v19  ;;  %v7798_v24 = vadd.f32 %v7753_v32, %v7500_v14  ;;  %v7819_v14 = vadd.f32 %v7753_v32, %v7523_v34 }
 0x2d4   : > { %v2571_v3 = vpop.f32.mrb[62].mxu0  ;;  %v7806_v17 = vadd.f32 %v7753_v32, %v7516_v20  ;;  %vm2918_vm4 = vcmp.ge.s32.totalorder %v7793_v36, 0  ;;  %vm2928_vm0 = vcmp.lt.s32.totalorder %v7793_v36, 16 }
 0x2d5   : > { %v7748_v1 = vadd.f32 %v2571_v3, %v2383_v11  ;;  %v2573_v38 = vpop.f32.mrb[63].mxu0  ;;  %v801_v5 = vmax.f32 %v7763_v26, 0.0  ;;  %v7811_v3 = vld [vmem:[%s8739_s7] ss:$0 sm:$0xff]  ;;  %v7832_v26 = vadd.f32 %v7753_v32, %v7530_v18  ;;  %vm7864_vm12 = vmand %vm2918_vm4, %vm2928_vm0 }
 0x2d6   : > { %v7815_v38 = vadd.f32 %v7753_v32, %v7518_v10  ;;  %v7836_v10 = vadd.f32 %v7753_v32, %v7535_v60 }
 0x2d8   : > { %v7755_v46 = vpop.f32.mrb[60].mxu1 }
 0x2d9   : > { %v2414_v2 = vpop.f32.mrb[61].mxu1 }
 0x2da   : > { %v7765_v11 = vpop.f32.mrb[62].mxu1  ;;  %v2576_v50 = vpop.f32.mrb[64].mxu0 }
 0x2db   : > { %v2417_v33 = vpop.f32.mrb[63].mxu1  ;;  %v7779_v39 = vadd.f32 %v2576_v50, %v2388_v21  ;;  %v2578_v19 = vpop.f32.mrb[65].mxu0 }
 0x2dc   : > { %v2579_v30 = vpop.f32.mrb[66].mxu0 }
 0x2dd   : > { %v7786_v58 = vadd.f32 %v2579_v30, %v2391_v23  ;;  %v2581_v37 = vpop.f32.mrb[67].mxu0  ;;  %v7802_v23 = vadd.f32 %v7753_v32, %v7514_v57  ;;  %v7823_v57 = vadd.f32 %v7753_v32, %v7526_v56 }
 0x2de   : > { %v7850_v37 = vadd.f32 %v7753_v32, %v7537_v59 }
 0x2e0   : > { %v2741_v45 = vpop.f32.mrb[64].mxu1 }
 0x2e1   : > { %v2820_v20 = vadd.f32 %v2741_v45, %v7701_v28  ;;  %v2743_v2 = vpop.f32.mrb[65].mxu1 }
 0x2e2   : > { %v2744_v34 = vpop.f32.mrb[66].mxu1  ;;  %v2584_v56 = vpop.f32.mrb[68].mxu0 }
 0x2e3   : > { %v2847_v50 = vadd.f32 %v7811_v3, %v2820_v20  ;;  %v2821_v28 = vadd.f32 %v2744_v34, %v7706_v51  ;;  %v2746_v44 = vpop.f32.mrb[67].mxu1  ;;  %v7843_v33 = vadd.f32 %v2584_v56, %v7734_v16  ;;  %v2586_v18 = vpop.f32.mrb[69].mxu0  ;;  %v7878_v56 = vadd.f32 %v7753_v32, %v7541_v27 }
 0x2e4   : > { %v2587_v45 = vpop.f32.mrb[70].mxu0  ;;  %v7874_v18 = vadd.f32 %v7753_v32, %v7539_v29  ;;  %v7882_v20 = vadd.f32 %v7753_v32, %v7546_v25 }
 0x2e5   : > { %v2867_v51 = vmax.f32 %v2847_v50, 0.0  ;;  %v2848_v2 = vadd.f32 %v7811_v3, %v2821_v28  ;;  %v7855_v16 = vadd.f32 %v2587_v45, %v7736_v41  ;;  %v2589_v34 = vpop.f32.mrb[71].mxu0  ;;  %v2909_v50 = vadd.s32 1, %v7793_v36 }
 0x2e6   : > { %8798 = vst [vmem:[#allocation4_spill] sm:$0xff] %v7882_v20  ;;  %v7886_v28 = vadd.f32 %v7753_v32, %v7548_v63  ;;  %v7892_v41 = vadd.s32 2, %v7793_v36 }
 0x2e7   : > { %v2887_v45 = vadd.f32 %v2867_v51, %v800_v6  ;;  %v2868_v34 = vmax.f32 %v2848_v2, 0.0  ;;  %vm2919_vm5 = vcmp.ge.s32.totalorder %v2909_v50, 0  ;;  %vm2929_vm9 = vcmp.lt.s32.totalorder %v2909_v50, 16 }
 0x2e8   : > { %v2749_v30 = vpop.f32.mrb[68].mxu1  ;;  %8799 = vst [vmem:[#allocation5_spill] sm:$0xff] %v7886_v28  ;;  %vm7911_vm15 = vmand %vm2919_vm5, %vm2929_vm9  ;;  %vm2920_vm11 = vcmp.ge.s32.totalorder %v7892_v41, 0  ;;  %vm2930_vm13 = vcmp.lt.s32.totalorder %v7892_v41, 16 }
 0x2e9   : > { %v2968_v6 = vsel %vm7864_vm12, %v2887_v45, 0.0  ;;  %v2888_v51 = vadd.f32 %v2868_v34, %v801_v5  ;;  %v2822_v29 = vadd.f32 %v2749_v30, %v7710_v13  ;;  %v2751_v2 = vpop.f32.mrb[69].mxu1  ;;  %vm7955_vm10 = vmand %vm2920_vm11, %vm2930_vm13 }
 0x2ea   : > { %v5574_v44 = vpack.c.bf16 %v2968_v6, %v2968_v6  ;;  %v2752_v27 = vpop.f32.mrb[70].mxu1  ;;  %v2592_v25 = vpop.f32.mrb[72].mxu0 }
 0x2eb   : > { %v2969_v60 = vsel %vm7864_vm12, %v2888_v51, 0.0  ;;  %v2849_v63 = vadd.f32 %v7811_v3, %v2822_v29  ;;  %v2823_v32 = vadd.f32 %v2752_v27, %v7712_v7  ;;  %v2754_v45 = vpop.f32.mrb[71].mxu1  ;;  %v7899_v5 = vadd.f32 %v2592_v25, %v7742_v4  ;;  %v2594_v13 = vpop.f32.mrb[73].mxu0 }
 0x2ec   : > { %v3112_v6 = vshrl.u32 %v5574_v44, 16  ;;  %v5575_v2 = vpack.c.bf16 %v2969_v60, %v2969_v60  ;;  %v2595_v19 = vpop.f32.mrb[74].mxu0  ;;  %v3115_v25 = vshll.u32 %v5574_v44, 16 }
 0x2ed   : > { %v2869_v59 = vmax.f32 %v2849_v63, 0.0  ;;  %v2850_v51 = vadd.f32 %v7811_v3, %v2823_v32  ;;  %v7906_v29 = vadd.f32 %v2595_v19, %v7744_v43  ;;  %v2597_v7 = vpop.f32.mrb[75].mxu0  ;;  %v3313_v43 = vld [vmem:[#allocation3] sm:$0xf] }
 0x2ee   : > { %v3114_v27 = vrot.slane %v3112_v6, 7  ;;  %v3120_v45 = vshrl.u32 %v5575_v2, 16  ;;  %v3123_v32 = vshll.u32 %v5575_v2, 16  ;;  %v7926_v7 = vadd.s32 3, %v7793_v36 }
 0x2ef   : > { %v2889_v19 = vadd.f32 %v2869_v59, %v802_v62  ;;  %v2870_v63 = vmax.f32 %v2850_v51, 0.0 }
 0x2f0   : > { %v3117_v44 = vor.u32 %v3115_v25, %v3114_v27  ;;  %v3122_v50 = vrot.slane %v3120_v45, 7  ;;  %v2757_v6 = vpop.f32.mrb[72].mxu1  ;;  %v3118_v4 = vrot.slane %v3114_v27, 4  ;;  %vm2921_vm14 = vcmp.ge.s32.totalorder %v7926_v7, 0 }
 0x2f1   : > { %v2970_v34 = vsel %vm7911_vm15, %v2889_v19, 0.0  ;;  %v2890_v52 = vadd.f32 %v2870_v63, %v803_v47  ;;  %v2824_v62 = vadd.f32 %v2757_v6, %v7724_v49  ;;  %v2759_v59 = vpop.f32.mrb[73].mxu1  ;;  %vm2931_vm4 = vcmp.lt.s32.totalorder %v7926_v7, 16  ;;  %v3331_v7 = vld [vmem:[#allocation3 + $0x20] sm:$0x1] }
 0x2f2   : > { %v3314_v51 = vsel %vm7917_vm8, %v3117_v44, %v3313_v43  ;;  %v3125_v25 = vor.u32 %v3123_v32, %v3122_v50  ;;  %v3127_v2 = vrot.slane %v3122_v50, 4  ;;  %v5576_v45 = vpack.c.bf16 %v2970_v34, %v2970_v34  ;;  %v2760_v30 = vpop.f32.mrb[74].mxu1  ;;  %v2600_v21 = vpop.f32.mrb[76].mxu0  ;;  %vm8003_vm12 = vmand %vm2921_vm14, %vm2931_vm4 }
 0x2f3   : > { %3315 = vst [vmem:[#allocation3] sm:$0xf] %v3314_v51  ;;  %v2971_v27 = vsel %vm7911_vm15, %v2890_v52, 0.0  ;;  %v2851_v19 = vadd.f32 %v7811_v3, %v2824_v62  ;;  %v2825_v48 = vadd.f32 %v2760_v30, %v7726_v40  ;;  %v2762_v47 = vpop.f32.mrb[75].mxu1  ;;  %v7940_v49 = vadd.f32 %v2600_v21, %v7755_v46  ;;  %v2602_v63 = vpop.f32.mrb[77].mxu0 }
 0x2f4   : > { %v3126_v43 = vsel %vm6839_vm7, %v3118_v4, %v3125_v25  ;;  %v3318_v34 = vsel %vm6511_vm3, %v3127_v2, %v3317_v55  ;;  %v3129_v44 = vshrl.u32 %v5576_v45, 16  ;;  %v2603_v13 = vpop.f32.mrb[78].mxu0  ;;  %v5577_v50 = vpack.c.bf16 %v2971_v27, %v2971_v27  ;;  %v3320_v52 = vld [vmem:[#allocation3 + $0xc] sm:$0xf] }
 0x2f5   : > { %3316 = vst [vmem:[#allocation3 + $0x4] sm:$0xf] %v3126_v43  ;;  %3319 = vst [vmem:[#allocation3 + $0x8] sm:$0x1] %v3318_v34  ;;  %v2871_v32 = vmax.f32 %v2851_v19, 0.0  ;;  %v2852_v40 = vadd.f32 %v7811_v3, %v2825_v48  ;;  %v7949_v46 = vadd.f32 %v2603_v13, %v7765_v11  ;;  %v2605_v21 = vpop.f32.mrb[79].mxu0 }
 0x2f6   : > { %v3131_v30 = vrot.slane %v3129_v44, 7  ;;  %v3132_v6 = vshll.u32 %v5576_v45, 16  ;;  %v7961_v4 = vadd.s32 4, %v7793_v36  ;;  %v3137_v62 = vshrl.u32 %v5577_v50, 16 }
 0x2f7   : > { %8805 = vst [vmem:[#allocation6_spill] sm:$0xff] %v7949_v46  ;;  %v8808_v11 = vmax.f32 %v7777_v12, 0.0  ;;  %v2872_v51 = vmax.f32 %v2852_v40, 0.0  ;;  %v7966_v25 = vadd.s32 5, %v7793_v36  ;;  %v3140_v41 = vshll.u32 %v5577_v50, 16 }
 0x2f8   : > { %v3134_v2 = vor.u32 %v3132_v6, %v3131_v30  ;;  %v2765_v45 = vpop.f32.mrb[76].mxu1  ;;  %v7969_v27 = vadd.s32 6, %v7793_v36  ;;  %v7972_v19 = vadd.s32 7, %v7793_v36  ;;  %v3139_v48 = vrot.slane %v3137_v62, 7  ;;  %v3324_v50 = vld [vmem:[#allocation3 + $0x14] sm:$0x1] }
 0x2f9   : > { %v2891_v59 = vadd.f32 %v2871_v32, %v8808_v11  ;;  %v8809_v12 = vmax.f32 %v7783_v9, 0.0  ;;  %v2826_v43 = vadd.f32 %v2765_v45, %v7730_v61  ;;  %v2767_v34 = vpop.f32.mrb[77].mxu1  ;;  %v3135_v44 = vrot.slane %v3131_v30, 4 }
 0x2fa   : > { %v3321_v13 = vsel %vm7917_vm8, %v3134_v2, %v3320_v52  ;;  %v2768_v40 = vpop.f32.mrb[78].mxu1  ;;  %v7982_v21 = vadd.s32 8, %v7793_v36  ;;  %v3142_v6 = vor.u32 %v3140_v41, %v3139_v48  ;;  %v3144_v62 = vrot.slane %v3139_v48, 4  ;;  %v3383_v30 = vld [vmem:[#allocation3] sm:$0xf] }
 0x2fb   : > { %v2972_v47 = vsel %vm7955_vm10, %v2891_v59, 0.0  ;;  %v2892_v63 = vadd.f32 %v2872_v51, %v8809_v12  ;;  %3322 = vst [vmem:[#allocation3 + $0xc] sm:$0xf] %v3321_v13  ;;  %v2853_v11 = vadd.f32 %v7811_v3, %v2826_v43  ;;  %v2770_v61 = vpop.f32.mrb[79].mxu1  ;;  %vm2922_vm0 = vcmp.ge.s32.totalorder %v7961_v4, 0 }
 0x2fc   : > { %v5578_v32 = vpack.c.bf16 %v2972_v47, %v2972_v47  ;;  %vm2932_vm2 = vcmp.lt.s32.totalorder %v7961_v4, 16  ;;  %v2827_v2 = vadd.f32 %v2768_v40, %v7732_v35  ;;  %v7990_v45 = vld [vmem:[#allocation3 + $0x4] sm:$0xf]  ;;  %v3143_v41 = vsel %vm6839_vm7, %v3135_v44, %v3142_v6  ;;  %v7997_v12 = vld [vmem:[#allocation3 + $0x8] ss:$0 sps:$4 sm:$0x11]  }
 0x2fd   : > { %v2973_v9 = vsel %vm7955_vm10, %v2892_v63, 0.0  ;;  %v3325_v55 = vsel %vm6511_vm3, %v3144_v62, %v3324_v50  ;;  %v2873_v48 = vmax.f32 %v2853_v11, 0.0  ;;  %v5349_v47 = vcombine.low %v3383_v30, %v7990_v45  ;;  %3323 = vst [vmem:[#allocation3 + $0x10] sm:$0xf] %v3143_v41  ;;  %v3327_v13 = vld [vmem:[#allocation3 + $0x18] sm:$0xf]  ;;  %vm8042_vm6 = vmand %vm2922_vm0, %vm2932_vm2 }
 0x2fe   : > { %v3146_v52 = vshrl.u32 %v5578_v32, 16  ;;  %v3149_v59 = vshll.u32 %v5578_v32, 16  ;;  %v5579_v51 = vpack.c.bf16 %v2973_v9, %v2973_v9  ;;  %3326 = vst [vmem:[#allocation3 + $0x14] sm:$0x1] %v3325_v55  ;;  %v2854_v44 = vadd.f32 %v7811_v3, %v2827_v2 }
 0x2ff   : > { %v8812_v50 = vmax.f32 %v7798_v24, 0.0  ;;  %v3514_v40 = vshrl.u32 %v5349_v47, 16  ;;  %v3516_v6 = vshll.u32 %v5349_v47, 16  ;;  %v3521_v62 = vshll.u32 %v7997_v12, 16 }
 0x300   : > { %v3148_v63 = vrot.slane %v3146_v52, 7  ;;  %v3154_v43 = vshrl.u32 %v5579_v51, 16  ;;  %v3157_v34 = vshll.u32 %v5579_v51, 16  ;;  %v2874_v30 = vmax.f32 %v2854_v44, 0.0  ;;  %v2773_v52 = vpop.f32.mrb[80].mxu1 }
 0x301   : > { %v2893_v32 = vadd.f32 %v2873_v48, %v8812_v50  ;;  %v2828_v41 = vadd.f32 %v2773_v52, %v7738_v31  ;;  %v2775_v2 = vpop.f32.mrb[81].mxu1  ;;  %v3518_v55 = vrot.slane %v3516_v6, 1  ;;  %v3523_v28 = vrot.slane %v3521_v62, 1 }
 0x302   : > { %v3151_v9 = vor.u32 %v3149_v59, %v3148_v63  ;;  %v3152_v11 = vrot.slane %v3148_v63, 4  ;;  %v3156_v61 = vrot.slane %v3154_v43, 7  ;;  %v2776_v59 = vpop.f32.mrb[82].mxu1  ;;  %v8813_v63 = vmax.f32 %v7802_v23, 0.0  ;;  %v3385_v62 = vld [vmem:[#allocation3 + $0xc] sm:$0xf] }
 0x303   : > { %v2974_v51 = vsel %vm8003_vm12, %v2893_v32, 0.0  ;;  %v2855_v44 = vadd.f32 %v7811_v3, %v2828_v41  ;;  %v2829_v32 = vadd.f32 %v2776_v59, %v7740_v15  ;;  %v2778_v46 = vpop.f32.mrb[83].mxu1  ;;  %v3519_v31 = vor.u32 %v3518_v55, %v3514_v40  ;;  %v6294_v15 = vld [vmem:[%s8740_s8 + $0x88] sm:$0xff]   ;;  %v8049_v41 = vld [vmem:[#allocation3] sm:$0xe] }
 0x304   : > { %v3328_v24 = vsel %vm7917_vm8, %v3151_v9, %v3327_v13  ;;  %v3159_v48 = vor.u32 %v3157_v34, %v3156_v61  ;;  %v3161_v50 = vrot.slane %v3156_v61, 4  ;;  %v5580_v20 = vpack.c.bf16 %v2974_v51, %v2974_v51  ;;  %v8036_v61 = vld [vmem:[#allocation3 + $0x10] sm:$0xf]  ;;  %v8081_v51 = vld [vmem:[%s8740_s8 + $0x98] sm:$0xff]  }
 0x305   : > { %3329 = vst [vmem:[#allocation3 + $0x18] sm:$0xf] %v3328_v24  ;;  %v2894_v43 = vadd.f32 %v2874_v30, %v8813_v63  ;;  %vm2923_vm5 = vcmp.ge.s32.totalorder %v7966_v25, 0  ;;  %vm2933_vm9 = vcmp.lt.s32.totalorder %v7966_v25, 16  ;;  %v8027_v23 = vadd.s32 9, %v7793_v36 }
 0x306   : > { %v3160_v34 = vsel %vm6839_vm7, %v3152_v11, %v3159_v48  ;;  %v3332_v13 = vsel %vm6511_vm3, %v3161_v50, %v3331_v7  ;;  %v3163_v6 = vshrl.u32 %v5580_v20, 16  ;;  %v2875_v40 = vmax.f32 %v2855_v44, 0.0  ;;  %v3334_v36 = vld [vmem:[#allocation3 + $0x24] sm:$0xf]  ;;  %vm8094_vm14 = vmand %vm2923_vm5, %vm2933_vm9 }
 0x307   : > { %3330 = vst [vmem:[#allocation3 + $0x1c] sm:$0xf] %v3160_v34  ;;  %3333 = vst [vmem:[#allocation3 + $0x20] sm:$0x1] %v3332_v13  ;;  %v2975_v46 = vsel %vm8003_vm12, %v2894_v43, 0.0  ;;  %v2856_v9 = vadd.f32 %v7811_v3, %v2829_v32  ;;  %v3166_v52 = vshll.u32 %v5580_v20, 16  ;;  %v8047_v35 = vcombine.low %v3385_v62, %v8036_v61 }
 0x308   : > { %vm8814_vm15 = vsmask.f32 7424  ;;  %v3165_v30 = vrot.slane %v3163_v6, 7  ;;  %v5581_v7 = vpack.c.bf16 %v2975_v46, %v2975_v46  ;;  %v8053_v55 = vld [vmem:[#allocation3 + $0x14] ss:$0 sps:$4 sm:$0x11]   ;;  %v5369_v4 = vcombine.low %v8049_v41, %v7990_v45 }
 0x309   : > { %v3524_v11 = vsel %vm8814_vm15, %v3519_v31, %v3523_v28  ;;  %v8817_v28 = vmax.f32 %v7806_v17, 0.0  ;;  %v2876_v20 = vmax.f32 %v2856_v9, 0.0  ;;  %v3674_v24 = vrot.slane %v7997_v12, 1  ;;  %v2781_v43 = vpop.f32.mrb[84].mxu1  ;;  %v6298_v13 = vld [vmem:[%s8740_s8 + $0x90] sm:$0xff]   ;;  %vm8823_vm10 = vmmov %vm8814_vm15 }
 0x30a   : > { %4324 = vmatprep.mubr.bf16.mxu1 %v3524_v11  ;;  %v3168_v48 = vor.u32 %v3166_v52, %v3165_v30  ;;  %v3169_v50 = vrot.slane %v3165_v30, 4  ;;  %v3171_v59 = vshrl.u32 %v5581_v7, 16  ;;  %v3174_v63 = vshll.u32 %v5581_v7, 16  ;;  %v2783_v31 = vpop.f32.mrb[85].mxu1  ;;  %vm8828_vm12 = vmmov %vm8823_vm10 }
 0x30b   : > { %v2895_v2 = vadd.f32 %v2875_v40, %v8817_v28  ;;  %4325 = vmatmul.mubr.bf16.vlgmr.msra.gmra.mrb[104].mxu1 %v5349_v47  ;;  %v8818_v44 = vmax.f32 %v7815_v38, 0.0  ;;  %v2830_v32 = vadd.f32 %v2781_v43, %v7746_v54  ;;  %v3526_v34 = vshrl.u32 %v8047_v35, 16  ;;  %v2784_v46 = vpop.f32.mrb[86].mxu1  ;;  %v3338_v38 = vld [vmem:[#allocation3 + $0x2c] sm:$0x1] }
 0x30c   : > { %5924 = vmatpush3.bf16.msra.mxu1 %v7717_v22  ;;  %v3335_v6 = vsel %vm7917_vm8, %v3168_v48, %v3334_v36  ;;  %v3173_v22 = vrot.slane %v3171_v59, 7  ;;  %v3528_v40 = vshll.u32 %v8047_v35, 16  ;;  %v2831_v11 = vadd.f32 %v2784_v46, %v7748_v1  ;;  %v2786_v30 = vpop.f32.mrb[87].mxu1  ;;  %v3387_v46 = vld [vmem:[#allocation3 + $0x18] sm:$0xf] }
 0x30d   : > { %v2976_v17 = vsel %vm8042_vm6, %v2895_v2, 0.0  ;;  %v2896_v47 = vadd.f32 %v2876_v20, %v8818_v44  ;;  %5925 = vmatprep.subr.bf16.mxu1 %v6294_v15  ;;  %3336 = vst [vmem:[#allocation3 + $0x24] sm:$0xf] %v3335_v6  ;;  %v2857_v9 = vadd.f32 %v7811_v3, %v2830_v32  ;;  %v3533_v52 = vshll.u32 %v8053_v55, 16  ;;  %v3341_v44 = vld [vmem:[#allocation3 + $0x30] sm:$0xf] }
 0x30e   : > { %v5582_v62 = vpack.c.bf16 %v2976_v17, %v2976_v17  ;;  %vm2924_vm11 = vcmp.ge.s32.totalorder %v7969_v27, 0  ;;  %vm2934_vm13 = vcmp.lt.s32.totalorder %v7969_v27, 16  ;;  %v3176_v36 = vor.u32 %v3174_v63, %v3173_v22  ;;  %v8084_v43 = vld [vmem:[#allocation3 + $0x1c] sm:$0xf] }
 0x30f   : > { %v2977_v54 = vsel %vm8042_vm6, %v2896_v47, 0.0  ;;  %v3178_v7 = vrot.slane %v3173_v22, 4  ;;  %v2877_v48 = vmax.f32 %v2857_v9, 0.0  ;;  %v2858_v1 = vadd.f32 %v7811_v3, %v2831_v11  ;;  %vm8145_vm2 = vmand %vm2924_vm11, %vm2934_vm13 }
 0x310   : > { %v3180_v28 = vshrl.u32 %v5582_v62, 16  ;;  %v3183_v2 = vshll.u32 %v5582_v62, 16  ;;  %5926 = vmatpush3.bf16.msra.mxu1 %v6294_v15  ;;  %v5583_v20 = vpack.c.bf16 %v2977_v54, %v2977_v54  ;;  %v3530_v59 = vrot.slane %v3528_v40, 1  ;;  %v2789_v9 = vpop.f32.mrb[88].mxu1  ;;  %vm8833_vm6 = vmmov %vm8823_vm10 }
 0x311   : > { %5927 = vmatprep.subr.bf16.mxu1 %v6298_v13  ;;  %v3177_v63 = vsel %vm6839_vm7, %v3169_v50, %v3176_v36  ;;  %v3339_v17 = vsel %vm6511_vm3, %v3178_v7, %v3338_v38  ;;  %v3535_v32 = vrot.slane %v3533_v52, 1  ;;  %v8821_v50 = vmax.f32 %v7819_v14, 0.0  ;;  %v2791_v7 = vpop.f32.mrb[89].mxu1 }
 0x312   : > { %v3182_v15 = vrot.slane %v3180_v28, 7  ;;  %3337 = vst [vmem:[#allocation3 + $0x28] sm:$0xf] %v3177_v63  ;;  %3340 = vst [vmem:[#allocation3 + $0x2c] sm:$0x1] %v3339_v17  ;;  %v3188_v31 = vshrl.u32 %v5583_v20, 16  ;;  %v3531_v54 = vor.u32 %v3530_v59, %v3526_v34  ;;  %v8101_v25 = vcombine.low %v3387_v46, %v8084_v43 }
 0x313   : > { %v3191_v6 = vshll.u32 %v5583_v20, 16  ;;  %v2897_v22 = vadd.f32 %v2877_v48, %v8821_v50  ;;  %v2878_v62 = vmax.f32 %v2858_v1, 0.0  ;;  %v8822_v52 = vmax.f32 %v7823_v57, 0.0  ;;  %v3345_v28 = vld [vmem:[#allocation3 + $0x38] sm:$0x1] }
 0x314   : > { %v3185_v40 = vor.u32 %v3183_v2, %v3182_v15  ;;  %v3186_v38 = vrot.slane %v3182_v15, 4  ;;  %5928 = vmatpush3.bf16.msra.mxu1 %v6298_v13  ;;  %v3190_v11 = vrot.slane %v3188_v31, 7  ;;  %v2832_v14 = vadd.f32 %v2789_v9, %v7779_v39  ;;  %v2792_v13 = vpop.f32.mrb[90].mxu1  ;;  %v6286_v57 = vld [vmem:[%s8740_s8 + $0x148] sm:$0xff]   ;;  %v6303_v39 = vld [vmem:[%s8740_s8 + $0xa0] sm:$0xff]  }
 0x315   : > { %v2978_v30 = vsel %vm8094_vm14, %v2897_v22, 0.0  ;;  %v2898_v36 = vadd.f32 %v2878_v62, %v8822_v52  ;;  %5929 = vmatprep.subr.bf16.mxu1 %v8081_v51  ;;  %v3536_v20 = vsel %vm8823_vm10, %v3531_v54, %v3535_v32  ;;  %v3538_v48 = vshrl.u32 %v8101_v25, 16  ;;  %v2794_v15 = vpop.f32.mrb[91].mxu1  ;;  %v8138_v54 = vld [vmem:[%s8740_s8 + $0x150] sm:$0xff]  }
 0x316   : > { %v3342_v34 = vsel %vm7917_vm8, %v3185_v40, %v3341_v44  ;;  %v5584_v2 = vpack.c.bf16 %v2978_v30, %v2978_v30  ;;  %v3193_v1 = vor.u32 %v3191_v6, %v3190_v11  ;;  %v3195_v59 = vrot.slane %v3190_v11, 4  ;;  %3986 = vmatprep.mubr.bf16.mxu0 %v3536_v20  ;;  %4332 = vmatprep.mubr.bf16.mxu1 %v3536_v20  ;;  %v8122_v44 = vld [vmem:[#allocation3 + $0x20] ss:$0 sps:$4 sm:$0x11]   ;;  %v3389_v40 = vld [vmem:[#allocation3 + $0x24] sm:$0xf] }
 0x317   : > { %3343 = vst [vmem:[#allocation3 + $0x30] sm:$0xf] %v3342_v34  ;;  %v2979_v63 = vsel %vm8094_vm14, %v2898_v36, 0.0  ;;  %v2859_v17 = vadd.f32 %v7811_v3, %v2832_v14  ;;  %vm2925_vm4 = vcmp.ge.s32.totalorder %v7972_v19, 0  ;;  %vm2935_vm0 = vcmp.lt.s32.totalorder %v7972_v19, 16  ;;  %3987 = vmatmul.mubr.bf16.vlgmr.msra.gmra.mrb[80].mxu0 %v8047_v35  ;;  %4333 = vmatmul.mubr.bf16.gmra.mrb[108].mxu1 %v8047_v35  ;;  %v8217_v19 = vld [vmem:[%s8740_s8 + $0x160] sm:$0xff]   ;;  %vm8838_vm14 = vmmov %vm8833_vm6 }
 0x318   : > { %v3197_v32 = vshrl.u32 %v5584_v2, 16  ;;  %v3200_v31 = vshll.u32 %v5584_v2, 16  ;;  %v5585_v50 = vpack.c.bf16 %v2979_v63, %v2979_v63  ;;  %v2833_v47 = vadd.f32 %v2792_v13, %v7786_v58  ;;  %5892 = vmatpush3.bf16.msra.mxu0 %v7691_v53  ;;  %5930 = vmatpush3.bf16.msra.mxu1 %v8081_v51  ;;  %v6304_v51 = vld [vmem:[%s8740_s8 + $0xa8] sm:$0xff]   ;;  %v2797_v13 = vpop.f32.mrb[92].mxu1  ;;  %vm8202_vm15 = vmand %vm2925_vm4, %vm2935_vm0  ;;  %v8253_v53 = vld [vmem:[%s8740_s8 + $0x200] sm:$0xff]  }
 0x319   : > { %v3194_v6 = vsel %vm6839_vm7, %v3186_v38, %v3193_v1  ;;  %v3346_v22 = vsel %vm6511_vm3, %v3195_v59, %v3345_v28  ;;  %v2879_v62 = vmax.f32 %v2859_v17, 0.0  ;;  %v3540_v46 = vshll.u32 %v8101_v25, 16  ;;  %5893 = vmatprep.subr.bf16.mxu0 %v6286_v57  ;;  %v8150_v11 = vld [vmem:[#allocation3 + $0x28] sm:$0xf]  ;;  %5931 = vmatprep.subr.bf16.mxu1 %v6303_v39  ;;  %v3348_v30 = vld [vmem:[#allocation3 + $0x3c] sm:$0xf]  ;;  %vm8846_vm0 = vmmov %vm8833_vm6 }
 0x31a   : > { %3344 = vst [vmem:[#allocation3 + $0x34] sm:$0xf] %v3194_v6  ;;  %3347 = vst [vmem:[#allocation3 + $0x38] sm:$0x1] %v3346_v22  ;;  %v3199_v58 = vrot.slane %v3197_v32, 7  ;;  %v3205_v35 = vshrl.u32 %v5585_v50, 16  ;;  %v2860_v9 = vadd.f32 %v7811_v3, %v2833_v47  ;;  %v8159_v7 = vcombine.low %v3389_v40, %v8150_v11 }
 0x31b   : > { %v3208_v38 = vshll.u32 %v5585_v50, 16  ;;  %v8826_v52 = vmax.f32 %v7828_v42, 0.0  ;;  %v3542_v14 = vrot.slane %v3540_v46, 1  ;;  %v3545_v27 = vshll.u32 %v8122_v44, 16  ;;  %v3352_v1 = vld [vmem:[#allocation3 + $0x44] sm:$0x1] }
 0x31c   : > { %v3202_v34 = vor.u32 %v3200_v31, %v3199_v58  ;;  %v3203_v28 = vrot.slane %v3199_v58, 4  ;;  %v3207_v2 = vrot.slane %v3205_v35, 7  ;;  %v2880_v20 = vmax.f32 %v2860_v9, 0.0  ;;  %5894 = vmatpush3.bf16.msra.mxu0 %v6286_v57  ;;  %v2799_v15 = vpop.f32.mrb[93].mxu1  ;;  %5932 = vmatpush3.bf16.msra.mxu1 %v6303_v39  ;;  %v6292_v40 = vld [vmem:[%s8740_s8 + $0x158] sm:$0xff]   ;;  %v6308_v58 = vld [vmem:[%s8740_s8 + $0xb0] sm:$0xff]  }
 0x31d   : > { %v2899_v36 = vadd.f32 %v2879_v62, %v8826_v52  ;;  %v3543_v63 = vor.u32 %v3542_v14, %v3538_v48  ;;  %v3547_v17 = vrot.slane %v3545_v27, 1  ;;  %v2834_v42 = vadd.f32 %v2797_v13, %v7843_v33  ;;  %v2800_v6 = vpop.f32.mrb[94].mxu1  ;;  %v8166_v22 = vld [vmem:[#allocation3 + $0x2c] ss:$0 sps:$4 sm:$0x11]   ;;  %5895 = vmatprep.subr.bf16.mxu0 %v8138_v54  ;;  %5933 = vmatprep.subr.bf16.mxu1 %v6304_v51 }
 0x31e   : > { %v3349_v32 = vsel %vm7917_vm8, %v3202_v34, %v3348_v30  ;;  %v3210_v50 = vor.u32 %v3208_v38, %v3207_v2  ;;  %v3212_v31 = vrot.slane %v3207_v2, 4  ;;  %v8827_v48 = vmax.f32 %v7832_v26, 0.0  ;;  %v2802_v46 = vpop.f32.mrb[95].mxu1  ;;  %v3355_v13 = vld [vmem:[#allocation3 + $0x48] sm:$0xf] }
 0x31f   : > { %v2980_v59 = vsel %vm8145_vm2, %v2899_v36, 0.0  ;;  %3350 = vst [vmem:[#allocation3 + $0x3c] sm:$0xf] %v3349_v32  ;;  %v8172_v33 = vsel %vm8828_vm12, %v3543_v63, %v3547_v17  ;;  %v2861_v39 = vadd.f32 %v7811_v3, %v2834_v42  ;;  %v2835_v62 = vadd.f32 %v2800_v6, %v7855_v16  ;;  %v3391_v16 = vld [vmem:[#allocation3 + $0x30] sm:$0xf] }
 0x320   : > { %v5586_v47 = vpack.c.bf16 %v2980_v59, %v2980_v59  ;;  %v2900_v57 = vadd.f32 %v2880_v20, %v8827_v48  ;;  %v3211_v26 = vsel %vm6839_vm7, %v3203_v28, %v3210_v50  ;;  %v3353_v35 = vsel %vm6511_vm3, %v3212_v31, %v3352_v1  ;;  %3994 = vmatprep.mubr.bf16.mxu0 %v8172_v33  ;;  %v2805_v50 = vpop.f32.mrb[96].mxu1 }
 0x321   : > { %4340 = vmatprep.mubr.bf16.mxu1 %v8172_v33  ;;  %3351 = vst [vmem:[#allocation3 + $0x40] sm:$0xf] %v3211_v26  ;;  %3354 = vst [vmem:[#allocation3 + $0x44] sm:$0x1] %v3353_v35  ;;  %3995 = vmatmul.mubr.bf16.gmra.mrb[84].mxu0 %v8101_v25  ;;  %v2881_v52 = vmax.f32 %v2861_v39, 0.0  ;;  %v2862_v36 = vadd.f32 %v7811_v3, %v2835_v62  ;;  %v3550_v14 = vshrl.u32 %v8159_v7, 16 }
 0x322   : > { %v3214_v38 = vshrl.u32 %v5586_v47, 16  ;;  %v3217_v9 = vshll.u32 %v5586_v47, 16  ;;  %v2981_v30 = vsel %vm8145_vm2, %v2900_v57, 0.0  ;;  %4341 = vmatmul.mubr.bf16.gmra.mrb[112].mxu1 %v8101_v25  ;;  %vm2926_vm5 = vcmp.ge.s32.totalorder %v7982_v21, 0  ;;  %v8196_v27 = vld [vmem:[#allocation3 + $0x34] sm:$0xf]  ;;  %5896 = vmatpush3.bf16.msra.mxu0 %v8138_v54  ;;  %vm8847_vm2 = vmmov %vm8846_vm0 }
 0x323   : > { %vm2936_vm9 = vcmp.lt.s32.totalorder %v7982_v21, 16  ;;  %v5587_v28 = vpack.c.bf16 %v2981_v30, %v2981_v30  ;;  %v3552_v2 = vshll.u32 %v8159_v7, 16  ;;  %v3557_v20 = vshll.u32 %v8166_v22, 16  ;;  %5934 = vmatpush3.bf16.msra.mxu1 %v6304_v51  ;;  %5897 = vmatprep.subr.bf16.mxu0 %v6292_v40  ;;  %v2807_v45 = vpop.f32.mrb[97].mxu1  ;;  %v3359_v26 = vld [vmem:[#allocation3 + $0x50] sm:$0x1] }
 0x324   : > { %v3216_v34 = vrot.slane %v3214_v38, 7  ;;  %v8831_v1 = vmax.f32 %v7836_v10, 0.0  ;;  %v2882_v63 = vmax.f32 %v2862_v36, 0.0  ;;  %v8212_v17 = vcombine.low %v3391_v16, %v8196_v27  ;;  %5935 = vmatprep.subr.bf16.mxu1 %v6308_v58  ;;  %v6310_v10 = vld [vmem:[%s8740_s8 + $0xb8] sm:$0xff]   ;;  %v2808_v46 = vpop.f32.mrb[98].mxu1  ;;  %vm8270_vm13 = vmand %vm2926_vm5, %vm2936_vm9 }
 0x325   : > { %v8222_v54 = vrot.slane %v5369_v4, 1  ;;  %v3222_v15 = vshrl.u32 %v5587_v28, 16  ;;  %v3225_v32 = vshll.u32 %v5587_v28, 16  ;;  %v8832_v47 = vmax.f32 %v7850_v37, 0.0  ;;  %v6302_v28 = vld [vmem:[%s8740_s8 + $0x168] sm:$0xff]  }
 0x326   : > { %v2901_v59 = vadd.f32 %v2881_v52, %v8831_v1  ;;  %v3219_v51 = vor.u32 %v3217_v9, %v3216_v34  ;;  %v3220_v42 = vrot.slane %v3216_v34, 4  ;;  %v3554_v48 = vrot.slane %v3552_v2, 1  ;;  %5898 = vmatpush3.bf16.msra.mxu0 %v6292_v40  ;;  %v2810_v9 = vpop.f32.mrb[99].mxu1  ;;  %v8239_v40 = vld [vmem:[#allocation3 + $0x38] ss:$0 sps:$4 sm:$0x11]  }
 0x327   : > { %v2902_v6 = vadd.f32 %v2882_v63, %v8832_v47  ;;  %v3559_v57 = vrot.slane %v3557_v20, 1  ;;  %v3224_v4 = vrot.slane %v3222_v15, 7  ;;  %v2836_v62 = vadd.f32 %v2805_v50, %v7899_v5  ;;  %5936 = vmatpush3.bf16.msra.mxu1 %v6308_v58  ;;  %5899 = vmatprep.subr.bf16.mxu0 %v8217_v19  ;;  %v3362_v1 = vld [vmem:[#allocation3 + $0x54] sm:$0xf]  ;;  %v6349_v47 = vld [vmem:[%s8739_s7] ss:$0 sm:$0xff] }
 0x328   : > { %v2982_v31 = vsel %vm8202_vm15, %v2901_v59, 0.0  ;;  %v3356_v41 = vsel %vm7917_vm8, %v3219_v51, %v3355_v13  ;;  %v3555_v37 = vor.u32 %v3554_v48, %v3550_v14  ;;  %v2837_v38 = vadd.f32 %v2808_v46, %v7906_v29  ;;  %5937 = vmatprep.subr.bf16.mxu1 %v6310_v10 }
 0x329   : > { %v5588_v39 = vpack.c.bf16 %v2982_v31, %v2982_v31  ;;  %3357 = vst [vmem:[#allocation3 + $0x48] sm:$0xf] %v3356_v41  ;;  %v2983_v35 = vsel %vm8202_vm15, %v2902_v6, 0.0  ;;  %v3562_v16 = vshrl.u32 %v8212_v17, 16  ;;  %v3227_v30 = vor.u32 %v3225_v32, %v3224_v4  ;;  %v8264_v32 = vld [vmem:[#allocation3 + $0x40] sm:$0xf] }
 0x32a   : > { %v3229_v52 = vrot.slane %v3224_v4, 4  ;;  %v5589_v58 = vpack.c.bf16 %v2983_v35, %v2983_v35  ;;  %v8242_v34 = vsel %vm8833_vm6, %v3555_v37, %v3559_v57  ;;  %v2863_v14 = vadd.f32 %v7811_v3, %v2836_v62  ;;  %v2813_v57 = vpop.f32.mrb[100].mxu1  ;;  %5900 = vmatpush3.bf16.msra.mxu0 %v8217_v19  ;;  %v3366_v41 = vld [vmem:[#allocation3 + $0x5c] sm:$0x1] }
 0x32b   : > { %v3231_v5 = vshrl.u32 %v5588_v39, 16  ;;  %v3234_v36 = vshll.u32 %v5588_v39, 16  ;;  %v2864_v29 = vadd.f32 %v7811_v3, %v2837_v38  ;;  %vm2927_vm11 = vcmp.ge.s32.totalorder %v8027_v23, 0  ;;  %4002 = vmatprep.mubr.bf16.mxu0 %v8242_v34  ;;  %4348 = vmatprep.mubr.bf16.mxu1 %v8242_v34  ;;  %v3393_v35 = vld [vmem:[#allocation3 + $0x3c] sm:$0xf] }
 0x32c   : > { %v3228_v2 = vsel %vm6839_vm7, %v3220_v42, %v3227_v30  ;;  %v3360_v20 = vsel %vm6511_vm3, %v3229_v52, %v3359_v26  ;;  %v3564_v59 = vshll.u32 %v8212_v17, 16  ;;  %v3239_v63 = vshrl.u32 %v5589_v58, 16  ;;  %4003 = vmatmul.mubr.bf16.gmra.mrb[88].mxu0 %v8159_v7  ;;  %4349 = vmatmul.mubr.bf16.gmra.mrb[116].mxu1 %v8159_v7  ;;  %v2815_v26 = vpop.f32.mrb[101].mxu1 }
 0x32d   : > { %v3233_v13 = vrot.slane %v3231_v5, 7  ;;  %3358 = vst [vmem:[#allocation3 + $0x4c] sm:$0xf] %v3228_v2  ;;  %3361 = vst [vmem:[#allocation3 + $0x50] sm:$0x1] %v3360_v20  ;;  %v3242_v51 = vshll.u32 %v5589_v58, 16  ;;  %5938 = vmatpush3.bf16.msra.mxu1 %v6310_v10  ;;  %v2838_v21 = vadd.f32 %v2813_v57, %v7940_v49  ;;  %5901 = vmatprep.subr.bf16.mxu0 %v6302_v28 }
 0x32e   : > { %v2883_v42 = vmax.f32 %v2863_v14, 0.0  ;;  %v2884_v15 = vmax.f32 %v2864_v29, 0.0  ;;  %v3566_v6 = vrot.slane %v3564_v59, 1  ;;  %v3569_v48 = vshll.u32 %v8239_v40, 16  ;;  %5955 = vmatprep.subr.bf16.mxu1 %v8253_v53  ;;  %v2816_v38 = vpop.f32.mrb[102].mxu1  ;;  %5902 = vmatpush3.bf16.msra.mxu0 %v6302_v28  ;;  %v6313_v59 = vld [vmem:[%s8740_s8 + $0x178] sm:$0xff]  }
 0x32f   : > { %v3236_v50 = vor.u32 %v3234_v36, %v3233_v13  ;;  %v3237_v31 = vrot.slane %v3233_v13, 4  ;;  %v3241_v45 = vrot.slane %v3239_v63, 7  ;;  %v8836_v4 = vmax.f32 %v7874_v18, 0.0  ;;  %v8287_v18 = vld [vmem:[#allocation3 + $0x44] ss:$0 sps:$4 sm:$0x11]  }
 0x330   : > { %v8837_v62 = vmax.f32 %v7878_v56, 0.0  ;;  %v3567_v19 = vor.u32 %v3566_v6, %v3562_v16  ;;  %v3571_v10 = vrot.slane %v3569_v48, 1  ;;  %v8285_v9 = vcombine.low %v3393_v35, %v8264_v32  ;;  %v6307_v56 = vld [vmem:[%s8740_s8 + $0x170] sm:$0xff]   ;;  %v2818_v5 = vpop.f32.mrb[103].mxu1  ;;  %v8839_v13 = vld [vmem:[#allocation6_spill] sm:$0xff] }
 0x331   : > { %v2903_v39 = vadd.f32 %v2883_v42, %v8836_v4  ;;  %v3363_v37 = vsel %vm7917_vm8, %v3236_v50, %v3362_v1  ;;  %v3244_v49 = vor.u32 %v3242_v51, %v3241_v45  ;;  %v3246_v30 = vrot.slane %v3241_v45, 4  ;;  %5903 = vmatprep.subr.bf16.mxu0 %v6307_v56  ;;  %v3373_v50 = vld [vmem:[#allocation3 + $0x68] sm:$0x1] }
 0x332   : > { %v2904_v46 = vadd.f32 %v2884_v15, %v8837_v62  ;;  %3364 = vst [vmem:[#allocation3 + $0x54] sm:$0xf] %v3363_v37  ;;  %v8297_v14 = vsel %vm8838_vm14, %v3567_v19, %v3571_v10  ;;  %v2865_v29 = vadd.f32 %v7811_v3, %v2838_v21  ;;  %vm2937_vm10 = vcmp.lt.s32.totalorder %v8027_v23, 16  ;;  %v3369_v15 = vld [vmem:[#allocation3 + $0x60] sm:$0xf]  ;;  %5904 = vmatpush3.bf16.msra.mxu0 %v6307_v56  ;;  %v8842_v21 = vld [vmem:[#allocation4_spill] sm:$0xff] }
 0x333   : > { %v2984_v52 = vsel %vm8270_vm13, %v2903_v39, 0.0  ;;  %v3245_v2 = vsel %vm6839_vm7, %v3237_v31, %v3244_v49  ;;  %v3367_v20 = vsel %vm6511_vm3, %v3246_v30, %v3366_v41  ;;  %4010 = vmatprep.mubr.bf16.mxu0 %v8297_v14  ;;  %4356 = vmatprep.mubr.bf16.mxu1 %v8297_v14  ;;  %v2839_v1 = vadd.f32 %v2816_v38, %v8839_v13  ;;  %vm8325_vm4 = vmand %vm2927_vm11, %vm2937_vm10  ;;  %v3395_v62 = vld [vmem:[#allocation3 + $0x48] sm:$0xf]  ;;  %v6318_v38 = vld [vmem:[%s8740_s8 + $0x1c0] sm:$0xff]  }
 0x334   : > { %v2985_v16 = vsel %vm8270_vm13, %v2904_v46, 0.0  ;;  %v5590_v36 = vpack.c.bf16 %v2984_v52, %v2984_v52  ;;  %3365 = vst [vmem:[#allocation3 + $0x58] sm:$0xf] %v3245_v2  ;;  %3368 = vst [vmem:[#allocation3 + $0x5c] sm:$0x1] %v3367_v20  ;;  %v3574_v51 = vshrl.u32 %v8285_v9, 16  ;;  %4011 = vmatmul.mubr.bf16.gmra.mrb[92].mxu0 %v8212_v17  ;;  %4357 = vmatmul.mubr.bf16.gmra.mrb[120].mxu1 %v8212_v17 }
 0x335   : > { %v5591_v58 = vpack.c.bf16 %v2985_v16, %v2985_v16  ;;  %v8312_v42 = vld [vmem:[#allocation3 + $0x4c] sm:$0xf]  ;;  %v2885_v31 = vmax.f32 %v2865_v29, 0.0  ;;  %v2866_v6 = vadd.f32 %v6349_v47, %v2839_v1  ;;  %v3576_v48 = vshll.u32 %v8285_v9, 16  ;;  %5905 = vmatprep.subr.bf16.mxu0 %v6313_v59  ;;  %v8844_v30 = vld [vmem:[#allocation5_spill] sm:$0xff] }
 0x336   : > { %v3248_v3 = vshrl.u32 %v5590_v36, 16  ;;  %v3251_v28 = vshll.u32 %v5590_v36, 16  ;;  %v3581_v57 = vshll.u32 %v8287_v18, 16  ;;  %v8333_v46 = vsel %vm2081_vm1, %v8222_v54, %v3674_v24  ;;  %v8340_v23 = vld [vmem:[#allocation3 + $0x50] ss:$0 sps:$4 sm:$0x11]   ;;  %5906 = vmatpush3.bf16.msra.mxu0 %v6313_v59 }
 0x337   : > { %v3256_v63 = vshrl.u32 %v5591_v58, 16  ;;  %v3259_v4 = vshll.u32 %v5591_v58, 16  ;;  %v8843_v26 = vmax.f32 %v8842_v21, 0.0  ;;  %v2886_v37 = vmax.f32 %v2866_v6, 0.0  ;;  %5773 = vmatprep.subr.bf16.mxu0 %v6318_v38 }
 0x338   : > { %v3250_v45 = vrot.slane %v3248_v3, 7  ;;  %v3578_v19 = vrot.slane %v3576_v48, 1  ;;  %v8338_v10 = vcombine.low %v3395_v62, %v8312_v42  ;;  %v8845_v52 = vmax.f32 %v8844_v30, 0.0 }
 0x339   : > { %v3258_v41 = vrot.slane %v3256_v63, 7  ;;  %v2905_v35 = vadd.f32 %v2885_v31, %v8843_v26  ;;  %v3583_v36 = vrot.slane %v3581_v57, 1  ;;  %v3397_v13 = vld [vmem:[#allocation3 + $0x54] sm:$0xf]  ;;  %v3593_v63 = vshll.u32 %v8340_v23, 16 }
 0x33a   : > { %v3253_v12 = vor.u32 %v3251_v28, %v3250_v45  ;;  %v3254_v56 = vrot.slane %v3250_v45, 4  ;;  %v2906_v16 = vadd.f32 %v2886_v37, %v8845_v52  ;;  %v3579_v5 = vor.u32 %v3578_v19, %v3574_v51  ;;  %v3380_v19 = vld [vmem:[#allocation3 + $0x74] sm:$0x1] }
 0x33b   : > { %v3261_v49 = vor.u32 %v3259_v4, %v3258_v41  ;;  %v3263_v24 = vrot.slane %v3258_v41, 4  ;;  %v2986_v54 = vsel %vm8325_vm4, %v2905_v35, 0.0  ;;  %v3588_v28 = vshll.u32 %v8338_v10, 16  ;;  %v8362_v51 = vld [vmem:[#allocation3 + $0x58] sm:$0xf] }
 0x33c   : > { %v3370_v58 = vsel %vm7917_vm8, %v3253_v12, %v3369_v15  ;;  %v5592_v20 = vpack.c.bf16 %v2986_v54, %v2986_v54  ;;  %v2987_v1 = vsel %vm8325_vm4, %v2906_v16, 0.0  ;;  %v8358_v3 = vsel %vm8846_vm0, %v3579_v5, %v3583_v36  ;;  %v8372_v6 = vld [vmem:[#allocation3 + $0x5c] ss:$0 sps:$4 sm:$0x11]   ;;  %v3376_v41 = vld [vmem:[#allocation3 + $0x6c] sm:$0xf] }
 0x33d   : > { %v3262_v29 = vsel %vm6839_vm7, %v3254_v56, %v3261_v49  ;;  %v3374_v2 = vsel %vm6511_vm3, %v3263_v24, %v3373_v50  ;;  %3371 = vst [vmem:[#allocation3 + $0x60] sm:$0xf] %v3370_v58  ;;  %v5593_v50 = vpack.c.bf16 %v2987_v1, %v2987_v1  ;;  %4018 = vmatprep.mubr.bf16.mxu0 %v8358_v3  ;;  %v3586_v31 = vshrl.u32 %v8338_v10, 16 }
 0x33e   : > { %3372 = vst [vmem:[#allocation3 + $0x64] sm:$0xf] %v3262_v29  ;;  %3375 = vst [vmem:[#allocation3 + $0x68] sm:$0x1] %v3374_v2  ;;  %v3265_v15 = vshrl.u32 %v5592_v20, 16  ;;  %4364 = vmatprep.mubr.bf16.mxu1 %v8358_v3  ;;  %v8367_v59 = vcombine.low %v3397_v13, %v8362_v51  ;;  %4019 = vmatmul.mubr.bf16.gmra.mrb[96].mxu0 %v8285_v9  ;;  %v3590_v47 = vrot.slane %v3588_v28, 1 }
 0x33f   : > { %4365 = vmatmul.mubr.bf16.gmra.mrb[124].mxu1 %v8285_v9  ;;  %v3268_v57 = vshll.u32 %v5592_v20, 16  ;;  %v3273_v45 = vshrl.u32 %v5593_v50, 16  ;;  %v3595_v39 = vrot.slane %v3593_v63, 1  ;;  %v3605_v21 = vshll.u32 %v8372_v6, 16 }
 0x340   : > { %v3267_v48 = vrot.slane %v3265_v15, 7  ;;  %v3591_v4 = vor.u32 %v3590_v47, %v3586_v31  ;;  %v3600_v62 = vshll.u32 %v8367_v59, 16  ;;  %v3276_v37 = vshll.u32 %v5593_v50, 16  ;;  %v3414_v50 = vld [vmem:[#allocation3 + $0xc] sm:$0xe] }
 0x341   : > { %v3275_v35 = vrot.slane %v3273_v45, 7  ;;  %v3598_v12 = vshrl.u32 %v8367_v59, 16  ;;  %v3607_v36 = vrot.slane %v3605_v21, 1  ;;  %v5370_v31 = vcombine.low %v3414_v50, %v8036_v61  ;;  %v3415_v47 = vld [vmem:[#allocation3 + $0x18] sm:$0xe]  ;;  %v6337_v50 = vld [vmem:[%s8740_s8 + $0x230] sm:$0xff]  }
 0x342   : > { %v3270_v26 = vor.u32 %v3268_v57, %v3267_v48  ;;  %v8377_v38 = vsel %vm8847_vm2, %v3591_v4, %v3595_v39  ;;  %v3602_v56 = vrot.slane %v3600_v62, 1  ;;  %v3271_v49 = vrot.slane %v3267_v48, 4  ;;  %v3416_v39 = vld [vmem:[#allocation3 + $0x24] sm:$0xe]  ;;  %v6317_v62 = vld [vmem:[%s8740_s8 + $0x208] sm:$0xff]  }
 0x343   : > { %v3278_v54 = vor.u32 %v3276_v37, %v3275_v35  ;;  %v3280_v30 = vrot.slane %v3275_v35, 4  ;;  %4026 = vmatprep.mubr.bf16.mxu0 %v8377_v38  ;;  %4372 = vmatprep.mubr.bf16.mxu1 %v8377_v38  ;;  %v5371_v48 = vcombine.low %v3415_v47, %v8084_v43  ;;  %v3676_v57 = vrot.slane %v5370_v31, 1  ;;  %v6320_v35 = vld [vmem:[%s8740_s8 + $0x180] sm:$0xff]  }
 0x344   : > { %v3377_v24 = vsel %vm7917_vm8, %v3270_v26, %v3376_v41  ;;  %v3399_v52 = vld [vmem:[#allocation3 + $0x60] sm:$0xf]  ;;  %v3603_v5 = vor.u32 %v3602_v56, %v3598_v12  ;;  %vm8848_vm8 = vmmov %vm8846_vm0  ;;  %v3677_v45 = vrot.slane %v8053_v55, 1  ;;  %v3680_v4 = vrot.slane %v8122_v44, 1  ;;  %v3418_v12 = vld [vmem:[#allocation3 + $0x3c] sm:$0xe] }
 0x345   : > { %v8384_v16 = vld [vmem:[#allocation3 + $0x64] sm:$0xf]  ;;  %3378 = vst [vmem:[#allocation3 + $0x6c] sm:$0xf] %v3377_v24  ;;  %v3279_v60 = vsel %vm6839_vm7, %v3271_v49, %v3278_v54  ;;  %v3381_v2 = vsel %vm6511_vm3, %v3280_v30, %v3380_v19  ;;  %vm8849_vm3 = vmmov %vm8846_vm0  ;;  %v3679_v41 = vrot.slane %v5371_v48, 1  ;;  %v5372_v21 = vcombine.low %v3416_v39, %v8150_v11  ;;  %v6324_v24 = vld [vmem:[%s8740_s8 + $0x188] sm:$0xff]  }
 0x346   : > { %v8387_v58 = vcombine.low %v3399_v52, %v8384_v16  ;;  %v8389_v29 = vld [vmem:[#allocation3 + $0x68] ss:$0 sps:$4 sm:$0x11]   ;;  %3379 = vst [vmem:[#allocation3 + $0x70] sm:$0xf] %v3279_v60  ;;  %4027 = vmatmul.mubr.bf16.gmra.mrb[100].mxu0 %v8338_v10  ;;  %v8398_v20 = vsel %vm8848_vm8, %v3603_v5, %v3607_v36  ;;  %v3678_v61 = vsel %vm2081_vm1, %v3676_v57, %v3677_v45  ;;  %v3683_v26 = vrot.slane %v8166_v22, 1  ;;  %vm8850_vm7 = vmmov %vm8846_vm0 }
 0x347   : > { %3382 = vst [vmem:[#allocation3 + $0x74] sm:$0x1] %v3381_v2  ;;  %4373 = vmatmul.mubr.bf16.gmra.mrb[128].mxu1 %v8338_v10  ;;  %v3617_v1 = vshll.u32 %v8389_v29, 16  ;;  %4034 = vmatprep.mubr.bf16.mxu0 %v8398_v20  ;;  %v8423_v43 = vsel %vm2081_vm1, %v3679_v41, %v3680_v4  ;;  %v3682_v44 = vrot.slane %v5372_v21, 1  ;;  %v6321_v11 = vld [vmem:[%s8740_s8 + $0x210] sm:$0xff]   ;;  %v3686_v19 = vrot.slane %v8239_v40, 1 }
 0x348   : > { %v3612_v13 = vshll.u32 %v8387_v58, 16  ;;  %4380 = vmatprep.mubr.bf16.mxu1 %v8398_v20  ;;  %v3610_v8 = vshrl.u32 %v8387_v58, 16  ;;  %v6323_v22 = vld [vmem:[%s8740_s8 + $0x1c8] sm:$0xff]   ;;  %v5374_v56 = vcombine.low %v3418_v12, %v8264_v32  ;;  %v3419_v40 = vld [vmem:[#allocation3 + $0x48] sm:$0xe]  ;;  %v6326_v32 = vld [vmem:[%s8740_s8 + $0x1d0] sm:$0xff]  }
 0x349   : > { %v3619_v63 = vrot.slane %v3617_v1, 1  ;;  %v5375_v54 = vcombine.low %v3419_v40, %v8312_v42  ;;  %v3689_v52 = vrot.slane %v8287_v18, 1  ;;  %v6329_v5 = vld [vmem:[%s8740_s8 + $0x220] sm:$0xff]   ;;  %v6328_v42 = vld [vmem:[%s8740_s8 + $0x190] sm:$0xff]   ;;  %v3692_v60 = vrot.slane %v8340_v23, 1  ;;  %v6331_v18 = vld [vmem:[%s8740_s8 + $0x1d8] sm:$0xff]  }
 0x34a   : > { %v3614_v0 = vrot.slane %v3612_v13, 1  ;;  %v3688_v30 = vrot.slane %v5374_v56, 1  ;;  %v3420_v2 = vld [vmem:[#allocation3 + $0x54] sm:$0xe]  ;;  %v6333_v1 = vld [vmem:[%s8740_s8 + $0x228] sm:$0xff]   ;;  %v6341_v4 = vld [vmem:[%s8740_s8 + $0x1f0] sm:$0xff]  }
 0x34b   : > { %v3691_v36 = vrot.slane %v5375_v54, 1  ;;  %v6336_v31 = vld [vmem:[%s8740_s8 + $0x1a0] sm:$0xff]   ;;  %v3421_v47 = vld [vmem:[#allocation3 + $0x60] sm:$0xe]  ;;  %v6338_v57 = vld [vmem:[%s8740_s8 + $0x1e8] sm:$0xff]  }
 0x34c   : > { %v3615_v28 = vor.u32 %v3614_v0, %v3610_v8  ;;  %v3690_v13 = vsel %vm2081_vm1, %v3688_v30, %v3689_v52  ;;  %v5376_v8 = vcombine.low %v3420_v2, %v8362_v51  ;;  %v6332_v0 = vld [vmem:[%s8740_s8 + $0x198] sm:$0xff]   ;;  %v5377_v45 = vcombine.low %v3421_v47, %v8384_v16  ;;  %v6339_v41 = vld [vmem:[%s8740_s8 + $0x1a8] sm:$0xff]  }
 0x34d   : > { %v3693_v23 = vsel %vm2081_vm1, %v3691_v36, %v3692_v60  ;;  %v3698_v16 = vrot.slane %v8389_v29, 1  ;;  %v6344_v21 = vld [vmem:[%s8740_s8 + $0x1f8] sm:$0xff]  }
 0x34e   : > { %v8406_v15 = vsel %vm8849_vm3, %v3615_v28, %v3619_v63  ;;  %4035 = vmatmul.mubr.bf16.gmra.mrb[104].mxu0 %v8367_v59  ;;  %v6334_v28 = vld [vmem:[%s8740_s8 + $0x1e0] sm:$0xff]   ;;  %v3694_v51 = vrot.slane %v5376_v8, 1  ;;  %v3695_v63 = vrot.slane %v8372_v6, 1  ;;  %v6340_v6 = vld [vmem:[%s8740_s8 + $0x238] sm:$0xff]   ;;  %v3697_v39 = vrot.slane %v5377_v45, 1 }
 0x34f   : > { %4381 = vmatmul.mubr.bf16.gmra.mrb[132].mxu1 %v8367_v59  ;;  %4042 = vmatprep.mubr.bf16.mxu0 %v8406_v15  ;;  %v6345_v29 = vld [vmem:[%s8740_s8 + $0x1b8] sm:$0xff]  }
 0x350   : > { %5939 = vmatprep.mubr.bf16.mxu1 %v8333_v46  ;;  %v3417_v46 = vld [vmem:[#allocation3 + $0x30] sm:$0xe]  ;;  %v3696_v48 = vsel %vm2081_vm1, %v3694_v51, %v3695_v63 }
 0x351   : > { %v5373_v55 = vcombine.low %v3417_v46, %v8196_v27  ;;  %v8437_v27 = vsel %vm2081_vm1, %v3682_v44, %v3683_v26  ;;  %v3422_v46 = vld [vmem:[#allocation3 + $0x6c] sm:$0xe] }
 0x353   : > { %v3685_v37 = vrot.slane %v5373_v55, 1  ;;  %v6347_v55 = vld [vmem:[#allocation3 + $0x74] ss:$0 sps:$4 sm:$0x11]  }
 0x354   : > { %v3701_v26 = vrot.slane %v6347_v55, 1 }
 0x355   : > { %v8450_v49 = vsel %vm2081_vm1, %v3685_v37, %v3686_v19 }
 0x356   : > { %4043 = vmatmul.mubr.bf16.gmra.mrb[108].mxu0 %v8387_v58 }
 0x357   : > { %5940 = vmatmul.mubr.bf16.vlgmr.msra.gmra.mrb[136].mxu1 %v3678_v61  ;;  %5907 = vmatprep.mubr.bf16.mxu0 %v3678_v61  ;;  %v6343_v61 = vld [vmem:[%s8740_s8 + $0x1b0] sm:$0xff]  }
 0x358   : > { %5943 = vmatprep.mubr.bf16.mxu1 %v8423_v43  ;;  %5956 = vmatpush3.bf16.msra.mxu1 %v8253_v53  ;;  %v6325_v53 = vld [vmem:[%s8740_s8 + $0x218] sm:$0xff]  }
 0x359   : > { %5957 = vmatprep.subr.bf16.mxu1 %v6317_v62 }
 0x35c   : > { %5958 = vmatpush3.bf16.msra.mxu1 %v6317_v62  ;;  %v3699_v62 = vsel %vm2081_vm1, %v3697_v39, %v3698_v16 }
 0x35d   : > { %5959 = vmatprep.subr.bf16.mxu1 %v6321_v11 }
 0x35e   : > { %5908 = vmatmul.mubr.bf16.vlgmr.msra.gmra.mrb[112].mxu0 %v8423_v43 }
 0x35f   : > { %5944 = vmatmul.mubr.bf16.gmra.mrb[140].mxu1 %v8437_v27  ;;  %5774 = vmatpush3.bf16.msra.mxu0 %v6320_v35  ;;  %v3629_v35 = vshll.u32 %v6347_v55, 16 }
 0x360   : > { %5911 = vmatprep.mubr.bf16.mxu0 %v8437_v27  ;;  %5947 = vmatprep.mubr.bf16.mxu1 %v8450_v49 }
 0x361   : > { %5960 = vmatpush3.bf16.msra.mxu1 %v6321_v11  ;;  %5775 = vmatprep.subr.bf16.mxu0 %v6323_v22 }
 0x362   : > { %5961 = vmatprep.subr.bf16.mxu1 %v6325_v53 }
 0x363   : > { %5776 = vmatpush3.bf16.msra.mxu0 %v6324_v24 }
 0x364   : > { %5777 = vmatprep.subr.bf16.mxu0 %v6326_v32 }
 0x365   : > { %5962 = vmatpush3.bf16.msra.mxu1 %v6325_v53 }
 0x366   : > { %5963 = vmatprep.subr.bf16.mxu1 %v6329_v5  ;;  %5912 = vmatmul.mubr.bf16.gmra.mrb[116].mxu0 %v8450_v49 }
 0x367   : > { %5948 = vmatmul.mubr.bf16.gmra.mrb[144].mxu1 %v3690_v13  ;;  %5778 = vmatpush3.bf16.msra.mxu0 %v6328_v42 }
 0x368   : > { %5915 = vmatprep.mubr.bf16.mxu0 %v3690_v13  ;;  %5951 = vmatprep.mubr.bf16.mxu1 %v3693_v23 }
 0x369   : > { %5964 = vmatpush3.bf16.msra.mxu1 %v6329_v5  ;;  %5779 = vmatprep.subr.bf16.mxu0 %v6331_v18 }
 0x36a   : > { %5965 = vmatprep.subr.bf16.mxu1 %v6333_v1 }
 0x36b   : > { %5780 = vmatpush3.bf16.msra.mxu0 %v6332_v0 }
 0x36c   : > { %5781 = vmatprep.subr.bf16.mxu0 %v6334_v28 }
 0x36d   : > { %5966 = vmatpush3.bf16.msra.mxu1 %v6333_v1 }
 0x36e   : > { %5967 = vmatprep.subr.bf16.mxu1 %v6337_v50  ;;  %5916 = vmatmul.mubr.bf16.gmra.mrb[120].mxu0 %v3693_v23 }
 0x36f   : > { %5952 = vmatmul.mubr.bf16.gmra.mrb[148].mxu1 %v3696_v48  ;;  %5782 = vmatpush3.bf16.msra.mxu0 %v6336_v31 }
 0x370   : > { %5919 = vmatprep.mubr.bf16.mxu0 %v3696_v48  ;;  %5971 = vmatprep.mubr.bf16.mxu1 %v8423_v43  ;;  %v3402_v43 = vld [vmem:[#allocation3 + $0x70] sm:$0xf] }
 0x371   : > { %5968 = vmatpush3.bf16.msra.mxu1 %v6337_v50  ;;  %5783 = vmatprep.subr.bf16.mxu0 %v6338_v57  ;;  %v5378_v44 = vcombine.low %v3422_v46, %v3402_v43 }
 0x372   : > { %5969 = vmatprep.subr.bf16.mxu1 %v6340_v6 }
 0x373   : > { %5784 = vmatpush3.bf16.msra.mxu0 %v6339_v41 }
 0x374   : > { %5785 = vmatprep.subr.bf16.mxu0 %v6341_v4 }
 0x375   : > { %5970 = vmatpush3.bf16.msra.mxu1 %v6340_v6 }
 0x376   : > { %5920 = vmatmul.mubr.bf16.gmra.mrb[124].mxu0 %v3699_v62 }
 0x377   : > { %5786 = vmatpush3.bf16.msra.mxu0 %v6343_v61  ;;  %4711 = vmatprep.mubr.bf16.mxu0 %v8172_v33  ;;  %v3700_v33 = vrot.slane %v5378_v44, 1 }
 0x378   : > { %5972 = vmatmul.mubr.bf16.vlgmr.msra.gmra.mrb[136].mxu1 %v8437_v27  ;;  %5787 = vmatprep.subr.bf16.mxu0 %v6344_v21 }
 0x379   : > { %5975 = vmatprep.mubr.bf16.mxu1 %v8450_v49 }
 0x37b   : > { %5788 = vmatpush3.bf16.msra.mxu0 %v6345_v29 }
 0x37e   : > { %4712 = vmatmul.mubr.bf16.vlgmr.msra.gmra.mrb[128].mxu0 %v8101_v25  ;;  %v3702_v25 = vsel %vm2081_vm1, %v3700_v33, %v3701_v26 }
 0x37f   : > { %4719 = vmatprep.mubr.bf16.mxu0 %v8242_v34 }
 0x380   : > { %5976 = vmatmul.mubr.bf16.gmra.mrb[140].mxu1 %v3690_v13 }
 0x381   : > { %5979 = vmatprep.mubr.bf16.mxu1 %v3693_v23 }
 0x386   : > { %4720 = vmatmul.mubr.bf16.gmra.mrb[132].mxu0 %v8159_v7  ;;  %v3401_v7 = vld [vmem:[#allocation3 + $0x6c] sm:$0xf] }
 0x387   : > { %4727 = vmatprep.mubr.bf16.mxu0 %v8297_v14  ;;  %v5358_v34 = vcombine.low %v3401_v7, %v3402_v43 }
 0x388   : > { %5980 = vmatmul.mubr.bf16.gmra.mrb[144].mxu1 %v3696_v48 }
 0x389   : > { %5983 = vmatprep.mubr.bf16.mxu1 %v3699_v62  ;;  %v3624_v14 = vshll.u32 %v5358_v34, 16 }
 0x38b   : > { %v3626_v11 = vrot.slane %v3624_v14, 1 }
 0x38e   : > { %4728 = vmatmul.mubr.bf16.gmra.mrb[136].mxu0 %v8212_v17  ;;  %v3622_v17 = vshrl.u32 %v5358_v34, 16 }
 0x38f   : > { %4735 = vmatprep.mubr.bf16.mxu0 %v8358_v3  ;;  %v3631_v3 = vrot.slane %v3629_v35, 1 }
 0x390   : > { %5984 = vmatmul.mubr.bf16.gmra.mrb[148].mxu1 %v3702_v25  ;;  %v3627_v37 = vor.u32 %v3626_v11, %v3622_v17 }
 0x396   : > { %4736 = vmatmul.mubr.bf16.gmra.mrb[140].mxu0 %v8285_v9  ;;  %v3632_v9 = vsel %vm8850_vm7, %v3627_v37, %v3631_v3 }
 0x397   : > { %4743 = vmatprep.mubr.bf16.mxu0 %v8377_v38 }
 0x39e   : > { %4744 = vmatmul.mubr.bf16.gmra.mrb[144].mxu0 %v8338_v10 }
 0x39f   : > { %4751 = vmatprep.mubr.bf16.mxu0 %v8398_v20 }
 0x3a6   : > { %4752 = vmatmul.mubr.bf16.gmra.mrb[148].mxu0 %v8367_v59 }
 0x3a7   : > { %4759 = vmatprep.mubr.bf16.mxu0 %v8406_v15 }
 0x3ae   : > { %4760 = vmatmul.mubr.bf16.gmra.mrb[152].mxu0 %v8387_v58 }
 0x3af   : > { %4767 = vmatprep.mubr.bf16.mxu0 %v3632_v9 }
 0x3b6   : > { %4768 = vmatmul.mubr.bf16.gmra.mrb[156].mxu0 %v5358_v34 }
 0x3de   : > { %v5709_v38 = vpop.f32.mrb[104].mxu1 }
 0x3df   : > { %v5710_v10 = vpop.f32.mrb[105].mxu1 }
 0x3e0   : > { %v8535_v19 = vadd.f32 %v5710_v10, %v5709_v38  ;;  %v5712_v20 = vpop.f32.mrb[106].mxu1 }
 0x3e1   : > { %v5713_v12 = vpop.f32.mrb[107].mxu1 }
 0x3e2   : > { %v8537_v59 = vadd.f32 %v5713_v12, %v5712_v20 }
 0x3ea   : > { %v5629_v27 = vpop.f32.mrb[80].mxu0  ;;  %v5715_v15 = vpop.f32.mrb[108].mxu1 }
 0x3eb   : > { %v5630_v22 = vpop.f32.mrb[81].mxu0  ;;  %v5716_v53 = vpop.f32.mrb[109].mxu1 }
 0x3ec   : > { %v8539_v56 = vadd.f32 %v5630_v22, %v5629_v27  ;;  %v8541_v40 = vadd.f32 %v5716_v53, %v5715_v15  ;;  %v5632_v58 = vpop.f32.mrb[82].mxu0  ;;  %v5718_v49 = vpop.f32.mrb[110].mxu1 }
 0x3ed   : > { %v5633_v24 = vpop.f32.mrb[83].mxu0  ;;  %v5719_v54 = vpop.f32.mrb[111].mxu1 }
 0x3ee   : > { %v8543_v32 = vadd.f32 %v5633_v24, %v5632_v58  ;;  %v8545_v30 = vadd.f32 %v5719_v54, %v5718_v49 }
 0x3f4   : > { %v5635_v52 = vpop.f32.mrb[84].mxu0 }
 0x3f5   : > { %v5721_v5 = vpop.f32.mrb[112].mxu1  ;;  %v5636_v42 = vpop.f32.mrb[85].mxu0 }
 0x3f6   : > { %v5722_v36 = vpop.f32.mrb[113].mxu1  ;;  %v8547_v60 = vadd.f32 %v5636_v42, %v5635_v52  ;;  %v5638_v13 = vpop.f32.mrb[86].mxu0 }
 0x3f7   : > { %v8549_v2 = vadd.f32 %v5722_v36, %v5721_v5  ;;  %v5724_v18 = vpop.f32.mrb[114].mxu1  ;;  %v5639_v1 = vpop.f32.mrb[87].mxu0 }
 0x3f8   : > { %v5725_v8 = vpop.f32.mrb[115].mxu1  ;;  %v8551_v23 = vadd.f32 %v5639_v1, %v5638_v13 }
 0x3f9   : > { %v8553_v0 = vadd.f32 %v5725_v8, %v5724_v18 }
 0x3ff   : > { %v5641_v28 = vpop.f32.mrb[88].mxu0  ;;  %v5727_v51 = vpop.f32.mrb[116].mxu1 }
 0x400   : > { %v5642_v63 = vpop.f32.mrb[89].mxu0  ;;  %v5728_v50 = vpop.f32.mrb[117].mxu1 }
 0x401   : > { %v8555_v31 = vadd.f32 %v5642_v63, %v5641_v28  ;;  %v8557_v47 = vadd.f32 %v5728_v50, %v5727_v51  ;;  %v5644_v48 = vpop.f32.mrb[90].mxu0  ;;  %v5730_v57 = vpop.f32.mrb[118].mxu1 }
 0x402   : > { %v5645_v6 = vpop.f32.mrb[91].mxu0  ;;  %v5731_v45 = vpop.f32.mrb[119].mxu1 }
 0x403   : > { %v8559_v41 = vadd.f32 %v5645_v6, %v5644_v48  ;;  %v8561_v4 = vadd.f32 %v5731_v45, %v5730_v57 }
 0x407   : > { %v5647_v39 = vpop.f32.mrb[92].mxu0  ;;  %v5733_v16 = vpop.f32.mrb[120].mxu1 }
 0x408   : > { %v5648_v61 = vpop.f32.mrb[93].mxu0  ;;  %v5734_v62 = vpop.f32.mrb[121].mxu1 }
 0x409   : > { %v8563_v21 = vadd.f32 %v5648_v61, %v5647_v39  ;;  %v8565_v29 = vadd.f32 %v5734_v62, %v5733_v16  ;;  %v5650_v43 = vpop.f32.mrb[94].mxu0  ;;  %v5736_v46 = vpop.f32.mrb[122].mxu1 }
 0x40a   : > { %v5651_v55 = vpop.f32.mrb[95].mxu0  ;;  %v5737_v44 = vpop.f32.mrb[123].mxu1 }
 0x40b   : > { %v5652_v33 = vadd.f32 %v5651_v55, %v5650_v43  ;;  %v8567_v26 = vadd.f32 %v5737_v44, %v5736_v46 }
 0x411   : > { %v5653_v25 = vpop.f32.mrb[96].mxu0 }
 0x412   : > { %v5739_v7 = vpop.f32.mrb[124].mxu1  ;;  %v5654_v34 = vpop.f32.mrb[97].mxu0 }
 0x413   : > { %v5740_v14 = vpop.f32.mrb[125].mxu1  ;;  %v8569_v11 = vadd.f32 %v5654_v34, %v5653_v25  ;;  %v5656_v35 = vpop.f32.mrb[98].mxu0 }
 0x414   : > { %v8571_v17 = vadd.f32 %v5740_v14, %v5739_v7  ;;  %v5742_v37 = vpop.f32.mrb[126].mxu1  ;;  %v5657_v3 = vpop.f32.mrb[99].mxu0 }
 0x415   : > { %v5743_v9 = vpop.f32.mrb[127].mxu1  ;;  %v8573_v38 = vadd.f32 %v5657_v3, %v5656_v35 }
 0x416   : > { %v8575_v10 = vadd.f32 %v5743_v9, %v5742_v37 }
 0x419   : > { %v5659_v20 = vpop.f32.mrb[100].mxu0 }
 0x41a   : > { %v5745_v12 = vpop.f32.mrb[128].mxu1  ;;  %v5660_v27 = vpop.f32.mrb[101].mxu0 }
 0x41b   : > { %v5746_v15 = vpop.f32.mrb[129].mxu1  ;;  %v5661_v22 = vadd.f32 %v5660_v27, %v5659_v20  ;;  %v5662_v58 = vpop.f32.mrb[102].mxu0 }
 0x41c   : > { %v8577_v53 = vadd.f32 %v5746_v15, %v5745_v12  ;;  %v5748_v49 = vpop.f32.mrb[130].mxu1  ;;  %v5663_v24 = vpop.f32.mrb[103].mxu0 }
 0x41d   : > { %v5749_v54 = vpop.f32.mrb[131].mxu1  ;;  %v5664_v52 = vadd.f32 %v5663_v24, %v5662_v58 }
 0x41e   : > { %v8579_v5 = vadd.f32 %v5749_v54, %v5748_v49 }
 0x421   : > { %v5665_v42 = vpop.f32.mrb[104].mxu0 }
 0x422   : > { %v5751_v36 = vpop.f32.mrb[132].mxu1  ;;  %v5666_v13 = vpop.f32.mrb[105].mxu0 }
 0x423   : > { %v5752_v18 = vpop.f32.mrb[133].mxu1  ;;  %v5667_v1 = vadd.f32 %v5666_v13, %v5665_v42  ;;  %v5668_v28 = vpop.f32.mrb[106].mxu0 }
 0x424   : > { %v5753_v8 = vadd.f32 %v5752_v18, %v5751_v36  ;;  %v5754_v51 = vpop.f32.mrb[134].mxu1  ;;  %v5669_v63 = vpop.f32.mrb[107].mxu0 }
 0x425   : > { %v5755_v50 = vpop.f32.mrb[135].mxu1  ;;  %v5670_v48 = vadd.f32 %v5669_v63, %v5668_v28 }
 0x426   : > { %v5756_v57 = vadd.f32 %v5755_v50, %v5754_v51 }
 0x429   : > { %v5671_v6 = vpop.f32.mrb[108].mxu0 }
 0x42a   : > { %v5672_v45 = vpop.f32.mrb[109].mxu0 }
 0x42b   : > { %v5673_v39 = vadd.f32 %v5672_v45, %v5671_v6  ;;  %v5674_v16 = vpop.f32.mrb[110].mxu0 }
 0x42c   : > { %v5675_v61 = vpop.f32.mrb[111].mxu0 }
 0x42d   : > { %v5676_v62 = vadd.f32 %v5675_v61, %v5674_v16 }
 0x431   : > { %v5909_v43 = vpop.f32.mrb[112].mxu0 }
 0x432   : > { %v4094_v46 = vadd.f32 %v5909_v43, %v8547_v60  ;;  %v4085_v55 = vpop.f32.mrb[113].mxu0 }
 0x433   : > { %v4086_v44 = vadd.f32 %v8539_v56, %v4085_v55  ;;  %v5910_v25 = vpop.f32.mrb[114].mxu0 }
 0x434   : > { %v8584_v7 = vadd.f32 %v8541_v40, %v4094_v46  ;;  %v4097_v34 = vadd.f32 %v5910_v25, %v8551_v23  ;;  %v4088_v14 = vpop.f32.mrb[115].mxu0 }
 0x435   : > { %v4327_v35 = vadd.f32 %v8535_v19, %v4086_v44  ;;  %v4089_v37 = vadd.f32 %v8543_v32, %v4088_v14 }
 0x436   : > { %v8590_v3 = vadd.f32 %v8545_v30, %v4097_v34 }
 0x437   : > { %v4330_v9 = vadd.f32 %v8537_v59, %v4089_v37 }
 0x439   : > { %v5913_v60 = vpop.f32.mrb[116].mxu0 }
 0x43a   : > { %v4110_v20 = vadd.f32 %v5913_v60, %v8563_v21  ;;  %v4101_v56 = vpop.f32.mrb[117].mxu0 }
 0x43b   : > { %v4102_v12 = vadd.f32 %v8555_v31, %v4101_v56  ;;  %v5914_v40 = vpop.f32.mrb[118].mxu0 }
 0x43c   : > { %v8596_v27 = vadd.f32 %v8557_v47, %v4110_v20  ;;  %v4113_v23 = vadd.f32 %v5914_v40, %v5652_v33  ;;  %v4104_v15 = vpop.f32.mrb[119].mxu0 }
 0x43d   : > { %v8599_v19 = vadd.f32 %v8549_v2, %v4102_v12  ;;  %v4105_v32 = vadd.f32 %v8559_v41, %v4104_v15 }
 0x43e   : > { %v8603_v59 = vadd.f32 %v8561_v4, %v4113_v23 }
 0x43f   : > { %v8606_v30 = vadd.f32 %v8553_v0, %v4105_v32 }
 0x441   : > { %v5917_v21 = vpop.f32.mrb[120].mxu0 }
 0x442   : > { %v4126_v31 = vadd.f32 %v5917_v21, %v5661_v22  ;;  %v4117_v58 = vpop.f32.mrb[121].mxu0 }
 0x443   : > { %v4118_v47 = vadd.f32 %v8569_v11, %v4117_v58  ;;  %v5918_v49 = vpop.f32.mrb[122].mxu0 }
 0x444   : > { %v8610_v33 = vadd.f32 %v8571_v17, %v4126_v31  ;;  %v4129_v2 = vadd.f32 %v5918_v49, %v5664_v52  ;;  %v4120_v24 = vpop.f32.mrb[123].mxu0 }
 0x445   : > { %v8613_v41 = vadd.f32 %v8565_v29, %v4118_v47  ;;  %v4121_v4 = vadd.f32 %v8573_v38, %v4120_v24 }
 0x446   : > { %v8617_v54 = vadd.f32 %v8575_v10, %v4129_v2 }
 0x447   : > { %v8620_v0 = vadd.f32 %v8567_v26, %v4121_v4 }
 0x449   : > { %v5921_v11 = vpop.f32.mrb[124].mxu0 }
 0x44a   : > { %v4142_v22 = vadd.f32 %v5921_v11, %v5673_v39  ;;  %v4133_v42 = vpop.f32.mrb[125].mxu0 }
 0x44b   : > { %v5973_v17 = vpop.f32.mrb[136].mxu1  ;;  %v4134_v52 = vadd.f32 %v5667_v1, %v4133_v42  ;;  %v5922_v29 = vpop.f32.mrb[126].mxu0 }
 0x44c   : > { %v4810_v36 = vpop.f32.mrb[137].mxu1  ;;  %v8623_v13 = vadd.f32 %v5753_v8, %v4142_v22  ;;  %v4145_v38 = vadd.f32 %v5922_v29, %v5676_v62  ;;  %v4136_v10 = vpop.f32.mrb[127].mxu0 }
 0x44d   : > { %v5974_v18 = vpop.f32.mrb[138].mxu1  ;;  %v8626_v28 = vadd.f32 %v8577_v53, %v4134_v52  ;;  %v4137_v26 = vadd.f32 %v5670_v48, %v4136_v10 }
 0x44e   : > { %v4813_v51 = vpop.f32.mrb[139].mxu1  ;;  %v8631_v63 = vadd.f32 %v5756_v57, %v4145_v38 }
 0x44f   : > { %v8634_v50 = vadd.f32 %v8579_v5, %v4137_v26  ;;  %v8644_v5 = vld [vmem:[%s8741_s9] ss:$0 sm:$0xff] }
 0x451   : > { %v5789_v1 = vpop.f32.mrb[128].mxu0 }
 0x452   : > { %v5790_v6 = vpop.f32.mrb[129].mxu0 }
 0x453   : > { %v8637_v8 = vpop.f32.mrb[140].mxu1  ;;  %v5791_v45 = vadd.f32 %v5790_v6, %v5789_v1  ;;  %v5792_v16 = vpop.f32.mrb[130].mxu0 }
 0x454   : > { %v4826_v39 = vpop.f32.mrb[141].mxu1  ;;  %v5793_v48 = vpop.f32.mrb[131].mxu0 }
 0x455   : > { %v8639_v53 = vpop.f32.mrb[142].mxu1  ;;  %v5993_v61 = vadd.f32 %v5791_v45, %v4327_v35  ;;  %v5794_v62 = vadd.f32 %v5793_v48, %v5792_v16 }
 0x456   : > { %v4829_v57 = vpop.f32.mrb[143].mxu1 }
 0x457   : > { %v5994_v43 = vadd.f32 %v5993_v61, %v4810_v36  ;;  %v6001_v46 = vadd.f32 %v5794_v62, %v4330_v9 }
 0x459   : > { %v4896_v55 = vadd.f32 %v5994_v43, %v8644_v5  ;;  %v6002_v44 = vadd.f32 %v6001_v46, %v4813_v51  ;;  %v5795_v25 = vpop.f32.mrb[132].mxu0 }
 0x45a   : > { %v5796_v14 = vpop.f32.mrb[133].mxu0 }
 0x45b   : > { %v8652_v34 = vpop.f32.mrb[144].mxu1  ;;  %v4912_v35 = vmax.f32 %v4896_v55, 0.0  ;;  %v4897_v37 = vadd.f32 %v6002_v44, %v8644_v5  ;;  %v5797_v60 = vadd.f32 %v5796_v14, %v5795_v25  ;;  %v5798_v9 = vpop.f32.mrb[134].mxu0 }
 0x45c   : > { %v4842_v20 = vpop.f32.mrb[145].mxu1  ;;  %v5799_v12 = vpop.f32.mrb[135].mxu0 }
 0x45d   : > { %v8655_v56 = vpop.f32.mrb[146].mxu1  ;;  %4928 = vst [vmem:[%s8650_s30] sm:$0xff] %v4912_v35  ;;  %v4913_v40 = vmax.f32 %v4897_v37, 0.0  ;;  %v5989_v23 = vadd.f32 %v5797_v60, %v8584_v7  ;;  %v5800_v15 = vadd.f32 %v5799_v12, %v5798_v9 }
 0x45e   : > { %v4845_v32 = vpop.f32.mrb[147].mxu1 }
 0x45f   : > { %4929 = vst [vmem:[%s8650_s30 + $0x8] sm:$0xff] %v4913_v40  ;;  %v5990_v21 = vadd.f32 %v5989_v23, %v5973_v17  ;;  %v5997_v31 = vadd.f32 %v5800_v15, %v8590_v3 }
 0x461   : > { %v4898_v58 = vadd.f32 %v5990_v21, %v8644_v5  ;;  %v5998_v47 = vadd.f32 %v5997_v31, %v5974_v18  ;;  %v5801_v49 = vpop.f32.mrb[136].mxu0 }
 0x462   : > { %v5802_v24 = vpop.f32.mrb[137].mxu0 }
 0x463   : > { %v8662_v2 = vpop.f32.mrb[148].mxu1  ;;  %v4914_v4 = vmax.f32 %v4898_v58, 0.0  ;;  %v4899_v11 = vadd.f32 %v5998_v47, %v8644_v5  ;;  %v5803_v22 = vadd.f32 %v5802_v24, %v5801_v49  ;;  %v5804_v42 = vpop.f32.mrb[138].mxu0 }
 0x464   : > { %v8665_v7 = vpop.f32.mrb[149].mxu1  ;;  %v5805_v17 = vpop.f32.mrb[139].mxu0 }
 0x465   : > { %v8667_v52 = vpop.f32.mrb[150].mxu1  ;;  %4930 = vst [vmem:[%s8650_s30 + $0x10] sm:$0xff] %v4914_v4  ;;  %v4915_v3 = vmax.f32 %v4899_v11, 0.0  ;;  %v6009_v36 = vadd.f32 %v5803_v22, %v8599_v19  ;;  %v5806_v29 = vadd.f32 %v5805_v17, %v5804_v42 }
 0x466   : > { %v8671_v38 = vpop.f32.mrb[151].mxu1 }
 0x467   : > { %4931 = vst [vmem:[%s8650_s30 + $0x18] sm:$0xff] %v4915_v3  ;;  %v6010_v18 = vadd.f32 %v6009_v36, %v4826_v39  ;;  %v6017_v10 = vadd.f32 %v5806_v29, %v8606_v30 }
 0x469   : > { %v4900_v26 = vadd.f32 %v6010_v18, %v8644_v5  ;;  %v6018_v51 = vadd.f32 %v6017_v10, %v4829_v57  ;;  %v5807_v1 = vpop.f32.mrb[140].mxu0 }
 0x46a   : > { %v5808_v6 = vpop.f32.mrb[141].mxu0 }
 0x46b   : > { %v4916_v45 = vmax.f32 %v4900_v26, 0.0  ;;  %v4901_v16 = vadd.f32 %v6018_v51, %v8644_v5  ;;  %v5809_v48 = vadd.f32 %v5808_v6, %v5807_v1  ;;  %v5810_v61 = vpop.f32.mrb[142].mxu0 }
 0x46c   : > { %v5811_v62 = vpop.f32.mrb[143].mxu0 }
 0x46d   : > { %4932 = vst [vmem:[%s8650_s30 + $0x20] sm:$0xff] %v4916_v45  ;;  %v4917_v19 = vmax.f32 %v4901_v16, 0.0  ;;  %v6005_v43 = vadd.f32 %v5809_v48, %v8596_v27  ;;  %v5812_v46 = vadd.f32 %v5811_v62, %v5810_v61 }
 0x46f   : > { %4933 = vst [vmem:[%s8650_s30 + $0x28] sm:$0xff] %v4917_v19  ;;  %v6006_v30 = vadd.f32 %v6005_v43, %v8637_v8  ;;  %v6013_v39 = vadd.f32 %v5812_v46, %v8603_v59 }
 0x471   : > { %v4902_v57 = vadd.f32 %v6006_v30, %v8644_v5  ;;  %v6014_v55 = vadd.f32 %v6013_v39, %v8639_v53  ;;  %v5813_v44 = vpop.f32.mrb[144].mxu0 }
 0x472   : > { %v5814_v25 = vpop.f32.mrb[145].mxu0 }
 0x473   : > { %v4918_v14 = vmax.f32 %v4902_v57, 0.0  ;;  %v4903_v35 = vadd.f32 %v6014_v55, %v8644_v5  ;;  %v5815_v37 = vadd.f32 %v5814_v25, %v5813_v44  ;;  %v5816_v60 = vpop.f32.mrb[146].mxu0 }
 0x474   : > { %v5817_v9 = vpop.f32.mrb[147].mxu0 }
 0x475   : > { %4934 = vst [vmem:[%s8650_s30 + $0x30] sm:$0xff] %v4918_v14  ;;  %v4919_v27 = vmax.f32 %v4903_v35, 0.0  ;;  %v6025_v12 = vadd.f32 %v5815_v37, %v8613_v41  ;;  %v5818_v8 = vadd.f32 %v5817_v9, %v5816_v60 }
 0x477   : > { %4935 = vst [vmem:[%s8650_s30 + $0x38] sm:$0xff] %v4919_v27  ;;  %v6026_v59 = vadd.f32 %v6025_v12, %v4842_v20  ;;  %v6033_v40 = vadd.f32 %v5818_v8, %v8620_v0 }
 0x479   : > { %v4904_v53 = vadd.f32 %v6026_v59, %v8644_v5  ;;  %v6034_v23 = vadd.f32 %v6033_v40, %v4845_v32  ;;  %v5819_v15 = vpop.f32.mrb[148].mxu0 }
 0x47a   : > { %v5820_v21 = vpop.f32.mrb[149].mxu0 }
 0x47b   : > { %v4920_v31 = vmax.f32 %v4904_v53, 0.0  ;;  %v4905_v58 = vadd.f32 %v6034_v23, %v8644_v5  ;;  %v5821_v47 = vadd.f32 %v5820_v21, %v5819_v15  ;;  %v5822_v49 = vpop.f32.mrb[150].mxu0 }
 0x47c   : > { %v5823_v24 = vpop.f32.mrb[151].mxu0 }
 0x47d   : > { %4936 = vst [vmem:[%s8650_s30 + $0x40] sm:$0xff] %v4920_v31  ;;  %v4921_v41 = vmax.f32 %v4905_v58, 0.0  ;;  %v6021_v4 = vadd.f32 %v5821_v47, %v8610_v33  ;;  %v5824_v11 = vadd.f32 %v5823_v24, %v5822_v49 }
 0x47f   : > { %4937 = vst [vmem:[%s8650_s30 + $0x48] sm:$0xff] %v4921_v41  ;;  %v6022_v0 = vadd.f32 %v6021_v4, %v8652_v34  ;;  %v6029_v20 = vadd.f32 %v5824_v11, %v8617_v54 }
 0x481   : > { %v4906_v32 = vadd.f32 %v6022_v0, %v8644_v5  ;;  %v6030_v22 = vadd.f32 %v6029_v20, %v8655_v56  ;;  %v5825_v42 = vpop.f32.mrb[152].mxu0 }
 0x482   : > { %v5826_v17 = vpop.f32.mrb[153].mxu0 }
 0x483   : > { %v4922_v3 = vmax.f32 %v4906_v32, 0.0  ;;  %v4907_v36 = vadd.f32 %v6030_v22, %v8644_v5  ;;  %v5827_v29 = vadd.f32 %v5826_v17, %v5825_v42  ;;  %v5828_v18 = vpop.f32.mrb[154].mxu0 }
 0x484   : > { %v5829_v10 = vpop.f32.mrb[155].mxu0 }
 0x485   : > { %4938 = vst [vmem:[%s8650_s30 + $0x50] sm:$0xff] %v4922_v3  ;;  %v4923_v33 = vmax.f32 %v4907_v36, 0.0  ;;  %v6041_v26 = vadd.f32 %v5827_v29, %v8626_v28  ;;  %v5830_v34 = vadd.f32 %v5829_v10, %v5828_v18 }
 0x487   : > { %4939 = vst [vmem:[%s8650_s30 + $0x58] sm:$0xff] %v4923_v33  ;;  %v6042_v54 = vadd.f32 %v6041_v26, %v8665_v7  ;;  %v6049_v56 = vadd.f32 %v5830_v34, %v8634_v50 }
 0x489   : > { %v4908_v51 = vadd.f32 %v6042_v54, %v8644_v5  ;;  %v6050_v1 = vadd.f32 %v6049_v56, %v8671_v38  ;;  %v5831_v6 = vpop.f32.mrb[156].mxu0 }
 0x48a   : > { %v5832_v45 = vpop.f32.mrb[157].mxu0 }
 0x48b   : > { %v4924_v16 = vmax.f32 %v4908_v51, 0.0  ;;  %v4909_v48 = vadd.f32 %v6050_v1, %v8644_v5  ;;  %v5833_v61 = vadd.f32 %v5832_v45, %v5831_v6  ;;  %v5834_v28 = vpop.f32.mrb[158].mxu0 }
 0x48c   : > { %v5835_v62 = vpop.f32.mrb[159].mxu0 }
 0x48d   : > { %4940 = vst [vmem:[%s8650_s30 + $0x60] sm:$0xff] %v4924_v16  ;;  %v4925_v19 = vmax.f32 %v4909_v48, 0.0  ;;  %v6037_v7 = vadd.f32 %v5833_v61, %v8623_v13  ;;  %v5836_v43 = vadd.f32 %v5835_v62, %v5834_v28 }
 0x48f   : > { %4941 = vst [vmem:[%s8650_s30 + $0x68] sm:$0xff] %v4925_v19  ;;  %v6038_v50 = vadd.f32 %v6037_v7, %v8662_v2  ;;  %v6045_v38 = vadd.f32 %v5836_v43, %v8631_v63 }
 0x491   : > { %v4910_v46 = vadd.f32 %v6038_v50, %v8644_v5  ;;  %v6046_v30 = vadd.f32 %v6045_v38, %v8667_v52 }
 0x493   : > { %v4926_v39 = vmax.f32 %v4910_v46, 0.0  ;;  %v4911_v57 = vadd.f32 %v6046_v30, %v8644_v5 }
 0x495   : > { %4942 = vst [vmem:[%s8650_s30 + $0x70] sm:$0xff] %v4926_v39  ;;  %v4927_v55 = vmax.f32 %v4911_v57, 0.0 }
 0x497   : > { %4943 = vst [vmem:[%s8650_s30 + $0x78] sm:$0xff] %v4927_v55 }
 0x498 PF: > { %s20_s17 = sadd.s32 1, %s6388_s17   ;;  %s8851_s13 = smov %s6380_s15 }
 0x499   : > { %p17_p8 = scmp.ge.s32.totalorder %s20_s17, 6   ;;  %s8852_s14 = smov %s6384_s16 }
 0x49a   : > { %s8853_s15 = smov %s8856_s18  ;;  %s8854_s16 = smov %s8860_s19 }
 0x49b   :  { %19 = sbr.rel (!%p17_p8) target bundleno = 3 (0x3), region = 97 }

</bundles_post_ra>
